<compile_context>
chip_gen: v5e
topology: v5e:2x2
jax: 0.10.0
libtpu: 0.0.40
codegen_flags: <defaults>
</compile_context>

<pallas_src>
import math

import jax
import jax.numpy as jnp
import numpy as np
from jax.experimental import pallas as pl
from jax.experimental.pallas import tpu as pltpu

LEAKY_SLOPE = 0.2
BN_EPS = 1e-5


def _round_up(x, m):
    return (x + m - 1) // m * m


# ---------------------------------------------------------------------------
# Single fused forward kernel: all layers chained inside one body.
# refs layout: x, w_0..w_{n-1} (bf16), shift_0..shift_{n-1} (f32),
#              w_final (bf16), b_final (f32), recon_out, z_out
# ---------------------------------------------------------------------------
def _make_forward_kernel(n_fused, n_enc):
    def kernel(*refs):
        x_ref = refs[0]
        w_refs = refs[1:1 + n_fused]
        s_refs = refs[1 + n_fused:1 + 2 * n_fused]
        wf_ref = refs[1 + 2 * n_fused]
        bf_ref = refs[2 + 2 * n_fused]
        recon_ref = refs[3 + 2 * n_fused]
        z_ref = refs[4 + 2 * n_fused]

        h = x_ref[...]                                   # (TB, Dp) f32
        for i in range(n_fused):
            # bf16 operands into the MXU, f32 accumulate, f32 epilogue.
            y = jnp.dot(h.astype(jnp.bfloat16), w_refs[i][...],
                        preferred_element_type=jnp.float32)
            y = y + s_refs[i][...]                       # folded bias + BN affine
            h = jnp.where(y > 0, y, LEAKY_SLOPE * y)
            if i == n_enc - 1:
                z_ref[...] = h                           # latent at the bottleneck

        y = jnp.dot(h.astype(jnp.bfloat16), wf_ref[...],
                    preferred_element_type=jnp.float32)
        y = y + bf_ref[...]
        recon_ref[...] = jax.nn.sigmoid(y)
    return kernel


# ---------------------------------------------------------------------------
# Parameter construction (glue, plain JAX / numpy)
# ---------------------------------------------------------------------------
def calculate_layer_sizes(input_dim, hidden_dim, num_layers=3):
    # Mirrors FlexibleAutoencoder._calculate_layer_sizes exactly.
    log_input = np.log(input_dim)
    log_hidden = np.log(hidden_dim)
    log_step = (log_input - log_hidden) / (num_layers + 1)
    sizes = []
    for i in range(1, num_layers + 1):
        size = int(np.exp(log_input - i * log_step))
        sizes.append(max(size, hidden_dim))
    return sizes


def build_params(key, hidden_dim=32, input_shape=(1, 28, 28)):
    input_dim = int(np.prod(input_shape))
    layer_sizes = calculate_layer_sizes(input_dim, hidden_dim, 3)

    enc_dims = [input_dim] + layer_sizes + [hidden_dim]            # 784,352,158,71,32
    dec_dims = [hidden_dim, layer_sizes[-1]] + list(reversed(layer_sizes[:-1])) + [input_dim]
    # dec_dims = 32,71,158,352,784

    fused_dims = list(zip(enc_dims[:-1], enc_dims[1:])) + list(zip(dec_dims[:-2], dec_dims[1:-1]))
    final_in, final_out = dec_dims[-2], dec_dims[-1]

    fused_ws, fused_shifts = [], []
    for (din, dout) in fused_dims:
        key, kw, kb, kg, kbe, km, kv = jax.random.split(key, 7)
        w = jax.random.normal(kw, (din, dout), jnp.float32) * (1.0 / math.sqrt(din))
        b = jax.random.normal(kb, (dout,), jnp.float32) * 0.01
        gamma = jax.random.uniform(kg, (dout,), jnp.float32, 0.5, 1.5)
        beta = jax.random.normal(kbe, (dout,), jnp.float32) * 0.01
        run_mean = jax.random.normal(km, (dout,), jnp.float32) * 0.01
        run_var = jax.random.uniform(kv, (dout,), jnp.float32, 0.5, 1.5)

        # Fold eval-mode BN + bias into the weights / a single shift vector.
        scale = gamma / jnp.sqrt(run_var + BN_EPS)
        w_folded = w * scale[None, :]
        shift = b * scale + beta - run_mean * scale

        din_p, dout_p = _round_up(din, 128), _round_up(dout, 128)
        w_p = (jnp.zeros((din_p, dout_p), jnp.float32)
               .at[:din, :dout].set(w_folded).astype(jnp.bfloat16))
        s_p = jnp.zeros((1, dout_p), jnp.float32).at[0, :dout].set(shift)
        fused_ws.append(w_p)
        fused_shifts.append(s_p)

    key, kw, kb = jax.random.split(key, 3)
    wf = jax.random.normal(kw, (final_in, final_out), jnp.float32) * (1.0 / math.sqrt(final_in))
    bf = jax.random.normal(kb, (final_out,), jnp.float32) * 0.01
    fin_p, fout_p = _round_up(final_in, 128), _round_up(final_out, 128)
    wf_p = (jnp.zeros((fin_p, fout_p), jnp.float32)
            .at[:final_in, :final_out].set(wf).astype(jnp.bfloat16))
    bf_p = jnp.zeros((1, fout_p), jnp.float32).at[0, :final_out].set(bf)

    return dict(
        fused_ws=fused_ws, fused_shifts=fused_shifts,
        w_final=wf_p, b_final=bf_p,
        input_dim=input_dim, hidden_dim=hidden_dim, input_shape=input_shape,
        num_encoder_layers=len(enc_dims) - 1, n_fused=len(fused_dims),
    )


# ---------------------------------------------------------------------------
# Forward pass (matches FlexibleAutoencoder.forward: returns (recon, z))
# ---------------------------------------------------------------------------
def autoencoder_forward(params, x, batch_tile=256):
    original_shape = x.shape
    B = x.shape[0]
    input_dim = params["input_dim"]
    hidden_dim = params["hidden_dim"]
    n_fused = params["n_fused"]
    n_enc = params["num_encoder_layers"]

    Dp = _round_up(input_dim, 128)
    Hp = _round_up(hidden_dim, 128)

    # Flatten (like x.view(B, -1)); pad batch to the tile, features to 128 lanes.
    x_flat = x.reshape(B, -1).astype(jnp.float32)
    Bp_min = _round_up(max(B, 16), 16)           # 16 sublanes: bf16-friendly tiles
    TB = batch_tile if Bp_min > batch_tile else Bp_min
    Bp = _round_up(Bp_min, TB)
    grid = (Bp // TB,)

    x_p = jnp.zeros((Bp, Dp), jnp.float32).at[:B, :input_dim].set(x_flat)

    def act_spec(width):
        return pl.BlockSpec((TB, width), lambda i: (i, 0))

    def const_spec(shape):
        return pl.BlockSpec(shape, lambda i: (0, 0))

    in_specs = [act_spec(Dp)]
    in_specs += [const_spec(w.shape) for w in params["fused_ws"]]
    in_specs += [const_spec(s.shape) for s in params["fused_shifts"]]
    in_specs += [const_spec(params["w_final"].shape),
                 const_spec(params["b_final"].shape)]

    out_specs = [act_spec(Dp), act_spec(Hp)]
    out_shape = [jax.ShapeDtypeStruct((Bp, Dp), jnp.float32),
                 jax.ShapeDtypeStruct((Bp, Hp), jnp.float32)]

    recon_p, z_p = pl.pallas_call(
        _make_forward_kernel(n_fused, n_enc),
        out_shape=out_shape,
        grid=grid,
        in_specs=in_specs,
        out_specs=out_specs,
        compiler_params=pltpu.CompilerParams(
            dimension_semantics=("parallel",)),   # batch tiles shard across TCs (v7x)
    )(x_p, *params["fused_ws"], *params["fused_shifts"],
      params["w_final"], params["b_final"])

    z = z_p[:B, :hidden_dim]
    recon = recon_p[:B, :input_dim]
    if len(original_shape) > 2:
        recon = recon.reshape(original_shape)
    return recon, z


# Pure-JAX reference of the identical (folded, bf16-weight) math for verification.
def reference_forward(params, x):
    B = x.shape[0]
    input_dim = params["input_dim"]
    hidden_dim = params["hidden_dim"]
    n_enc = params["num_encoder_layers"]
    Dp = _round_up(input_dim, 128)

    h = jnp.zeros((B, Dp), jnp.float32).at[:, :input_dim].set(
        x.reshape(B, -1).astype(jnp.float32))
    z = None
    for i, (w, s) in enumerate(zip(params["fused_ws"], params["fused_shifts"])):
        y = jnp.dot(h.astype(jnp.bfloat16), w, preferred_element_type=jnp.float32)
        y = y + s
        h = jnp.where(y > 0, y, LEAKY_SLOPE * y)
        if i == n_enc - 1:
            z = h[:, :hidden_dim]
    y = jnp.dot(h.astype(jnp.bfloat16), params["w_final"],
                preferred_element_type=jnp.float32) + params["b_final"]
    recon = jax.nn.sigmoid(y)[:, :input_dim].reshape(x.shape)
    return recon, z


if __name__ == "__main__":
    key = jax.random.PRNGKey(0)
    kparam, kx = jax.random.split(key)

    params = build_params(kparam, hidden_dim=32, input_shape=(1, 28, 28))

    # Small deterministic input batch, NCHW like PyTorch / MNIST.
    x = jax.random.uniform(kx, (2, 1, 28, 28), jnp.float32)

    recon, z = autoencoder_forward(params, x)
    recon = jax.block_until_ready(recon)
    z = jax.block_until_ready(z)

    assert recon.shape == x.shape, recon.shape
    assert z.shape == (2, 32), z.shape

    # Verify against a pure-JAX reference of the same math.
    recon_ref, z_ref = reference_forward(params, x)
    np.testing.assert_allclose(np.asarray(recon), np.asarray(recon_ref),
                               rtol=1e-3, atol=1e-3)
    np.testing.assert_allclose(np.asarray(z), np.asarray(z_ref),
                               rtol=1e-3, atol=1e-3)

    print("KERNEL_OK")
</pallas_src>

<mosaic_0001>
module attributes {stable_mosaic.version = 11 : i64} {
  func.func @kernel(%arg0: i32, %arg1: memref<16x896xf32, #tpu.memory_space<vmem>>, %arg2: memref<896x384xbf16, #tpu.memory_space<vmem>>, %arg3: memref<384x256xbf16, #tpu.memory_space<vmem>>, %arg4: memref<256x128xbf16, #tpu.memory_space<vmem>>, %arg5: memref<128x128xbf16, #tpu.memory_space<vmem>>, %arg6: memref<128x128xbf16, #tpu.memory_space<vmem>>, %arg7: memref<128x256xbf16, #tpu.memory_space<vmem>>, %arg8: memref<256x384xbf16, #tpu.memory_space<vmem>>, %arg9: memref<1x384xf32, #tpu.memory_space<vmem>>, %arg10: memref<1x256xf32, #tpu.memory_space<vmem>>, %arg11: memref<1x128xf32, #tpu.memory_space<vmem>>, %arg12: memref<1x128xf32, #tpu.memory_space<vmem>>, %arg13: memref<1x128xf32, #tpu.memory_space<vmem>>, %arg14: memref<1x256xf32, #tpu.memory_space<vmem>>, %arg15: memref<1x384xf32, #tpu.memory_space<vmem>>, %arg16: memref<384x896xbf16, #tpu.memory_space<vmem>>, %arg17: memref<1x896xf32, #tpu.memory_space<vmem>>, %arg18: memref<16x896xf32, #tpu.memory_space<vmem>>, %arg19: memref<16x128xf32, #tpu.memory_space<vmem>>) attributes {dimension_semantics = [#tpu.dimension_semantics<parallel>], iteration_bounds = array<i64: 1>, scalar_prefetch = 0 : i64, scratch_operands = 0 : i64, tpu.core_type = #tpu.core_type<tc>, window_params = [{transform_indices = @transform_0, window_bounds = array<i64: 16, 896>}, {pipeline_mode = #tpu.pipeline_mode<synchronous>, transform_indices = @transform_1, window_bounds = array<i64: 896, 384>}, {pipeline_mode = #tpu.pipeline_mode<synchronous>, transform_indices = @transform_2, window_bounds = array<i64: 384, 256>}, {pipeline_mode = #tpu.pipeline_mode<synchronous>, transform_indices = @transform_3, window_bounds = array<i64: 256, 128>}, {pipeline_mode = #tpu.pipeline_mode<synchronous>, transform_indices = @transform_4, window_bounds = array<i64: 128, 128>}, {pipeline_mode = #tpu.pipeline_mode<synchronous>, transform_indices = @transform_5, window_bounds = array<i64: 128, 128>}, {pipeline_mode = #tpu.pipeline_mode<synchronous>, transform_indices = @transform_6, window_bounds = array<i64: 128, 256>}, {pipeline_mode = #tpu.pipeline_mode<synchronous>, transform_indices = @transform_7, window_bounds = array<i64: 256, 384>}, {pipeline_mode = #tpu.pipeline_mode<synchronous>, transform_indices = @transform_8, window_bounds = array<i64: 1, 384>}, {pipeline_mode = #tpu.pipeline_mode<synchronous>, transform_indices = @transform_9, window_bounds = array<i64: 1, 256>}, {pipeline_mode = #tpu.pipeline_mode<synchronous>, transform_indices = @transform_10, window_bounds = array<i64: 1, 128>}, {pipeline_mode = #tpu.pipeline_mode<synchronous>, transform_indices = @transform_11, window_bounds = array<i64: 1, 128>}, {pipeline_mode = #tpu.pipeline_mode<synchronous>, transform_indices = @transform_12, window_bounds = array<i64: 1, 128>}, {pipeline_mode = #tpu.pipeline_mode<synchronous>, transform_indices = @transform_13, window_bounds = array<i64: 1, 256>}, {pipeline_mode = #tpu.pipeline_mode<synchronous>, transform_indices = @transform_14, window_bounds = array<i64: 1, 384>}, {pipeline_mode = #tpu.pipeline_mode<synchronous>, transform_indices = @transform_15, window_bounds = array<i64: 384, 896>}, {pipeline_mode = #tpu.pipeline_mode<synchronous>, transform_indices = @transform_16, window_bounds = array<i64: 1, 896>}, {transform_indices = @transform_17, window_bounds = array<i64: 16, 896>}, {transform_indices = @transform_18, window_bounds = array<i64: 16, 128>}]} {
    %c0 = arith.constant 0 : index
    %c0_0 = arith.constant 0 : index
    %0 = vector.load %arg1[%c0, %c0_0] : memref<16x896xf32, #tpu.memory_space<vmem>>, vector<16x896xf32>
    %1 = arith.truncf %0 : vector<16x896xf32> to vector<16x896xbf16>
    %c0_1 = arith.constant 0 : index
    %c0_2 = arith.constant 0 : index
    %2 = vector.load %arg2[%c0_1, %c0_2] : memref<896x384xbf16, #tpu.memory_space<vmem>>, vector<896x384xbf16>
    %cst = arith.constant dense<0.000000e+00> : vector<16x384xf32>
    %3 = tpu.matmul %1, %2, %cst {dimension_numbers = #tpu.dot_dimension_numbers<[1], [0], [0], [1], [0, 0, 1, 1], [], []>} : vector<16x896xbf16>, vector<896x384xbf16>, vector<16x384xf32> -> vector<16x384xf32>
    %c0_3 = arith.constant 0 : index
    %c0_4 = arith.constant 0 : index
    %4 = vector.load %arg9[%c0_3, %c0_4] : memref<1x384xf32, #tpu.memory_space<vmem>>, vector<1x384xf32>
    %5 = vector.broadcast %4 : vector<1x384xf32> to vector<16x384xf32>
    %6 = arith.addf %3, %5 : vector<16x384xf32>
    %cst_5 = arith.constant 0.000000e+00 : f32
    %7 = vector.broadcast %cst_5 : f32 to vector<16x384xf32>
    %8 = arith.cmpf ogt, %6, %7 : vector<16x384xf32>
    %cst_6 = arith.constant 2.000000e-01 : f32
    %9 = vector.broadcast %cst_6 : f32 to vector<16x384xf32>
    %10 = arith.mulf %9, %6 : vector<16x384xf32>
    %11 = arith.select %8, %6, %10 : vector<16x384xi1>, vector<16x384xf32>
    %12 = arith.truncf %11 : vector<16x384xf32> to vector<16x384xbf16>
    %c0_7 = arith.constant 0 : index
    %c0_8 = arith.constant 0 : index
    %13 = vector.load %arg3[%c0_7, %c0_8] : memref<384x256xbf16, #tpu.memory_space<vmem>>, vector<384x256xbf16>
    %cst_9 = arith.constant dense<0.000000e+00> : vector<16x256xf32>
    %14 = tpu.matmul %12, %13, %cst_9 {dimension_numbers = #tpu.dot_dimension_numbers<[1], [0], [0], [1], [0, 0, 1, 1], [], []>} : vector<16x384xbf16>, vector<384x256xbf16>, vector<16x256xf32> -> vector<16x256xf32>
    %c0_10 = arith.constant 0 : index
    %c0_11 = arith.constant 0 : index
    %15 = vector.load %arg10[%c0_10, %c0_11] : memref<1x256xf32, #tpu.memory_space<vmem>>, vector<1x256xf32>
    %16 = vector.broadcast %15 : vector<1x256xf32> to vector<16x256xf32>
    %17 = arith.addf %14, %16 : vector<16x256xf32>
    %cst_12 = arith.constant 0.000000e+00 : f32
    %18 = vector.broadcast %cst_12 : f32 to vector<16x256xf32>
    %19 = arith.cmpf ogt, %17, %18 : vector<16x256xf32>
    %cst_13 = arith.constant 2.000000e-01 : f32
    %20 = vector.broadcast %cst_13 : f32 to vector<16x256xf32>
    %21 = arith.mulf %20, %17 : vector<16x256xf32>
    %22 = arith.select %19, %17, %21 : vector<16x256xi1>, vector<16x256xf32>
    %23 = arith.truncf %22 : vector<16x256xf32> to vector<16x256xbf16>
    %c0_14 = arith.constant 0 : index
    %c0_15 = arith.constant 0 : index
    %24 = vector.load %arg4[%c0_14, %c0_15] : memref<256x128xbf16, #tpu.memory_space<vmem>>, vector<256x128xbf16>
    %cst_16 = arith.constant dense<0.000000e+00> : vector<16x128xf32>
    %25 = tpu.matmul %23, %24, %cst_16 {dimension_numbers = #tpu.dot_dimension_numbers<[1], [0], [0], [1], [0, 0, 1, 1], [], []>} : vector<16x256xbf16>, vector<256x128xbf16>, vector<16x128xf32> -> vector<16x128xf32>
    %c0_17 = arith.constant 0 : index
    %c0_18 = arith.constant 0 : index
    %26 = vector.load %arg11[%c0_17, %c0_18] : memref<1x128xf32, #tpu.memory_space<vmem>>, vector<1x128xf32>
    %27 = vector.broadcast %26 : vector<1x128xf32> to vector<16x128xf32>
    %28 = arith.addf %25, %27 : vector<16x128xf32>
    %cst_19 = arith.constant 0.000000e+00 : f32
    %29 = vector.broadcast %cst_19 : f32 to vector<16x128xf32>
    %30 = arith.cmpf ogt, %28, %29 : vector<16x128xf32>
    %cst_20 = arith.constant 2.000000e-01 : f32
    %31 = vector.broadcast %cst_20 : f32 to vector<16x128xf32>
    %32 = arith.mulf %31, %28 : vector<16x128xf32>
    %33 = arith.select %30, %28, %32 : vector<16x128xi1>, vector<16x128xf32>
    %34 = arith.truncf %33 : vector<16x128xf32> to vector<16x128xbf16>
    %c0_21 = arith.constant 0 : index
    %c0_22 = arith.constant 0 : index
    %35 = vector.load %arg5[%c0_21, %c0_22] : memref<128x128xbf16, #tpu.memory_space<vmem>>, vector<128x128xbf16>
    %cst_23 = arith.constant dense<0.000000e+00> : vector<16x128xf32>
    %36 = tpu.matmul %34, %35, %cst_23 {dimension_numbers = #tpu.dot_dimension_numbers<[1], [0], [0], [1], [0, 0, 1, 1], [], []>} : vector<16x128xbf16>, vector<128x128xbf16>, vector<16x128xf32> -> vector<16x128xf32>
    %c0_24 = arith.constant 0 : index
    %c0_25 = arith.constant 0 : index
    %37 = vector.load %arg12[%c0_24, %c0_25] : memref<1x128xf32, #tpu.memory_space<vmem>>, vector<1x128xf32>
    %38 = vector.broadcast %37 : vector<1x128xf32> to vector<16x128xf32>
    %39 = arith.addf %36, %38 : vector<16x128xf32>
    %cst_26 = arith.constant 0.000000e+00 : f32
    %40 = vector.broadcast %cst_26 : f32 to vector<16x128xf32>
    %41 = arith.cmpf ogt, %39, %40 : vector<16x128xf32>
    %cst_27 = arith.constant 2.000000e-01 : f32
    %42 = vector.broadcast %cst_27 : f32 to vector<16x128xf32>
    %43 = arith.mulf %42, %39 : vector<16x128xf32>
    %44 = arith.select %41, %39, %43 : vector<16x128xi1>, vector<16x128xf32>
    %c0_28 = arith.constant 0 : index
    %c0_29 = arith.constant 0 : index
    %45 = vector.load %arg19[%c0_28, %c0_29] : memref<16x128xf32, #tpu.memory_space<vmem>>, vector<16x128xf32>
    tpu.vector_store %arg19[%c0_28, %c0_29], %44 {strides = array<i32>} : memref<16x128xf32, #tpu.memory_space<vmem>>, vector<16x128xf32>,
    %46 = arith.truncf %44 : vector<16x128xf32> to vector<16x128xbf16>
    %c0_30 = arith.constant 0 : index
    %c0_31 = arith.constant 0 : index
    %47 = vector.load %arg6[%c0_30, %c0_31] : memref<128x128xbf16, #tpu.memory_space<vmem>>, vector<128x128xbf16>
    %cst_32 = arith.constant dense<0.000000e+00> : vector<16x128xf32>
    %48 = tpu.matmul %46, %47, %cst_32 {dimension_numbers = #tpu.dot_dimension_numbers<[1], [0], [0], [1], [0, 0, 1, 1], [], []>} : vector<16x128xbf16>, vector<128x128xbf16>, vector<16x128xf32> -> vector<16x128xf32>
    %c0_33 = arith.constant 0 : index
    %c0_34 = arith.constant 0 : index
    %49 = vector.load %arg13[%c0_33, %c0_34] : memref<1x128xf32, #tpu.memory_space<vmem>>, vector<1x128xf32>
    %50 = vector.broadcast %49 : vector<1x128xf32> to vector<16x128xf32>
    %51 = arith.addf %48, %50 : vector<16x128xf32>
    %cst_35 = arith.constant 0.000000e+00 : f32
    %52 = vector.broadcast %cst_35 : f32 to vector<16x128xf32>
    %53 = arith.cmpf ogt, %51, %52 : vector<16x128xf32>
    %cst_36 = arith.constant 2.000000e-01 : f32
    %54 = vector.broadcast %cst_36 : f32 to vector<16x128xf32>
    %55 = arith.mulf %54, %51 : vector<16x128xf32>
    %56 = arith.select %53, %51, %55 : vector<16x128xi1>, vector<16x128xf32>
    %57 = arith.truncf %56 : vector<16x128xf32> to vector<16x128xbf16>
    %c0_37 = arith.constant 0 : index
    %c0_38 = arith.constant 0 : index
    %58 = vector.load %arg7[%c0_37, %c0_38] : memref<128x256xbf16, #tpu.memory_space<vmem>>, vector<128x256xbf16>
    %cst_39 = arith.constant dense<0.000000e+00> : vector<16x256xf32>
    %59 = tpu.matmul %57, %58, %cst_39 {dimension_numbers = #tpu.dot_dimension_numbers<[1], [0], [0], [1], [0, 0, 1, 1], [], []>} : vector<16x128xbf16>, vector<128x256xbf16>, vector<16x256xf32> -> vector<16x256xf32>
    %c0_40 = arith.constant 0 : index
    %c0_41 = arith.constant 0 : index
    %60 = vector.load %arg14[%c0_40, %c0_41] : memref<1x256xf32, #tpu.memory_space<vmem>>, vector<1x256xf32>
    %61 = vector.broadcast %60 : vector<1x256xf32> to vector<16x256xf32>
    %62 = arith.addf %59, %61 : vector<16x256xf32>
    %cst_42 = arith.constant 0.000000e+00 : f32
    %63 = vector.broadcast %cst_42 : f32 to vector<16x256xf32>
    %64 = arith.cmpf ogt, %62, %63 : vector<16x256xf32>
    %cst_43 = arith.constant 2.000000e-01 : f32
    %65 = vector.broadcast %cst_43 : f32 to vector<16x256xf32>
    %66 = arith.mulf %65, %62 : vector<16x256xf32>
    %67 = arith.select %64, %62, %66 : vector<16x256xi1>, vector<16x256xf32>
    %68 = arith.truncf %67 : vector<16x256xf32> to vector<16x256xbf16>
    %c0_44 = arith.constant 0 : index
    %c0_45 = arith.constant 0 : index
    %69 = vector.load %arg8[%c0_44, %c0_45] : memref<256x384xbf16, #tpu.memory_space<vmem>>, vector<256x384xbf16>
    %cst_46 = arith.constant dense<0.000000e+00> : vector<16x384xf32>
    %70 = tpu.matmul %68, %69, %cst_46 {dimension_numbers = #tpu.dot_dimension_numbers<[1], [0], [0], [1], [0, 0, 1, 1], [], []>} : vector<16x256xbf16>, vector<256x384xbf16>, vector<16x384xf32> -> vector<16x384xf32>
    %c0_47 = arith.constant 0 : index
    %c0_48 = arith.constant 0 : index
    %71 = vector.load %arg15[%c0_47, %c0_48] : memref<1x384xf32, #tpu.memory_space<vmem>>, vector<1x384xf32>
    %72 = vector.broadcast %71 : vector<1x384xf32> to vector<16x384xf32>
    %73 = arith.addf %70, %72 : vector<16x384xf32>
    %cst_49 = arith.constant 0.000000e+00 : f32
    %74 = vector.broadcast %cst_49 : f32 to vector<16x384xf32>
    %75 = arith.cmpf ogt, %73, %74 : vector<16x384xf32>
    %cst_50 = arith.constant 2.000000e-01 : f32
    %76 = vector.broadcast %cst_50 : f32 to vector<16x384xf32>
    %77 = arith.mulf %76, %73 : vector<16x384xf32>
    %78 = arith.select %75, %73, %77 : vector<16x384xi1>, vector<16x384xf32>
    %79 = arith.truncf %78 : vector<16x384xf32> to vector<16x384xbf16>
    %c0_51 = arith.constant 0 : index
    %c0_52 = arith.constant 0 : index
    %80 = vector.load %arg16[%c0_51, %c0_52] : memref<384x896xbf16, #tpu.memory_space<vmem>>, vector<384x896xbf16>
    %cst_53 = arith.constant dense<0.000000e+00> : vector<16x896xf32>
    %81 = tpu.matmul %79, %80, %cst_53 {dimension_numbers = #tpu.dot_dimension_numbers<[1], [0], [0], [1], [0, 0, 1, 1], [], []>} : vector<16x384xbf16>, vector<384x896xbf16>, vector<16x896xf32> -> vector<16x896xf32>
    %c0_54 = arith.constant 0 : index
    %c0_55 = arith.constant 0 : index
    %82 = vector.load %arg17[%c0_54, %c0_55] : memref<1x896xf32, #tpu.memory_space<vmem>>, vector<1x896xf32>
    %83 = vector.broadcast %82 : vector<1x896xf32> to vector<16x896xf32>
    %84 = arith.addf %81, %83 : vector<16x896xf32>
    %85 = arith.negf %84 : vector<16x896xf32>
    %86 = math.exp %85 : vector<16x896xf32>
    %cst_56 = arith.constant 1.000000e+00 : f32
    %87 = vector.broadcast %cst_56 : f32 to vector<16x896xf32>
    %88 = arith.addf %87, %86 : vector<16x896xf32>
    %89 = arith.divf %87, %88 : vector<16x896xf32>
    %c0_57 = arith.constant 0 : index
    %c0_58 = arith.constant 0 : index
    %90 = vector.load %arg18[%c0_57, %c0_58] : memref<16x896xf32, #tpu.memory_space<vmem>>, vector<16x896xf32>
    tpu.vector_store %arg18[%c0_57, %c0_58], %89 {strides = array<i32>} : memref<16x896xf32, #tpu.memory_space<vmem>>, vector<16x896xf32>,
    return
  }
  func.func @transform_0(%arg0: i32) -> (i32, i32) {
    %c0_i32 = arith.constant 0 : i32
    %c0_i32_0 = arith.constant 0 : i32
    return %arg0, %c0_i32 : i32, i32
  }
  func.func @transform_1(%arg0: i32) -> (i32, i32) {
    %c0_i32 = arith.constant 0 : i32
    %c0_i32_0 = arith.constant 0 : i32
    %c0_i32_1 = arith.constant 0 : i32
    return %c0_i32, %c0_i32_0 : i32, i32
  }
  func.func @transform_2(%arg0: i32) -> (i32, i32) {
    %c0_i32 = arith.constant 0 : i32
    %c0_i32_0 = arith.constant 0 : i32
    %c0_i32_1 = arith.constant 0 : i32
    return %c0_i32, %c0_i32_0 : i32, i32
  }
  func.func @transform_3(%arg0: i32) -> (i32, i32) {
    %c0_i32 = arith.constant 0 : i32
    %c0_i32_0 = arith.constant 0 : i32
    %c0_i32_1 = arith.constant 0 : i32
    return %c0_i32, %c0_i32_0 : i32, i32
  }
  func.func @transform_4(%arg0: i32) -> (i32, i32) {
    %c0_i32 = arith.constant 0 : i32
    %c0_i32_0 = arith.constant 0 : i32
    %c0_i32_1 = arith.constant 0 : i32
    return %c0_i32, %c0_i32_0 : i32, i32
  }
  func.func @transform_5(%arg0: i32) -> (i32, i32) {
    %c0_i32 = arith.constant 0 : i32
    %c0_i32_0 = arith.constant 0 : i32
    %c0_i32_1 = arith.constant 0 : i32
    return %c0_i32, %c0_i32_0 : i32, i32
  }
  func.func @transform_6(%arg0: i32) -> (i32, i32) {
    %c0_i32 = arith.constant 0 : i32
    %c0_i32_0 = arith.constant 0 : i32
    %c0_i32_1 = arith.constant 0 : i32
    return %c0_i32, %c0_i32_0 : i32, i32
  }
  func.func @transform_7(%arg0: i32) -> (i32, i32) {
    %c0_i32 = arith.constant 0 : i32
    %c0_i32_0 = arith.constant 0 : i32
    %c0_i32_1 = arith.constant 0 : i32
    return %c0_i32, %c0_i32_0 : i32, i32
  }
  func.func @transform_8(%arg0: i32) -> (i32, i32) {
    %c0_i32 = arith.constant 0 : i32
    %c0_i32_0 = arith.constant 0 : i32
    %c0_i32_1 = arith.constant 0 : i32
    return %c0_i32, %c0_i32_0 : i32, i32
  }
  func.func @transform_9(%arg0: i32) -> (i32, i32) {
    %c0_i32 = arith.constant 0 : i32
    %c0_i32_0 = arith.constant 0 : i32
    %c0_i32_1 = arith.constant 0 : i32
    return %c0_i32, %c0_i32_0 : i32, i32
  }
  func.func @transform_10(%arg0: i32) -> (i32, i32) {
    %c0_i32 = arith.constant 0 : i32
    %c0_i32_0 = arith.constant 0 : i32
    %c0_i32_1 = arith.constant 0 : i32
    return %c0_i32, %c0_i32_0 : i32, i32
  }
  func.func @transform_11(%arg0: i32) -> (i32, i32) {
    %c0_i32 = arith.constant 0 : i32
    %c0_i32_0 = arith.constant 0 : i32
    %c0_i32_1 = arith.constant 0 : i32
    return %c0_i32, %c0_i32_0 : i32, i32
  }
  func.func @transform_12(%arg0: i32) -> (i32, i32) {
    %c0_i32 = arith.constant 0 : i32
    %c0_i32_0 = arith.constant 0 : i32
    %c0_i32_1 = arith.constant 0 : i32
    return %c0_i32, %c0_i32_0 : i32, i32
  }
  func.func @transform_13(%arg0: i32) -> (i32, i32) {
    %c0_i32 = arith.constant 0 : i32
    %c0_i32_0 = arith.constant 0 : i32
    %c0_i32_1 = arith.constant 0 : i32
    return %c0_i32, %c0_i32_0 : i32, i32
  }
  func.func @transform_14(%arg0: i32) -> (i32, i32) {
    %c0_i32 = arith.constant 0 : i32
    %c0_i32_0 = arith.constant 0 : i32
    %c0_i32_1 = arith.constant 0 : i32
    return %c0_i32, %c0_i32_0 : i32, i32
  }
  func.func @transform_15(%arg0: i32) -> (i32, i32) {
    %c0_i32 = arith.constant 0 : i32
    %c0_i32_0 = arith.constant 0 : i32
    %c0_i32_1 = arith.constant 0 : i32
    return %c0_i32, %c0_i32_0 : i32, i32
  }
  func.func @transform_16(%arg0: i32) -> (i32, i32) {
    %c0_i32 = arith.constant 0 : i32
    %c0_i32_0 = arith.constant 0 : i32
    %c0_i32_1 = arith.constant 0 : i32
    return %c0_i32, %c0_i32_0 : i32, i32
  }
  func.func @transform_17(%arg0: i32) -> (i32, i32) {
    %c0_i32 = arith.constant 0 : i32
    %c0_i32_0 = arith.constant 0 : i32
    return %arg0, %c0_i32 : i32, i32
  }
  func.func @transform_18(%arg0: i32) -> (i32, i32) {
    %c0_i32 = arith.constant 0 : i32
    %c0_i32_0 = arith.constant 0 : i32
    return %arg0, %c0_i32 : i32, i32
  }
}

</mosaic_0001>

<bundles_post_ra>
// kernel: tpu_custom_call.1
= control target key start
LH: loop header
LB: loop body
LE: loop exit
PB: predicated region body
PF: predicated region fallthrough
CT: control target
= control target key end

     0   :  { %s7924_s0 = inlined_call_operand.hbm [shape: f32[16,896], index: 0, kind: input, shape index: {}]   ;;  %s7925_s1 = inlined_call_operand.hbm [shape: bf16[896,384], index: 1, kind: input, shape index: {}]   ;;  %s7926_s2 = inlined_call_operand.hbm [shape: bf16[384,256], index: 2, kind: input, shape index: {}]   ;;  %s7927_s3 = inlined_call_operand.hbm [shape: bf16[256,128], index: 3, kind: input, shape index: {}]   ;;  %s7928_s4 = inlined_call_operand.hbm [shape: bf16[128,128], index: 4, kind: input, shape index: {}]   ;;  %s7929_s5 = inlined_call_operand.hbm [shape: bf16[128,128], index: 5, kind: input, shape index: {}]   ;;  %s7930_s6 = inlined_call_operand.hbm [shape: bf16[128,256], index: 6, kind: input, shape index: {}]   ;;  %s7931_s7 = inlined_call_operand.hbm [shape: bf16[256,384], index: 7, kind: input, shape index: {}]   ;;  %s7932_s8 = inlined_call_operand.vmem [shape: f32[1,384], index: 8, kind: input, shape index: {}]   ;;  %s7933_s9 = inlined_call_operand.hbm [shape: f32[1,256], index: 9, kind: input, shape index: {}]   ;;  %s7934_s10 = inlined_call_operand.vmem [shape: f32[1,128], index: 10, kind: input, shape index: {}]   ;;  %s7935_s11 = inlined_call_operand.hbm [shape: f32[1,128], index: 11, kind: input, shape index: {}]   ;;  %s7936_s12 = inlined_call_operand.hbm [shape: f32[1,128], index: 12, kind: input, shape index: {}]   ;;  %s7937_s13 = inlined_call_operand.hbm [shape: f32[1,256], index: 13, kind: input, shape index: {}]   ;;  %s7938_s14 = inlined_call_operand.vmem [shape: f32[1,384], index: 14, kind: input, shape index: {}]   ;;  %s7939_s15 = inlined_call_operand.hbm [shape: bf16[384,896], index: 15, kind: input, shape index: {}]   ;;  %s7940_s16 = inlined_call_operand.vmem [shape: f32[1,896], index: 16, kind: input, shape index: {}]   ;;  %s7941_s17 = inlined_call_operand.hbm [shape: f32[16,896], index: 17, kind: output, shape index: {0}]   ;;  %s7942_s18 = inlined_call_operand.hbm [shape: f32[16,128], index: 18, kind: output, shape index: {1}]  }
   0x1   :  { %7945 = sst [smem:[#allocation35_spill]] %s7924_s0 }
   0x2   :  { %7946 = sst [smem:[#allocation36_spill]] %s7925_s1 }
   0x3   :  { %7947 = sst [smem:[#allocation37_spill]] %s7926_s2 }
   0x4   :  { %24 = vsyncpa [#allocation3], 0 }
   0x5   :  { %25 = vsyncpa [#allocation6], 0 }
   0x6   :  { %26 = vsyncpa [#allocation9], 0 }
   0x7   :  { %27 = vsyncpa [#allocation12], 0 }
   0x8   :  { %28 = vsyncpa [#allocation15], 0 }
   0x9   :  { %29 = vsyncpa [#allocation18], 0 }
   0xa   :  { %30 = vsyncpa [#allocation21], 0 }
   0xb   :  { %31 = vsyncpa [#allocation4], 0  ;;  %s7948_s29 = sld [smem:[#allocation36_spill]] }
  0x11   :  { %s50_s30 = sshll.u32 %s7948_s29, 4  ;;  %s51_s30 = int_to_ptr.hbm [resolvable:$true] %s50_s30 }
  0x12   :  { %32 = vsyncpa [#allocation25], 0  ;;  %s7599_s0 = smov [#allocation5]   ;;  %s76_s21 = sshll.u32 %s7927_s3, 4  ;;  %s77_s21 = int_to_ptr.hbm [resolvable:$true] %s76_s21 }
  0x13   :  { %s52_s19 = sshll.u32 %s7599_s0, 4  ;;  %s7600_s22 = smov 192   ;;  %s53_s19 = int_to_ptr.vmem [resolvable:$true] %s52_s19 }
  0x14   :  { %s7601_s2 = smov 12   ;;  %s7602_s23 = smov [#allocation8]  }
  0x15   :  { %58 = dma.hbm_to_vmem [thread:$0]  %s51_s30, 21504, %s53_s19, [#allocation6], %s7600_s22, %s7600_s22, %s7601_s2  }
  0x16   :  { %s78_s24 = sshll.u32 %s7602_s23, 4  ;;  %s7943_s25 = smov 64   ;;  %s79_s24 = int_to_ptr.vmem [resolvable:$true] %s78_s24 }
  0x17   :  { %s7944_s26 = smov 4   ;;  %s102_s29 = sshll.u32 %s7929_s5, 4  ;;  %s103_s29 = int_to_ptr.hbm [resolvable:$true] %s102_s29 }
  0x18   :  { %84 = dma.hbm_to_vmem [thread:$0]  %s77_s21, 2048, %s79_s24, [#allocation9], %s7943_s25, %s7943_s25, %s7944_s26  }
  0x19   :  { %s7605_s0 = smov [#allocation11]   ;;  %s128_s19 = sshll.u32 %s7931_s7, 4  ;;  %s129_s19 = int_to_ptr.hbm [resolvable:$true] %s128_s19 }
  0x1a   :  { %s104_s3 = sshll.u32 %s7605_s0, 4  ;;  %s7606_s20 = smov [#allocation14]   ;;  %s105_s3 = int_to_ptr.vmem [resolvable:$true] %s104_s3 }
  0x1b   :  { %110 = dma.hbm_to_vmem [thread:$0]  %s103_s29, 1024, %s105_s3, [#allocation12], %s7943_s25, %s7943_s25, %s7944_s26  }
  0x1c   :  { %s130_s23 = sshll.u32 %s7606_s20, 4  ;;  %s157_s27 = sshll.u32 %s7935_s11, 4  ;;  %s131_s23 = int_to_ptr.vmem [resolvable:$true] %s130_s23  ;;  %s158_s27 = int_to_ptr.hbm [resolvable:$true] %s157_s27 }
  0x1d   :  { %136 = dma.hbm_to_vmem [thread:$0]  %s129_s19, 6144, %s131_s23, [#allocation15], %s7600_s22, %s7600_s22, %s7601_s2  }
  0x1e   :  { %s179_s0 = sshll.u32 %s7937_s13, 4  ;;  %s7607_s1 = smov [#allocation17]   ;;  %s180_s0 = int_to_ptr.hbm [resolvable:$true] %s179_s0 }
  0x1f   :  { %s159_s7 = sshll.u32 %s7607_s1, 4  ;;  %s7608_s29 = smov [#allocation20]   ;;  %s160_s7 = int_to_ptr.vmem [resolvable:$true] %s159_s7 }
  0x20   :  { %162 = dma.hbm_to_vmem [thread:$0]  %s158_s27, 16, %s160_s7, [#allocation18]  }
  0x21   :  { %s181_s3 = sshll.u32 %s7608_s29, 4  ;;  %s7949_s25 = sld [smem:[#allocation35_spill]]  ;;  %s182_s3 = int_to_ptr.vmem [resolvable:$true] %s181_s3 }
  0x22   :  { %184 = dma.hbm_to_vmem [thread:$0]  %s180_s0, 32, %s182_s3, [#allocation21]  }
  0x23   :  { %s7609_s11 = smov [#allocation2]   ;;  %s7950_s13 = sld [smem:[#allocation37_spill]] }
  0x24   :  { %s39_s22 = sshll.u32 %s7609_s11, 4  ;;  %s7610_s21 = smov 896   ;;  %s40_s22 = int_to_ptr.vmem [resolvable:$true] %s39_s22 }
  0x25   :  { %s7611_s24 = smov 56   ;;  %s7612_s27 = smov [#allocation7]  }
  0x26   :  { %s65_s5 = sshll.u32 %s7612_s27, 4  ;;  %s7614_s28 = smov 8   ;;  %s66_s5 = int_to_ptr.vmem [resolvable:$true] %s65_s5 }
  0x27   :  { %s37_s26 = sshll.u32 %s7949_s25, 4  ;;  %s7613_s25 = smov 128   ;;  %s38_s26 = int_to_ptr.hbm [resolvable:$true] %s37_s26 }
  0x28   :  { %45 = dma.hbm_to_vmem [thread:$0]  %s38_s26, 1792, %s40_s22, [#allocation3], %s7610_s21, %s7610_s21, %s7611_s24  }
  0x29   :  { %s63_s23 = sshll.u32 %s7950_s13, 4  ;;  %s89_s7 = sshll.u32 %s7928_s4, 4  ;;  %s64_s23 = int_to_ptr.hbm [resolvable:$true] %s63_s23  ;;  %s90_s7 = int_to_ptr.hbm [resolvable:$true] %s89_s7 }
  0x2a   :  { %71 = dma.hbm_to_vmem [thread:$0]  %s64_s23, 6144, %s66_s5, [#allocation6], %s7613_s25, %s7613_s25, %s7614_s28  }
  0x2b   :  { %s7615_s29 = smov [#allocation10]   ;;  %s115_s20 = sshll.u32 %s7930_s6, 4  ;;  %s116_s20 = int_to_ptr.hbm [resolvable:$true] %s115_s20 }
  0x2c   :  { %s91_s3 = sshll.u32 %s7615_s29, 4  ;;  %s7951_s11 = smov 4   ;;  %s92_s3 = int_to_ptr.vmem [resolvable:$true] %s91_s3 }
  0x2d   :  { %s7952_s22 = smov 64   ;;  %s7616_s2 = smov [#allocation13]  }
  0x2e   :  { %97 = dma.hbm_to_vmem [thread:$0]  %s90_s7, 1024, %s92_s3, [#allocation9], %s7952_s22, %s7952_s22, %s7951_s11  }
  0x2f   :  { %s117_s19 = sshll.u32 %s7616_s2, 4  ;;  %s144_s27 = sshll.u32 %s7933_s9, 4  ;;  %s118_s19 = int_to_ptr.vmem [resolvable:$true] %s117_s19  ;;  %s145_s27 = int_to_ptr.hbm [resolvable:$true] %s144_s27 }
  0x30   :  { %123 = dma.hbm_to_vmem [thread:$0]  %s116_s20, 2048, %s118_s19, [#allocation12], %s7613_s25, %s7613_s25, %s7614_s28  }
  0x31   :  { %s168_s6 = sshll.u32 %s7936_s12, 4  ;;  %s7617_s0 = smov [#allocation16]   ;;  %s169_s6 = int_to_ptr.hbm [resolvable:$true] %s168_s6 }
  0x32   :  { %s146_s1 = sshll.u32 %s7617_s0, 4  ;;  %s7618_s7 = smov [#allocation19]   ;;  %s147_s1 = int_to_ptr.vmem [resolvable:$true] %s146_s1 }
  0x33   :  { %149 = dma.hbm_to_vmem [thread:$0]  %s145_s27, 32, %s147_s1, [#allocation15]  }
  0x34   :  { %s170_s29 = sshll.u32 %s7618_s7, 4  ;;  %s191_s9 = sshll.u32 %s7939_s15, 4  ;;  %s171_s29 = int_to_ptr.vmem [resolvable:$true] %s170_s29  ;;  %s192_s9 = int_to_ptr.hbm [resolvable:$true] %s191_s9 }
  0x35   :  { %173 = dma.hbm_to_vmem [thread:$0]  %s169_s6, 16, %s171_s29, [#allocation18]  }
  0x36   :  { %s7619_s26 = smov [#allocation22]   ;;  %s7620_s11 = smov 448  }
  0x37   :  { %s193_s20 = sshll.u32 %s7619_s26, 4  ;;  %s7621_s22 = smov 28   ;;  %s194_s20 = int_to_ptr.vmem [resolvable:$true] %s193_s20 }
  0x38   :  { %199 = dma.hbm_to_vmem [thread:$0]  %s192_s9, 21504, %s194_s20, [#allocation21], %s7620_s11, %s7620_s11, %s7621_s22  }
  0x39   :  { %7581 = dma.done.wait [#allocation3], 1792  }
  0x3a   :  { %7582 = vsyncadd [#allocation3], 4294965504 }
  0x3b   :  { %7583 = dma.done.wait [#allocation6], 27648  }
  0x3c   :  { %7584 = vsyncadd [#allocation6], 4294939648 }
  0x3d   :  { %7585 = dma.done.wait [#allocation9], 3072  }
  0x3e   :  { %7586 = vsyncadd [#allocation9], 4294964224 }
  0x3f   :  { %7587 = dma.done.wait [#allocation12], 3072  }
  0x40   :  { %7588 = vsyncadd [#allocation12], 4294964224 }
  0x41   :  { %7589 = dma.done.wait [#allocation15], 6176  }
  0x42   :  { %7590 = vsyncadd [#allocation15], 4294961120 }
  0x43   :  { %7591 = dma.done.wait [#allocation18], 32  }
  0x44   :  { %7592 = vsyncadd [#allocation18], 4294967264 }
  0x45   :  { %7593 = dma.done.wait [#allocation21], 21536  }
  0x46   :  { %7594 = vsyncadd [#allocation21], 4294945760  ;;  %v4809_v0 = vld [vmem:[#allocation5 + $0xa8] sm:$0xf]  ;;  %v6679_v1 = vld [vmem:[#allocation5 + $0xb0] sm:$0xf0] }
  0x47   :  { %v5001_v2 = vld [vmem:[#allocation5 + $0x228] sm:$0xf]  ;;  %v4810_v3 = vor.u32 %v6679_v1, %v4809_v0  ;;  %v6727_v4 = vld [vmem:[#allocation5 + $0x230] sm:$0xf0]  ;;  %v4797_v9 = vld [vmem:[#allocation5 + $0x90] sm:$0xf] }
  0x48   :  { %v4905_v5 = vld [vmem:[#allocation5 + $0x168] sm:$0xf]  ;;  %v6703_v6 = vld [vmem:[#allocation5 + $0x170] sm:$0xf0]  ;;  %v5002_v7 = vor.u32 %v6727_v4, %v5001_v2  ;;  %v6676_v10 = vld [vmem:[#allocation5 + $0x98] sm:$0xf0] }
  0x49   :  { %v4906_v8 = vor.u32 %v6703_v6, %v4905_v5  ;;  %v4989_v11 = vld [vmem:[#allocation5 + $0x210] sm:$0xf]  ;;  %1403 = vmatpush.bf16.msra.mxu0 %v4810_v3  ;;  %v4798_v12 = vor.u32 %v6676_v10, %v4797_v9  ;;  %v6724_v13 = vld [vmem:[#allocation5 + $0x218] sm:$0xf0]  ;;  %v5097_v14 = vld [vmem:[#allocation5 + $0x2e8] sm:$0xf] }
  0x4a   :  { %v6751_v15 = vld [vmem:[#allocation5 + $0x2f0] sm:$0xf0]  ;;  %1431 = vmatpush.bf16.msra.mxu2 %v5002_v7  ;;  %v4990_v16 = vor.u32 %v6724_v13, %v4989_v11  ;;  %v4893_v18 = vld [vmem:[#allocation5 + $0x150] sm:$0xf]  ;;  %v6700_v19 = vld [vmem:[#allocation5 + $0x158] sm:$0xf0] }
  0x4b   :  { %1417 = vmatpush.bf16.msra.mxu1 %v4906_v8  ;;  %v5098_v17 = vor.u32 %v6751_v15, %v5097_v14  ;;  %v4785_v20 = vld [vmem:[#allocation5 + $0x78] sm:$0xf]  ;;  %v4894_v21 = vor.u32 %v6700_v19, %v4893_v18  ;;  %v6673_v22 = vld [vmem:[#allocation5 + $0x80] sm:$0xf0]  ;;  %v5085_v25 = vld [vmem:[#allocation5 + $0x2d0] sm:$0xf] }
  0x4c   :  { %v4977_v23 = vld [vmem:[#allocation5 + $0x1f8] sm:$0xf]  ;;  %v6721_v24 = vld [vmem:[#allocation5 + $0x200] sm:$0xf0]  ;;  %v6748_v26 = vld [vmem:[#allocation5 + $0x2d8] sm:$0xf0]  ;;  %v4786_v28 = vor.u32 %v6673_v22, %v4785_v20 }
  0x4d   :  { %1445 = vmatpush.bf16.msra.mxu3 %v5098_v17  ;;  %v4881_v27 = vld [vmem:[#allocation5 + $0x138] sm:$0xf]  ;;  %1404 = vmatpush.bf16.msra.mxu0 %v4798_v12  ;;  %v5086_v29 = vor.u32 %v6748_v26, %v5085_v25  ;;  %v6697_v30 = vld [vmem:[#allocation5 + $0x140] sm:$0xf0]  ;;  %v4773_v31 = vld [vmem:[#allocation5 + $0x60] sm:$0xf]  ;;  %v4978_v33 = vor.u32 %v6721_v24, %v4977_v23 }
  0x4e   :  { %v6670_v32 = vld [vmem:[#allocation5 + $0x68] sm:$0xf0]  ;;  %1432 = vmatpush.bf16.msra.mxu2 %v4990_v16  ;;  %v4882_v34 = vor.u32 %v6697_v30, %v4881_v27  ;;  %v4965_v35 = vld [vmem:[#allocation5 + $0x1e0] sm:$0xf]  ;;  %v5073_v37 = vld [vmem:[#allocation5 + $0x2b8] sm:$0xf] }
  0x4f   :  { %1418 = vmatpush.bf16.msra.mxu1 %v4894_v21  ;;  %v6718_v36 = vld [vmem:[#allocation5 + $0x1e8] sm:$0xf0]  ;;  %v6745_v38 = vld [vmem:[#allocation5 + $0x2c0] sm:$0xf0]  ;;  %v4869_v39 = vld [vmem:[#allocation5 + $0x120] sm:$0xf]  ;;  %v4774_v42 = vor.u32 %v6670_v32, %v4773_v31 }
  0x50   :  { %v6694_v40 = vld [vmem:[#allocation5 + $0x128] sm:$0xf0]  ;;  %v5074_v41 = vor.u32 %v6745_v38, %v5073_v37  ;;  %v5061_v43 = vld [vmem:[#allocation5 + $0x2a0] sm:$0xf]  ;;  %v4966_v45 = vor.u32 %v6718_v36, %v4965_v35  ;;  %v4761_v47 = vld [vmem:[#allocation5 + $0x48] sm:$0xf] }
  0x51   :  { %1446 = vmatpush.bf16.msra.mxu3 %v5086_v29  ;;  %1405 = vmatpush.bf16.msra.mxu0 %v4786_v28  ;;  %v6742_v44 = vld [vmem:[#allocation5 + $0x2a8] sm:$0xf0]  ;;  %v4870_v46 = vor.u32 %v6694_v40, %v4869_v39  ;;  %v6667_v48 = vld [vmem:[#allocation5 + $0x50] sm:$0xf0]  ;;  %v4953_v49 = vld [vmem:[#allocation5 + $0x1c8] sm:$0xf] }
  0x52   :  { %1433 = vmatpush.bf16.msra.mxu2 %v4978_v33  ;;  %v6715_v50 = vld [vmem:[#allocation5 + $0x1d0] sm:$0xf0]  ;;  %v4857_v51 = vld [vmem:[#allocation5 + $0x108] sm:$0xf]  ;;  %v5062_v53 = vor.u32 %v6742_v44, %v5061_v43  ;;  %v4762_v54 = vor.u32 %v6667_v48, %v4761_v47  ;;  %v4749_v59 = vld [vmem:[#allocation5 + $0x30] sm:$0xf] }
  0x53   :  { %1419 = vmatpush.bf16.msra.mxu1 %v4882_v34  ;;  %v6691_v52 = vld [vmem:[#allocation5 + $0x110] sm:$0xf0]  ;;  %v5049_v55 = vld [vmem:[#allocation5 + $0x288] sm:$0xf]  ;;  %v4954_v57 = vor.u32 %v6715_v50, %v4953_v49  ;;  %v6664_v60 = vld [vmem:[#allocation5 + $0x38] sm:$0xf0] }
  0x54   :  { %v6739_v56 = vld [vmem:[#allocation5 + $0x290] sm:$0xf0]  ;;  %v4858_v58 = vor.u32 %v6691_v52, %v4857_v51  ;;  %v4941_v61 = vld [vmem:[#allocation5 + $0x1b0] sm:$0xf]  ;;  %v6712_v62 = vld [vmem:[#allocation5 + $0x1b8] sm:$0xf0]  ;;  %v4750_v2 = vor.u32 %v6664_v60, %v4749_v59 }
  0x55   :  { %1447 = vmatpush.bf16.msra.mxu3 %v5074_v41  ;;  %1406 = vmatpush.bf16.msra.mxu0 %v4774_v42  ;;  %v4845_v63 = vld [vmem:[#allocation5 + $0xf0] sm:$0xf]  ;;  %v6688_v0 = vld [vmem:[#allocation5 + $0xf8] sm:$0xf0]  ;;  %v5050_v1 = vor.u32 %v6739_v56, %v5049_v55  ;;  %v4942_v5 = vor.u32 %v6712_v62, %v4941_v61  ;;  %v4737_v7 = vld [vmem:[#allocation5 + $0x18] sm:$0xf] }
  0x56   :  { %1434 = vmatpush.bf16.msra.mxu2 %v4966_v45  ;;  %v5037_v3 = vld [vmem:[#allocation5 + $0x270] sm:$0xf]  ;;  %v6736_v4 = vld [vmem:[#allocation5 + $0x278] sm:$0xf0]  ;;  %v4846_v6 = vor.u32 %v6688_v0, %v4845_v63  ;;  %v6661_v8 = vld [vmem:[#allocation5 + $0x20] sm:$0xf0] }
  0x57   :  { %1420 = vmatpush.bf16.msra.mxu1 %v4870_v46  ;;  %v4929_v9 = vld [vmem:[#allocation5 + $0x198] sm:$0xf]  ;;  %v6709_v10 = vld [vmem:[#allocation5 + $0x1a0] sm:$0xf0]  ;;  %v5038_v13 = vor.u32 %v6736_v4, %v5037_v3  ;;  %v4725_v14 = vld [vmem:[#allocation5] sm:$0xf]  ;;  %v4738_v15 = vor.u32 %v6661_v8, %v4737_v7 }
  0x58   :  { %v4833_v11 = vld [vmem:[#allocation5 + $0xd8] sm:$0xf]  ;;  %v6685_v12 = vld [vmem:[#allocation5 + $0xe0] sm:$0xf0]  ;;  %v6658_v16 = vld [vmem:[#allocation5 + $0x8] sm:$0xf0]  ;;  %v4930_v19 = vor.u32 %v6709_v10, %v4929_v9 }
  0x59   :  { %1448 = vmatpush.bf16.msra.mxu3 %v5062_v53  ;;  %1407 = vmatpush.bf16.msra.mxu0 %v4762_v54  ;;  %v5025_v17 = vld [vmem:[#allocation5 + $0x258] sm:$0xf]  ;;  %v6733_v18 = vld [vmem:[#allocation5 + $0x260] sm:$0xf0]  ;;  %v4834_v20 = vor.u32 %v6685_v12, %v4833_v11  ;;  %v4917_v21 = vld [vmem:[#allocation5 + $0x180] sm:$0xf]  ;;  %v4726_v31 = vor.u32 %v6658_v16, %v4725_v14 }
  0x5a   :  { %1435 = vmatpush.bf16.msra.mxu2 %v4954_v57  ;;  %v6706_v22 = vld [vmem:[#allocation5 + $0x188] sm:$0xf0]  ;;  %v5193_v23 = vld [vmem:[#allocation5 + $0x3a8] sm:$0xf]  ;;  %v6775_v24 = vld [vmem:[#allocation5 + $0x3b0] sm:$0xf0]  ;;  %v5026_v27 = vor.u32 %v6733_v18, %v5025_v17 }
  0x5b   :  { %1421 = vmatpush.bf16.msra.mxu1 %v4858_v58  ;;  %v5385_v25 = vld [vmem:[#allocation5 + $0x528] sm:$0xf]  ;;  %v6823_v26 = vld [vmem:[#allocation5 + $0x530] sm:$0xf0]  ;;  %v4821_v28 = vld [vmem:[#allocation5 + $0xc0] sm:$0xf]  ;;  %v4918_v35 = vor.u32 %v6706_v22, %v4917_v21  ;;  %v5194_v36 = vor.u32 %v6775_v24, %v5193_v23 }
  0x5c   :  { %v6682_v29 = vld [vmem:[#allocation5 + $0xc8] sm:$0xf0]  ;;  %v5289_v30 = vld [vmem:[#allocation5 + $0x468] sm:$0xf]  ;;  %v6799_v32 = vld [vmem:[#allocation5 + $0x470] sm:$0xf0]  ;;  %v5386_v39 = vor.u32 %v6823_v26, %v5385_v25 }
  0x5d   :  { %1449 = vmatpush.bf16.msra.mxu3 %v5050_v1  ;;  %1408 = vmatpush.bf16.msra.mxu0 %v4750_v2  ;;  %v5013_v33 = vld [vmem:[#allocation5 + $0x240] sm:$0xf]  ;;  %v6730_v34 = vld [vmem:[#allocation5 + $0x248] sm:$0xf0]  ;;  %v4811_v38 = vld [vmem:[#allocation5 + $0xb4] sm:$0xf0]  ;;  %v4822_v40 = vor.u32 %v6682_v29, %v4821_v28  ;;  %v5290_v44 = vor.u32 %v6799_v32, %v5289_v30 }
  0x5e   :  { %1436 = vmatpush.bf16.msra.mxu2 %v4942_v5  ;;  %v6678_v37 = vld [vmem:[#allocation5 + $0xac] sm:$0xf]  ;;  %v5181_v41 = vld [vmem:[#allocation5 + $0x390] sm:$0xf]  ;;  %v6772_v42 = vld [vmem:[#allocation5 + $0x398] sm:$0xf0]  ;;  %v5014_v45 = vor.u32 %v6730_v34, %v5013_v33 }
  0x5f   :  { %1422 = vmatpush.bf16.msra.mxu1 %v4846_v6  ;;  %v5373_v43 = vld [vmem:[#allocation5 + $0x510] sm:$0xf]  ;;  %v6820_v46 = vld [vmem:[#allocation5 + $0x518] sm:$0xf0]  ;;  %v4814_v49 = vor.u32 %v6678_v37, %v4811_v38  ;;  %v6675_v50 = vld [vmem:[#allocation5 + $0x94] sm:$0xf]  ;;  %v5182_v53 = vor.u32 %v6772_v42, %v5181_v41 }
  0x60   :  { %v5277_v47 = vld [vmem:[#allocation5 + $0x450] sm:$0xf]  ;;  %v6796_v48 = vld [vmem:[#allocation5 + $0x458] sm:$0xf0]  ;;  %v261_v52 = vld [vmem:[#allocation2 + $0x38] sm:$0xff]  ;;  %v5374_v58 = vor.u32 %v6820_v46, %v5373_v43  ;;  %s4699_s5 = sshll.u32 %s7942_s18, 4  ;;  %s4700_s5 = int_to_ptr.hbm [resolvable:$true] %s4699_s5 }
  0x61   :  { %1450 = vmatpush.bf16.msra.mxu3 %v5038_v13  ;;  %1409 = vmatpush.bf16.msra.mxu0 %v4738_v15  ;;  %v254_v51 = vld [vmem:[#allocation2] sm:$0xff]  ;;  %v4799_v54 = vld [vmem:[#allocation5 + $0x9c] sm:$0xf0]  ;;  %v263_v57 = vld [vmem:[#allocation2 + $0x48] sm:$0xff]  ;;  %v5278_v63 = vor.u32 %v6796_v48, %v5277_v47  ;;  %s7623_s18 = smov [#allocation23]   ;;  %s4686_s0 = sshll.u32 %s7941_s17, 4  ;;  %s4687_s0 = int_to_ptr.hbm [resolvable:$true] %s4686_s0 }
  0x62   :  { %1437 = vmatpush.bf16.msra.mxu2 %v4930_v19  ;;  %v7776_v55 = vpack.c.bf16 %v261_v52, %v254_v51  ;;  %v256_v56 = vld [vmem:[#allocation2 + $0x10] sm:$0xff]  ;;  %v5169_v59 = vld [vmem:[#allocation5 + $0x378] sm:$0xf]  ;;  %v262_v2 = vld [vmem:[#allocation2 + $0x40] sm:$0xff]  ;;  %v4802_v3 = vor.u32 %v6675_v50, %v4799_v54 }
  0x63   :  { %1423 = vmatpush.bf16.msra.mxu1 %v4834_v20  ;;  %v6769_v60 = vld [vmem:[#allocation5 + $0x380] sm:$0xf0]  ;;  %v5361_v61 = vld [vmem:[#allocation5 + $0x4f8] sm:$0xf]  ;;  %v7778_v62 = vpack.c.bf16 %v263_v57, %v256_v56  ;;  %v5157_v8 = vld [vmem:[#allocation5 + $0x360] sm:$0xf] }
  0x64   :  { %v6817_v0 = vld [vmem:[#allocation5 + $0x500] sm:$0xf0]  ;;  %v255_v1 = vld [vmem:[#allocation2 + $0x8] sm:$0xff]  ;;  %v5170_v7 = vor.u32 %v6769_v60, %v5169_v59  ;;  %v4787_v10 = vld [vmem:[#allocation5 + $0x84] sm:$0xf0] }
  0x65   :  { %1451 = vmatpush.bf16.msra.mxu3 %v5026_v27  ;;  %1410 = vmatpush.bf16.msra.mxu0 %v4726_v31  ;;  %v5265_v4 = vld [vmem:[#allocation5 + $0x438] sm:$0xf]  ;;  %v6793_v5 = vld [vmem:[#allocation5 + $0x440] sm:$0xf0]  ;;  %v7781_v6 = vpack.c.bf16 %v262_v2, %v255_v1  ;;  %v6672_v9 = vld [vmem:[#allocation5 + $0x7c] sm:$0xf]  ;;  %v5362_v11 = vor.u32 %v6817_v0, %v5361_v61 }
  0x66   :  { %1438 = vmatpush.bf16.msra.mxu2 %v4918_v35  ;;  %v6766_v12 = vld [vmem:[#allocation5 + $0x368] sm:$0xf0]  ;;  %v264_v14 = vld [vmem:[#allocation2 + $0x50] sm:$0xff]  ;;  %v5266_v15 = vor.u32 %v6793_v5, %v5265_v4  ;;  %v4790_v19 = vor.u32 %v6672_v9, %v4787_v10  ;;  %v4775_v24 = vld [vmem:[#allocation5 + $0x6c] sm:$0xf0] }
  0x67   :  { %1424 = vmatpush.bf16.msra.mxu1 %v4822_v40  ;;  %v257_v13 = vld [vmem:[#allocation2 + $0x18] sm:$0xff]  ;;  %v5349_v16 = vld [vmem:[#allocation5 + $0x4e0] sm:$0xf]  ;;  %v5158_v22 = vor.u32 %v6766_v12, %v5157_v8  ;;  %v6669_v23 = vld [vmem:[#allocation5 + $0x64] sm:$0xf] }
  0x68   :  { %1411 = vmatmul.bf16.vlgmr.msra.gmra.mxu0 %v7776_v55  ;;  %v6814_v17 = vld [vmem:[#allocation5 + $0x4e8] sm:$0xf0]  ;;  %v7785_v18 = vpack.c.bf16 %v264_v14, %v257_v13  ;;  %v5253_v20 = vld [vmem:[#allocation5 + $0x420] sm:$0xf]  ;;  %v5145_v26 = vld [vmem:[#allocation5 + $0x348] sm:$0xf]  ;;  %v4778_v31 = vor.u32 %v6669_v23, %v4775_v24 }
  0x69   :  { %1459 = vmatpush.bf16.msrb.mxu0 %v5194_v36  ;;  %1452 = vmatpush.bf16.msra.mxu3 %v5014_v45  ;;  %v6790_v21 = vld [vmem:[#allocation5 + $0x428] sm:$0xf0]  ;;  %v5350_v25 = vor.u32 %v6814_v17, %v5349_v16  ;;  %v6763_v27 = vld [vmem:[#allocation5 + $0x350] sm:$0xf0]  ;;  %v5337_v29 = vld [vmem:[#allocation5 + $0x4c8] sm:$0xf] }
  0x6a   :  { %1487 = vmatpush.bf16.msrb.mxu2 %v5386_v39  ;;  %1425 = vmatmul.bf16.vlgmr.msra.gmra.mxu1 %v7781_v6  ;;  %v5254_v28 = vor.u32 %v6790_v21, %v5253_v20  ;;  %v6811_v30 = vld [vmem:[#allocation5 + $0x4d0] sm:$0xf0]  ;;  %v5241_v32 = vld [vmem:[#allocation5 + $0x408] sm:$0xf]  ;;  %v5146_v34 = vor.u32 %v6763_v27, %v5145_v26  ;;  %v6666_v35 = vld [vmem:[#allocation5 + $0x4c] sm:$0xf] }
  0x6b   :  { %1473 = vmatpush.bf16.msrb.mxu1 %v5290_v44  ;;  %1439 = vmatmul.bf16.vlgmr.msra.gmra.mxu2 %v7778_v62  ;;  %v6787_v33 = vld [vmem:[#allocation5 + $0x410] sm:$0xf0]  ;;  %v4763_v36 = vld [vmem:[#allocation5 + $0x54] sm:$0xf0]  ;;  %v5338_v37 = vor.u32 %v6811_v30, %v5337_v29  ;;  %v5133_v38 = vld [vmem:[#allocation5 + $0x330] sm:$0xf] }
  0x6c   :  { %1453 = vmatmul.bf16.vlgmr.msra.gmra.mxu3 %v7785_v18  ;;  %v6760_v39 = vld [vmem:[#allocation5 + $0x338] sm:$0xf0]  ;;  %v5242_v40 = vor.u32 %v6787_v33, %v5241_v32  ;;  %v5325_v41 = vld [vmem:[#allocation5 + $0x4b0] sm:$0xf]  ;;  %v4766_v43 = vor.u32 %v6666_v35, %v4763_v36  ;;  %v6663_v47 = vld [vmem:[#allocation5 + $0x34] sm:$0xf] }
  0x6d   :  { %1501 = vmatpush.bf16.msrb.mxu3 %v4814_v49  ;;  %1460 = vmatpush.bf16.msrb.mxu0 %v5182_v53  ;;  %v6808_v42 = vld [vmem:[#allocation5 + $0x4b8] sm:$0xf0]  ;;  %v5229_v44 = vld [vmem:[#allocation5 + $0x3f0] sm:$0xf]  ;;  %v5134_v46 = vor.u32 %v6760_v39, %v5133_v38  ;;  %v4751_v48 = vld [vmem:[#allocation5 + $0x3c] sm:$0xf0] }
  0x6e   :  { %1488 = vmatpush.bf16.msrb.mxu2 %v5374_v58  ;;  %v6784_v45 = vld [vmem:[#allocation5 + $0x3f8] sm:$0xf0]  ;;  %v5326_v49 = vor.u32 %v6808_v42, %v5325_v41  ;;  %v5121_v50 = vld [vmem:[#allocation5 + $0x318] sm:$0xf]  ;;  %v6757_v51 = vld [vmem:[#allocation5 + $0x320] sm:$0xf0]  ;;  %v4754_v57 = vor.u32 %v6663_v47, %v4751_v48 }
  0x6f   :  { %1474 = vmatpush.bf16.msrb.mxu1 %v5278_v63  ;;  %v5230_v52 = vor.u32 %v6784_v45, %v5229_v44  ;;  %v5313_v53 = vld [vmem:[#allocation5 + $0x498] sm:$0xf]  ;;  %v6805_v54 = vld [vmem:[#allocation5 + $0x4a0] sm:$0xf0]  ;;  %v5109_v59 = vld [vmem:[#allocation5 + $0x300] sm:$0xf]  ;;  %v5122_v61 = vor.u32 %v6757_v51, %v5121_v50 }
  0x70   :  { %v5217_v56 = vld [vmem:[#allocation5 + $0x3d8] sm:$0xf]  ;;  %v6781_v58 = vld [vmem:[#allocation5 + $0x3e0] sm:$0xf0]  ;;  %v6754_v60 = vld [vmem:[#allocation5 + $0x308] sm:$0xf0] }
  0x71   :  { %1502 = vmatpush.bf16.msrb.mxu3 %v4802_v3  ;;  %1461 = vmatpush.bf16.msrb.mxu0 %v5170_v7  ;;  %v5301_v63 = vld [vmem:[#allocation5 + $0x480] sm:$0xf]  ;;  %v6802_v0 = vld [vmem:[#allocation5 + $0x488] sm:$0xf0]  ;;  %v6660_v1 = vld [vmem:[#allocation5 + $0x1c] sm:$0xf]  ;;  %v5314_v3 = vor.u32 %v6805_v54, %v5313_v53  ;;  %v5218_v8 = vor.u32 %v6781_v58, %v5217_v56  ;;  %v5110_v17 = vor.u32 %v6754_v60, %v5109_v59 }
  0x72   :  { %1489 = vmatpush.bf16.msrb.mxu2 %v5362_v11  ;;  %v4739_v2 = vld [vmem:[#allocation5 + $0x24] sm:$0xf0]  ;;  %v6702_v4 = vld [vmem:[#allocation5 + $0x16c] sm:$0xf]  ;;  %v4907_v5 = vld [vmem:[#allocation5 + $0x174] sm:$0xf0] }
  0x73   :  { %1475 = vmatpush.bf16.msrb.mxu1 %v5266_v15  ;;  %v5205_v7 = vld [vmem:[#allocation5 + $0x3c0] sm:$0xf]  ;;  %v6778_v9 = vld [vmem:[#allocation5 + $0x3c8] sm:$0xf0]  ;;  %v258_v10 = vld [vmem:[#allocation2 + $0x20] sm:$0xff]  ;;  %v4742_v12 = vor.u32 %v6660_v1, %v4739_v2  ;;  %v4910_v23 = vor.u32 %v6702_v4, %v4907_v5 }
  0x74   :  { %v265_v11 = vld [vmem:[#allocation2 + $0x58] sm:$0xff]  ;;  %v260_v13 = vld [vmem:[#allocation2 + $0x30] sm:$0xff]  ;;  %v267_v14 = vld [vmem:[#allocation2 + $0x68] sm:$0xff]  ;;  %v5206_v27 = vor.u32 %v6778_v9, %v5205_v7 }
  0x75   :  { %1503 = vmatpush.bf16.msrb.mxu3 %v4790_v19  ;;  %1462 = vmatpush.bf16.msrb.mxu0 %v5158_v22  ;;  %v6750_v15 = vld [vmem:[#allocation5 + $0x2ec] sm:$0xf]  ;;  %v5099_v16 = vld [vmem:[#allocation5 + $0x2f4] sm:$0xf0]  ;;  %v5302_v22 = vor.u32 %v6802_v0, %v5301_v63  ;;  %v266_v24 = vld [vmem:[#allocation2 + $0x60] sm:$0xff]  ;;  %v7788_v32 = vpack.c.bf16 %v265_v11, %v258_v10 }
  0x76   :  { %1490 = vmatpush.bf16.msrb.mxu2 %v5350_v25  ;;  %v6726_v19 = vld [vmem:[#allocation5 + $0x22c] sm:$0xf]  ;;  %v5003_v20 = vld [vmem:[#allocation5 + $0x234] sm:$0xf0]  ;;  %v6657_v25 = vld [vmem:[#allocation5 + $0x4] sm:$0xf] }
  0x77   :  { %1476 = vmatpush.bf16.msrb.mxu1 %v5254_v28  ;;  %v259_v21 = vld [vmem:[#allocation2 + $0x28] sm:$0xff]  ;;  %v4727_v26 = vld [vmem:[#allocation5 + $0xc] sm:$0xf0]  ;;  %v5102_v28 = vor.u32 %v6750_v15, %v5099_v16  ;;  %v6699_v29 = vld [vmem:[#allocation5 + $0x154] sm:$0xf]  ;;  %v5006_v33 = vor.u32 %v6726_v19, %v5003_v20 }
  0x78   :  { %v4895_v30 = vld [vmem:[#allocation5 + $0x15c] sm:$0xf0]  ;;  %v6747_v35 = vld [vmem:[#allocation5 + $0x2d4] sm:$0xf]  ;;  %v4730_v38 = vor.u32 %v6657_v25, %v4727_v26  ;;  %v7792_v41 = vpack.c.bf16 %v266_v24, %v259_v21  ;;  %v6696_v45 = vld [vmem:[#allocation5 + $0x13c] sm:$0xf] }
  0x79   :  { %1504 = vmatpush.bf16.msrb.mxu3 %v4778_v31  ;;  %1463 = vmatpush.bf16.msrb.mxu0 %v5146_v34  ;;  %v6774_v31 = vld [vmem:[#allocation5 + $0x3ac] sm:$0xf]  ;;  %v5195_v34 = vld [vmem:[#allocation5 + $0x3b4] sm:$0xf0]  ;;  %v5087_v36 = vld [vmem:[#allocation5 + $0x2dc] sm:$0xf0]  ;;  %v4898_v42 = vor.u32 %v6699_v29, %v4895_v30 }
  0x7a   :  { %1491 = vmatpush.bf16.msrb.mxu2 %v5338_v37  ;;  %v7790_v37 = vpack.c.bf16 %v267_v14, %v260_v13  ;;  %v6723_v39 = vld [vmem:[#allocation5 + $0x214] sm:$0xf]  ;;  %v5090_v44 = vor.u32 %v6747_v35, %v5087_v36  ;;  %v6744_v50 = vld [vmem:[#allocation5 + $0x2bc] sm:$0xf]  ;;  %v5075_v51 = vld [vmem:[#allocation5 + $0x2c4] sm:$0xf0] }
  0x7b   :  { %1477 = vmatpush.bf16.msrb.mxu1 %v5242_v40  ;;  %v4991_v40 = vld [vmem:[#allocation5 + $0x21c] sm:$0xf0]  ;;  %v6771_v47 = vld [vmem:[#allocation5 + $0x394] sm:$0xf]  ;;  %v4979_v53 = vld [vmem:[#allocation5 + $0x204] sm:$0xf0] }
  0x7c   :  { %v4994_v48 = vor.u32 %v6723_v39, %v4991_v40  ;;  %v6693_v58 = vld [vmem:[#allocation5 + $0x124] sm:$0xf]  ;;  %v4871_v59 = vld [vmem:[#allocation5 + $0x12c] sm:$0xf0]  ;;  %v6768_v60 = vld [vmem:[#allocation5 + $0x37c] sm:$0xf] }
  0x7d   :  { %1505 = vmatpush.bf16.msrb.mxu3 %v4766_v43  ;;  %1464 = vmatpush.bf16.msrb.mxu0 %v5134_v46  ;;  %v5198_v43 = vor.u32 %v6774_v31, %v5195_v34  ;;  %v4883_v46 = vld [vmem:[#allocation5 + $0x144] sm:$0xf0]  ;;  %v6741_v0 = vld [vmem:[#allocation5 + $0x2a4] sm:$0xf]  ;;  %v5063_v1 = vld [vmem:[#allocation5 + $0x2ac] sm:$0xf0]  ;;  %v4874_v4 = vor.u32 %v6693_v58, %v4871_v59 }
  0x7e   :  { %1492 = vmatpush.bf16.msrb.mxu2 %v5326_v49  ;;  %v5183_v49 = vld [vmem:[#allocation5 + $0x39c] sm:$0xf0]  ;;  %v4886_v54 = vor.u32 %v6696_v45, %v4883_v46  ;;  %v5171_v63 = vld [vmem:[#allocation5 + $0x384] sm:$0xf0]  ;;  %v6717_v2 = vld [vmem:[#allocation5 + $0x1e4] sm:$0xf]  ;;  %v5066_v7 = vor.u32 %v6741_v0, %v5063_v1 }
  0x7f   :  { %1478 = vmatpush.bf16.msrb.mxu1 %v5230_v52  ;;  %v6720_v52 = vld [vmem:[#allocation5 + $0x1fc] sm:$0xf]  ;;  %v5186_v56 = vor.u32 %v6771_v47, %v5183_v49  ;;  %v5174_v5 = vor.u32 %v6768_v60, %v5171_v63  ;;  %v4859_v9 = vld [vmem:[#allocation5 + $0x114] sm:$0xf0]  ;;  %v6765_v10 = vld [vmem:[#allocation5 + $0x364] sm:$0xf] }
  0x80   :  { %v6738_v13 = vld [vmem:[#allocation5 + $0x28c] sm:$0xf]  ;;  %v5051_v14 = vld [vmem:[#allocation5 + $0x294] sm:$0xf0]  ;;  %v6687_v21 = vld [vmem:[#allocation5 + $0xf4] sm:$0xf] }
  0x81   :  { %1506 = vmatpush.bf16.msrb.mxu3 %v4754_v57  ;;  %1465 = vmatpush.bf16.msrb.mxu0 %v5122_v61  ;;  %v5078_v57 = vor.u32 %v6744_v50, %v5075_v51  ;;  %v4982_v61 = vor.u32 %v6720_v52, %v4979_v53  ;;  %v6714_v15 = vld [vmem:[#allocation5 + $0x1cc] sm:$0xf]  ;;  %v4955_v16 = vld [vmem:[#allocation5 + $0x1d4] sm:$0xf0]  ;;  %v5054_v20 = vor.u32 %v6738_v13, %v5051_v14  ;;  %v6735_v26 = vld [vmem:[#allocation5 + $0x274] sm:$0xf] }
  0x82   :  { %1493 = vmatpush.bf16.msrb.mxu2 %v5314_v3  ;;  %v4967_v3 = vld [vmem:[#allocation5 + $0x1ec] sm:$0xf0]  ;;  %v4958_v24 = vor.u32 %v6714_v15, %v4955_v16  ;;  %v5147_v25 = vld [vmem:[#allocation5 + $0x354] sm:$0xf0]  ;;  %v4943_v29 = vld [vmem:[#allocation5 + $0x1bc] sm:$0xf0] }
  0x83   :  { %1479 = vmatpush.bf16.msrb.mxu1 %v5218_v8  ;;  %v6690_v8 = vld [vmem:[#allocation5 + $0x10c] sm:$0xf]  ;;  %v4970_v11 = vor.u32 %v6717_v2, %v4967_v3  ;;  %v6684_v34 = vld [vmem:[#allocation5 + $0xdc] sm:$0xf]  ;;  %v4835_v35 = vld [vmem:[#allocation5 + $0xe4] sm:$0xf0] }
  0x84   :  { %v6759_v36 = vld [vmem:[#allocation5 + $0x334] sm:$0xf]  ;;  %v5135_v39 = vld [vmem:[#allocation5 + $0x33c] sm:$0xf0]  ;;  %v6732_v40 = vld [vmem:[#allocation5 + $0x25c] sm:$0xf]  ;;  %v4838_v45 = vor.u32 %v6684_v34, %v4835_v35 }
  0x85   :  { %1507 = vmatpush.bf16.msrb.mxu3 %v4742_v12  ;;  %1466 = vmatpush.bf16.msrb.mxu0 %v5110_v17  ;;  %v5159_v12 = vld [vmem:[#allocation5 + $0x36c] sm:$0xf0]  ;;  %v4862_v17 = vor.u32 %v6690_v8, %v4859_v9  ;;  %v6681_v46 = vld [vmem:[#allocation5 + $0xc4] sm:$0xf]  ;;  %v6756_v50 = vld [vmem:[#allocation5 + $0x31c] sm:$0xf] }
  0x86   :  { %1494 = vmatpush.bf16.msrb.mxu2 %v5302_v22  ;;  %v5162_v19 = vor.u32 %v6765_v10, %v5159_v12  ;;  %v4847_v22 = vld [vmem:[#allocation5 + $0xfc] sm:$0xf0]  ;;  %v4823_v47 = vld [vmem:[#allocation5 + $0xcc] sm:$0xf0]  ;;  %v5123_v51 = vld [vmem:[#allocation5 + $0x324] sm:$0xf0] }
  0x87   :  { %1480 = vmatpush.bf16.msrb.mxu1 %v5206_v27  ;;  %v5039_v27 = vld [vmem:[#allocation5 + $0x27c] sm:$0xf0]  ;;  %v4850_v30 = vor.u32 %v6687_v21, %v4847_v22  ;;  %v6798_v52 = vld [vmem:[#allocation5 + $0x46c] sm:$0xf]  ;;  %v6729_v58 = vld [vmem:[#allocation5 + $0x244] sm:$0xf]  ;;  %v5126_v2 = vor.u32 %v6756_v50, %v5123_v51 }
  0x88   :  { %1467 = vmatmul.bf16.vlgmr.msrb.gmra.mxu0 %v7788_v32  ;;  %v5015_v59 = vld [vmem:[#allocation5 + $0x24c] sm:$0xf0]  ;;  %v6822_v60 = vld [vmem:[#allocation5 + $0x52c] sm:$0xf]  ;;  %v5387_v63 = vld [vmem:[#allocation5 + $0x534] sm:$0xf0] }
  0x89   :  { %1515 = vmatpush.bf16.msra.mxu0 %v4910_v23  ;;  %1495 = vmatmul.bf16.vlgmr.msrb.gmra.mxu2 %v7790_v37  ;;  %v6762_v23 = vld [vmem:[#allocation5 + $0x34c] sm:$0xf]  ;;  %v4817_v0 = vld [vmem:[#allocation5 + $0xb0] sm:$0xf]  ;;  %v6680_v1 = vld [vmem:[#allocation5 + $0xb8] sm:$0xf0] }
  0x8a   :  { %1543 = vmatpush.bf16.msra.mxu2 %v5102_v28  ;;  %1508 = vmatpush.bf16.msrb.mxu3 %v4730_v38  ;;  %v6711_v28 = vld [vmem:[#allocation5 + $0x1b4] sm:$0xf]  ;;  %v5150_v31 = vor.u32 %v6762_v23, %v5147_v25  ;;  %v5111_v8 = vld [vmem:[#allocation5 + $0x30c] sm:$0xf0]  ;;  %v5279_v10 = vld [vmem:[#allocation5 + $0x45c] sm:$0xf0]  ;;  %v4818_v12 = vor.u32 %v6680_v1, %v4817_v0 }
  0x8b   :  { %1529 = vmatpush.bf16.msra.mxu1 %v5006_v33  ;;  %v5042_v33 = vor.u32 %v6735_v26, %v5039_v27  ;;  %v4946_v38 = vor.u32 %v6711_v28, %v4943_v29  ;;  %v6795_v9 = vld [vmem:[#allocation5 + $0x454] sm:$0xf]  ;;  %v4913_v13 = vld [vmem:[#allocation5 + $0x170] sm:$0xf]  ;;  %v6704_v14 = vld [vmem:[#allocation5 + $0x178] sm:$0xf0] }
  0x8c   :  { %1481 = vmatmul.bf16.vlgmr.msrb.gmra.mxu1 %v7792_v41  ;;  %v6819_v15 = vld [vmem:[#allocation5 + $0x514] sm:$0xf]  ;;  %v5375_v16 = vld [vmem:[#allocation5 + $0x51c] sm:$0xf0]  ;;  %v5282_v21 = vor.u32 %v6795_v9, %v5279_v10  ;;  %v4914_v22 = vor.u32 %v6704_v14, %v4913_v13  ;;  %v6792_v23 = vld [vmem:[#allocation5 + $0x43c] sm:$0xf] }
  0x8d   :  { %1516 = vmatpush.bf16.msra.mxu0 %v4898_v42  ;;  %1509 = vmatmul.bf16.vlgmr.msrb.gmra.mxu3 %v7776_v55  ;;  %v5027_v42 = vld [vmem:[#allocation5 + $0x264] sm:$0xf0]  ;;  %v5378_v25 = vor.u32 %v6819_v15, %v5375_v16  ;;  %v4901_v27 = vld [vmem:[#allocation5 + $0x158] sm:$0xf]  ;;  %v6701_v28 = vld [vmem:[#allocation5 + $0x160] sm:$0xf0] }
  0x8e   :  { %1557 = vmatpush.bf16.msra.mxu3 %v5198_v43  ;;  %1544 = vmatpush.bf16.msra.mxu2 %v5090_v44  ;;  %v6708_v43 = vld [vmem:[#allocation5 + $0x19c] sm:$0xf]  ;;  %v4931_v44 = vld [vmem:[#allocation5 + $0x1a4] sm:$0xf0]  ;;  %v5030_v49 = vor.u32 %v6732_v40, %v5027_v42  ;;  %v6789_v35 = vld [vmem:[#allocation5 + $0x424] sm:$0xf] }
  0x8f   :  { %1530 = vmatpush.bf16.msra.mxu1 %v4994_v48  ;;  %v5138_v48 = vor.u32 %v6759_v36, %v5135_v39  ;;  %v4934_v53 = vor.u32 %v6708_v43, %v4931_v44  ;;  %v6816_v29 = vld [vmem:[#allocation5 + $0x4fc] sm:$0xf]  ;;  %v4902_v36 = vor.u32 %v6701_v28, %v4901_v27  ;;  %v4889_v42 = vld [vmem:[#allocation5 + $0x140] sm:$0xf]  ;;  %v6698_v43 = vld [vmem:[#allocation5 + $0x148] sm:$0xf0] }
  0x90   :  { %v6813_v44 = vld [vmem:[#allocation5 + $0x4e4] sm:$0xf]  ;;  %v6786_v50 = vld [vmem:[#allocation5 + $0x40c] sm:$0xf]  ;;  %v5243_v51 = vld [vmem:[#allocation5 + $0x414] sm:$0xf0] }
  0x91   :  { %1517 = vmatpush.bf16.msra.mxu0 %v4886_v54  ;;  %v5291_v54 = vld [vmem:[#allocation5 + $0x474] sm:$0xf0]  ;;  %v6783_v0 = vld [vmem:[#allocation5 + $0x3f4] sm:$0xf]  ;;  %v5231_v1 = vld [vmem:[#allocation5 + $0x3fc] sm:$0xf0] }
  0x92   :  { %1558 = vmatpush.bf16.msra.mxu3 %v5186_v56  ;;  %1545 = vmatpush.bf16.msra.mxu2 %v5078_v57  ;;  %v6705_v56 = vld [vmem:[#allocation5 + $0x184] sm:$0xf]  ;;  %v4919_v57 = vld [vmem:[#allocation5 + $0x18c] sm:$0xf0]  ;;  %v5294_v3 = vor.u32 %v6798_v52, %v5291_v54  ;;  %v4877_v54 = vld [vmem:[#allocation5 + $0x128] sm:$0xf] }
  0x93   :  { %1531 = vmatpush.bf16.msra.mxu1 %v4982_v61  ;;  %v4826_v61 = vor.u32 %v6681_v46, %v4823_v47  ;;  %v4781_v46 = vld [vmem:[#allocation5 + $0x68] sm:$0xf]  ;;  %v6671_v47 = vld [vmem:[#allocation5 + $0x70] sm:$0xf0]  ;;  %v4757_v9 = vld [vmem:[#allocation5 + $0x38] sm:$0xf] }
  0x94   :  { %v6665_v10 = vld [vmem:[#allocation5 + $0x40] sm:$0xf0]  ;;  %v6780_v13 = vld [vmem:[#allocation5 + $0x3dc] sm:$0xf]  ;;  %v5219_v14 = vld [vmem:[#allocation5 + $0x3e4] sm:$0xf0] }
  0x95   :  { %1518 = vmatpush.bf16.msra.mxu0 %v4874_v4  ;;  %v6753_v4 = vld [vmem:[#allocation5 + $0x304] sm:$0xf]  ;;  %v4758_v16 = vor.u32 %v6665_v10, %v4757_v9  ;;  %v5207_v27 = vld [vmem:[#allocation5 + $0x3cc] sm:$0xf0]  ;;  %v4841_v28 = vld [vmem:[#allocation5 + $0xe0] sm:$0xf] }
  0x96   :  { %1559 = vmatpush.bf16.msra.mxu3 %v5174_v5  ;;  %1546 = vmatpush.bf16.msra.mxu2 %v5066_v7  ;;  %v4922_v5 = vor.u32 %v6705_v56, %v4919_v57  ;;  %v5018_v7 = vor.u32 %v6729_v58, %v5015_v59  ;;  %v6695_v56 = vld [vmem:[#allocation5 + $0x130] sm:$0xf0]  ;;  %v6810_v57 = vld [vmem:[#allocation5 + $0x4cc] sm:$0xf]  ;;  %v5339_v58 = vld [vmem:[#allocation5 + $0x4d4] sm:$0xf0] }
  0x97   :  { %1532 = vmatpush.bf16.msra.mxu1 %v4970_v11  ;;  %v5390_v11 = vor.u32 %v6822_v60, %v5387_v63  ;;  %v4769_v59 = vld [vmem:[#allocation5 + $0x50] sm:$0xf]  ;;  %v6668_v60 = vld [vmem:[#allocation5 + $0x58] sm:$0xf0]  ;;  %v4878_v63 = vor.u32 %v6695_v56, %v4877_v54  ;;  %v6725_v54 = vld [vmem:[#allocation5 + $0x220] sm:$0xf0] }
  0x98   :  { %v5297_v56 = vld [vmem:[#allocation5 + $0x470] sm:$0xf]  ;;  %v5177_v10 = vld [vmem:[#allocation5 + $0x380] sm:$0xf] }
  0x99   :  { %1519 = vmatpush.bf16.msra.mxu0 %v4862_v17  ;;  %v4805_v17 = vld [vmem:[#allocation5 + $0x98] sm:$0xf] }
  0x9a   :  { %1560 = vmatpush.bf16.msra.mxu3 %v5162_v19  ;;  %1547 = vmatpush.bf16.msra.mxu2 %v5054_v20  ;;  %v6677_v19 = vld [vmem:[#allocation5 + $0xa0] sm:$0xf0]  ;;  %v5114_v20 = vor.u32 %v6753_v4, %v5111_v8  ;;  %v4865_v4 = vld [vmem:[#allocation5 + $0x110] sm:$0xf]  ;;  %v5327_v8 = vld [vmem:[#allocation5 + $0x4bc] sm:$0xf0] }
  0x9b   :  { %1533 = vmatpush.bf16.msra.mxu1 %v4958_v24  ;;  %v5267_v24 = vld [vmem:[#allocation5 + $0x444] sm:$0xf0]  ;;  %v4806_v26 = vor.u32 %v6677_v19, %v4805_v17  ;;  %v4853_v17 = vld [vmem:[#allocation5 + $0xf8] sm:$0xf]  ;;  %v6689_v19 = vld [vmem:[#allocation5 + $0x100] sm:$0xf0] }
  0x9c   :  { %v5270_v34 = vor.u32 %v6792_v23, %v5267_v24  ;;  %v6662_v23 = vld [vmem:[#allocation5 + $0x28] sm:$0xf0]  ;;  %v5222_v24 = vor.u32 %v6780_v13, %v5219_v14 }
  0x9d   :  { %1520 = vmatpush.bf16.msra.mxu0 %v4850_v30  ;;  %v5363_v30 = vld [vmem:[#allocation5 + $0x504] sm:$0xf0]  ;;  %v6746_v13 = vld [vmem:[#allocation5 + $0x2c8] sm:$0xf0] }
  0x9e   :  { %1561 = vmatpush.bf16.msra.mxu3 %v5150_v31  ;;  %1548 = vmatpush.bf16.msra.mxu2 %v5042_v33  ;;  %v4793_v31 = vld [vmem:[#allocation5 + $0x80] sm:$0xf]  ;;  %v6674_v33 = vld [vmem:[#allocation5 + $0x88] sm:$0xf0]  ;;  %v5366_v39 = vor.u32 %v6816_v29, %v5363_v30 }
  0x9f   :  { %1534 = vmatpush.bf16.msra.mxu1 %v4946_v38  ;;  %v5255_v38 = vld [vmem:[#allocation5 + $0x42c] sm:$0xf0]  ;;  %v4794_v40 = vor.u32 %v6674_v33, %v4793_v31  ;;  %v6686_v29 = vld [vmem:[#allocation5 + $0xe8] sm:$0xf0] }
  0xa0   :  { %v5009_v33 = vld [vmem:[#allocation5 + $0x230] sm:$0xf] }
  0xa1   :  { %1521 = vmatpush.bf16.msra.mxu0 %v4838_v45  ;;  %v5351_v45 = vld [vmem:[#allocation5 + $0x4ec] sm:$0xf0] }
  0xa2   :  { %1562 = vmatpush.bf16.msra.mxu3 %v5138_v48  ;;  %1549 = vmatpush.bf16.msra.mxu2 %v5030_v49  ;;  %v5258_v48 = vor.u32 %v6789_v35, %v5255_v38  ;;  %v4890_v49 = vor.u32 %v6698_v43, %v4889_v42  ;;  %v5354_v52 = vor.u32 %v6813_v44, %v5351_v45  ;;  %v6801_v35 = vld [vmem:[#allocation5 + $0x484] sm:$0xf]  ;;  %v4733_v38 = vld [vmem:[#allocation5 + $0x8] sm:$0xf]  ;;  %v5201_v42 = vld [vmem:[#allocation5 + $0x3b0] sm:$0xf] }
  0xa3   :  { %1535 = vmatpush.bf16.msra.mxu1 %v4934_v53  ;;  %v4782_v53 = vor.u32 %v6671_v47, %v4781_v46  ;;  %v6776_v43 = vld [vmem:[#allocation5 + $0x3b8] sm:$0xf0]  ;;  %v4842_v44 = vor.u32 %v6686_v29, %v4841_v28  ;;  %v5105_v46 = vld [vmem:[#allocation5 + $0x2f0] sm:$0xf] }
  0xa4   :  { %v6752_v47 = vld [vmem:[#allocation5 + $0x2f8] sm:$0xf0]  ;;  %v4961_v29 = vld [vmem:[#allocation5 + $0x1d0] sm:$0xf] }
  0xa5   :  { %1522 = vmatpush.bf16.msra.mxu0 %v4826_v61  ;;  %v5246_v61 = vor.u32 %v6786_v50, %v5243_v51  ;;  %v4829_v50 = vld [vmem:[#allocation5 + $0xc8] sm:$0xf]  ;;  %v6683_v51 = vld [vmem:[#allocation5 + $0xd0] sm:$0xf0] }
  0xa6   :  { %1563 = vmatpush.bf16.msra.mxu3 %v5126_v2  ;;  %1550 = vmatpush.bf16.msra.mxu2 %v5018_v7  ;;  %v5342_v2 = vor.u32 %v6810_v57, %v5339_v58  ;;  %v6807_v7 = vld [vmem:[#allocation5 + $0x4b4] sm:$0xf]  ;;  %v6800_v57 = vld [vmem:[#allocation5 + $0x478] sm:$0xf0]  ;;  %v5106_v58 = vor.u32 %v6752_v47, %v5105_v46 }
  0xa7   :  { %1536 = vmatpush.bf16.msra.mxu1 %v4922_v5  ;;  %v6692_v5 = vld [vmem:[#allocation5 + $0x118] sm:$0xf0]  ;;  %v5330_v15 = vor.u32 %v6807_v7, %v5327_v8  ;;  %v5285_v7 = vld [vmem:[#allocation5 + $0x458] sm:$0xf]  ;;  %v6797_v8 = vld [vmem:[#allocation5 + $0x460] sm:$0xf0] }
  0xa8   :  { %1523 = vmatmul.bf16.vlgmr.msra.gmra.mxu0 %v7781_v6  ;;  %v6788_v46 = vld [vmem:[#allocation5 + $0x418] sm:$0xf0] }
  0xa9   :  { %1571 = vmatpush.bf16.msrb.mxu0 %v5294_v3  ;;  %1551 = vmatmul.bf16.vlgmr.msra.gmra.mxu2 %v7785_v18  ;;  %v4770_v3 = vor.u32 %v6668_v60, %v4769_v59  ;;  %v5189_v59 = vld [vmem:[#allocation5 + $0x398] sm:$0xf]  ;;  %v6773_v60 = vld [vmem:[#allocation5 + $0x3a0] sm:$0xf0] }
  0xaa   :  { %1599 = vmatpush.bf16.msrb.mxu2 %v4818_v12  ;;  %1564 = vmatpush.bf16.msra.mxu3 %v5114_v20  ;;  %v4866_v12 = vor.u32 %v6692_v5, %v4865_v4  ;;  %v6804_v20 = vld [vmem:[#allocation5 + $0x49c] sm:$0xf]  ;;  %v5190_v4 = vor.u32 %v6773_v60, %v5189_v59  ;;  %v6722_v5 = vld [vmem:[#allocation5 + $0x208] sm:$0xf0]  ;;  %v6785_v59 = vld [vmem:[#allocation5 + $0x400] sm:$0xf0] }
  0xab   :  { %1585 = vmatpush.bf16.msrb.mxu1 %v5390_v11  ;;  %v5234_v11 = vor.u32 %v6783_v0, %v5231_v1  ;;  %v6749_v0 = vld [vmem:[#allocation5 + $0x2e0] sm:$0xf0] }
  0xac   :  { %1537 = vmatmul.bf16.vlgmr.msra.gmra.mxu1 %v7778_v62 }
  0xad   :  { %1572 = vmatpush.bf16.msrb.mxu0 %v5282_v21  ;;  %1565 = vmatmul.bf16.vlgmr.msra.gmra.mxu3 %v7788_v32  ;;  %v5315_v21 = vld [vmem:[#allocation5 + $0x4a4] sm:$0xf0] }
  0xae   :  { %1613 = vmatpush.bf16.msrb.mxu3 %v4914_v22  ;;  %1600 = vmatpush.bf16.msrb.mxu2 %v4806_v26  ;;  %v4745_v22 = vld [vmem:[#allocation5 + $0x20] sm:$0xf]  ;;  %v4854_v26 = vor.u32 %v6689_v19, %v4853_v17  ;;  %v5318_v30 = vor.u32 %v6804_v20, %v5315_v21  ;;  %v6719_v19 = vld [vmem:[#allocation5 + $0x1f0] sm:$0xf0]  ;;  %v6794_v21 = vld [vmem:[#allocation5 + $0x448] sm:$0xf0] }
  0xaf   :  { %1586 = vmatpush.bf16.msrb.mxu1 %v5378_v25  ;;  %v6777_v25 = vld [vmem:[#allocation5 + $0x3c4] sm:$0xf]  ;;  %v4746_v31 = vor.u32 %v6662_v23, %v4745_v22  ;;  %v5273_v20 = vld [vmem:[#allocation5 + $0x440] sm:$0xf]  ;;  %v5165_v23 = vld [vmem:[#allocation5 + $0x368] sm:$0xf] }
  0xb0   :  { %v5274_v28 = vor.u32 %v6794_v21, %v5273_v20  ;;  %v5213_v20 = vld [vmem:[#allocation5 + $0x3c8] sm:$0xf] }
  0xb1   :  { %1573 = vmatpush.bf16.msrb.mxu0 %v5270_v34  ;;  %v6728_v34 = vld [vmem:[#allocation5 + $0x238] sm:$0xf0] }
  0xb2   :  { %1614 = vmatpush.bf16.msrb.mxu3 %v4902_v36  ;;  %1601 = vmatpush.bf16.msrb.mxu2 %v4794_v40  ;;  %v5303_v36 = vld [vmem:[#allocation5 + $0x48c] sm:$0xf0]  ;;  %v5210_v40 = vor.u32 %v6777_v25, %v5207_v27  ;;  %v5010_v45 = vor.u32 %v6728_v34, %v5009_v33  ;;  %v5069_v25 = vld [vmem:[#allocation5 + $0x2a8] sm:$0xf]  ;;  %v6791_v34 = vld [vmem:[#allocation5 + $0x430] sm:$0xf0] }
  0xb3   :  { %1587 = vmatpush.bf16.msrb.mxu1 %v5366_v39  ;;  %v6659_v39 = vld [vmem:[#allocation5 + $0x10] sm:$0xf0]  ;;  %v5261_v33 = vld [vmem:[#allocation5 + $0x428] sm:$0xf] }
  0xb5   :  { %1574 = vmatpush.bf16.msrb.mxu0 %v5258_v48  ;;  %v5306_v48 = vor.u32 %v6801_v35, %v5303_v36  ;;  %v5153_v36 = vld [vmem:[#allocation5 + $0x350] sm:$0xf] }
  0xb6   :  { %1615 = vmatpush.bf16.msrb.mxu3 %v4890_v49  ;;  %1602 = vmatpush.bf16.msrb.mxu2 %v4782_v53  ;;  %v4734_v49 = vor.u32 %v6659_v39, %v4733_v38  ;;  %v5202_v53 = vor.u32 %v6776_v43, %v5201_v42  ;;  %v6764_v38 = vld [vmem:[#allocation5 + $0x358] sm:$0xf0]  ;;  %v5057_v39 = vld [vmem:[#allocation5 + $0x290] sm:$0xf]  ;;  %v4949_v42 = vld [vmem:[#allocation5 + $0x1b8] sm:$0xf] }
  0xb7   :  { %1588 = vmatpush.bf16.msrb.mxu1 %v5354_v52  ;;  %v4997_v52 = vld [vmem:[#allocation5 + $0x218] sm:$0xf]  ;;  %v5154_v43 = vor.u32 %v6764_v38, %v5153_v36  ;;  %v6818_v36 = vld [vmem:[#allocation5 + $0x508] sm:$0xf0] }
  0xb8   :  { %v4998_v1 = vor.u32 %v6725_v54, %v4997_v52  ;;  %v4937_v54 = vld [vmem:[#allocation5 + $0x1a0] sm:$0xf] }
  0xb9   :  { %1575 = vmatpush.bf16.msrb.mxu0 %v5246_v61  ;;  %v4830_v61 = vor.u32 %v6683_v51, %v4829_v50  ;;  %v5045_v50 = vld [vmem:[#allocation5 + $0x278] sm:$0xf]  ;;  %v6737_v51 = vld [vmem:[#allocation5 + $0x280] sm:$0xf0] }
  0xba   :  { %1616 = vmatpush.bf16.msrb.mxu3 %v4878_v63  ;;  %1603 = vmatpush.bf16.msrb.mxu2 %v4770_v3  ;;  %v5093_v63 = vld [vmem:[#allocation5 + $0x2d8] sm:$0xf]  ;;  %v4985_v3 = vld [vmem:[#allocation5 + $0x200] sm:$0xf]  ;;  %v5046_v60 = vor.u32 %v6737_v51, %v5045_v50 }
  0xbb   :  { %1589 = vmatpush.bf16.msrb.mxu1 %v5342_v2  ;;  %v5298_v2 = vor.u32 %v6800_v57, %v5297_v56  ;;  %v5094_v9 = vor.u32 %v6749_v0, %v5093_v63  ;;  %v4986_v14 = vor.u32 %v6722_v5, %v4985_v3  ;;  %v6710_v57 = vld [vmem:[#allocation5 + $0x1a8] sm:$0xf0]  ;;  %v5033_v0 = vld [vmem:[#allocation5 + $0x260] sm:$0xf]  ;;  %v6707_v5 = vld [vmem:[#allocation5 + $0x190] sm:$0xf0] }
  0xbc   :  { %v6758_v63 = vld [vmem:[#allocation5 + $0x328] sm:$0xf0]  ;;  %v6832_v50 = vld [vmem:[#allocation7 + $0x34] sm:$0xf0] }
  0xbd   :  { %1576 = vmatpush.bf16.msrb.mxu0 %v5234_v11  ;;  %v6770_v11 = vld [vmem:[#allocation5 + $0x388] sm:$0xf0]  ;;  %v5333_v51 = vld [vmem:[#allocation5 + $0x4b8] sm:$0xf] }
  0xbe   :  { %1617 = vmatpush.bf16.msrb.mxu3 %v4866_v12  ;;  %1604 = vmatpush.bf16.msrb.mxu2 %v4758_v16  ;;  %v5081_v12 = vld [vmem:[#allocation5 + $0x2c0] sm:$0xf]  ;;  %v4973_v16 = vld [vmem:[#allocation5 + $0x1e8] sm:$0xf]  ;;  %v5178_v17 = vor.u32 %v6770_v11, %v5177_v10  ;;  %v5393_v10 = vld [vmem:[#allocation5 + $0x530] sm:$0xf] }
  0xbf   :  { %1590 = vmatpush.bf16.msrb.mxu1 %v5330_v15  ;;  %v5286_v15 = vor.u32 %v6797_v8, %v5285_v7  ;;  %v5082_v22 = vor.u32 %v6746_v13, %v5081_v12  ;;  %v4974_v27 = vor.u32 %v6719_v19, %v4973_v16  ;;  %v5225_v8 = vld [vmem:[#allocation5 + $0x3e0] sm:$0xf]  ;;  %v6824_v11 = vld [vmem:[#allocation5 + $0x538] sm:$0xf0]  ;;  %v5117_v13 = vld [vmem:[#allocation5 + $0x308] sm:$0xf] }
  0xc0   :  { %v6731_v16 = vld [vmem:[#allocation5 + $0x250] sm:$0xf0]  ;;  %v5394_v21 = vor.u32 %v6824_v11, %v5393_v10  ;;  %v5397_v10 = vld [vmem:[#allocation7] sm:$0xf]  ;;  %v6826_v11 = vld [vmem:[#allocation7 + $0x4] sm:$0xf0] }
  0xc1   :  { %1577 = vmatpush.bf16.msrb.mxu0 %v5222_v24  ;;  %v6767_v24 = vld [vmem:[#allocation5 + $0x370] sm:$0xf0] }
  0xc2   :  { %1618 = vmatpush.bf16.msrb.mxu3 %v4854_v26  ;;  %1605 = vmatpush.bf16.msrb.mxu2 %v4746_v31  ;;  %v6743_v26 = vld [vmem:[#allocation5 + $0x2b0] sm:$0xf0]  ;;  %v6716_v31 = vld [vmem:[#allocation5 + $0x1d8] sm:$0xf0] }
  0xc3   :  { %1591 = vmatpush.bf16.msrb.mxu1 %v5318_v30  ;;  %v5166_v30 = vor.u32 %v6767_v24, %v5165_v23  ;;  %v5070_v35 = vor.u32 %v6743_v26, %v5069_v25  ;;  %v6779_v23 = vld [vmem:[#allocation5 + $0x3d0] sm:$0xf0]  ;;  %v5453_v24 = vld [vmem:[#allocation7 + $0x70] sm:$0xf]  ;;  %v6840_v25 = vld [vmem:[#allocation7 + $0x74] sm:$0xf0] }
  0xc4   :  { %v5381_v26 = vld [vmem:[#allocation5 + $0x518] sm:$0xf] }
  0xc5   :  { %1578 = vmatpush.bf16.msrb.mxu0 %v5210_v40  ;;  %v4962_v40 = vor.u32 %v6716_v31, %v4961_v29  ;;  %v5454_v29 = vor.u32 %v6840_v25, %v5453_v24  ;;  %v5445_v31 = vld [vmem:[#allocation7 + $0x60] sm:$0xf] }
  0xc6   :  { %1619 = vmatpush.bf16.msrb.mxu3 %v4842_v44  ;;  %1606 = vmatpush.bf16.msrb.mxu2 %v4734_v49  ;;  %v6713_v44 = vld [vmem:[#allocation5 + $0x1c0] sm:$0xf0] }
  0xc7   :  { %1592 = vmatpush.bf16.msrb.mxu1 %v5306_v48  ;;  %v5141_v48 = vld [vmem:[#allocation5 + $0x338] sm:$0xf]  ;;  %v6761_v49 = vld [vmem:[#allocation5 + $0x340] sm:$0xf0]  ;;  %v4950_v52 = vor.u32 %v6713_v44, %v4949_v42  ;;  %v6815_v42 = vld [vmem:[#allocation5 + $0x4f0] sm:$0xf0] }
  0xc8   :  { %1579 = vmatmul.bf16.vlgmr.msrb.gmra.mxu0 %v7792_v41  ;;  %v5142_v56 = vor.u32 %v6761_v49, %v5141_v48  ;;  %v5421_v49 = vld [vmem:[#allocation7 + $0x30] sm:$0xf] }
  0xc9   :  { %1627 = vmatpush.bf16.msra.mxu0 %v5010_v45  ;;  %1607 = vmatmul.bf16.vlgmr.msrb.gmra.mxu2 %v7776_v55  ;;  %v6740_v55 = vld [vmem:[#allocation5 + $0x298] sm:$0xf0]  ;;  %v5249_v45 = vld [vmem:[#allocation5 + $0x410] sm:$0xf] }
  0xca   :  { %1655 = vmatpush.bf16.msra.mxu2 %v5202_v53  ;;  %1593 = vmatmul.bf16.vlgmr.msrb.gmra.mxu1 %v7790_v37  ;;  %v5058_v47 = vor.u32 %v6740_v55, %v5057_v39  ;;  %v5250_v53 = vor.u32 %v6788_v46, %v5249_v45  ;;  %v5437_v39 = vld [vmem:[#allocation7 + $0x50] sm:$0xf]  ;;  %v6836_v55 = vld [vmem:[#allocation7 + $0x54] sm:$0xf0]  ;;  %v6834_v45 = vld [vmem:[#allocation7 + $0x44] sm:$0xf0] }
  0xcb   :  { %1641 = vmatpush.bf16.msra.mxu1 %v5106_v58  ;;  %1620 = vmatpush.bf16.msrb.mxu3 %v4830_v61  ;;  %v5237_v58 = vld [vmem:[#allocation5 + $0x3f8] sm:$0xf]  ;;  %v5129_v61 = vld [vmem:[#allocation5 + $0x320] sm:$0xf]  ;;  %v5345_v46 = vld [vmem:[#allocation5 + $0x4d0] sm:$0xf] }
  0xcc   :  { %v5238_v3 = vor.u32 %v6785_v59, %v5237_v58  ;;  %v5130_v7 = vor.u32 %v6758_v63, %v5129_v61  ;;  %v5405_v63 = vld [vmem:[#allocation7 + $0x10] sm:$0xf] }
  0xcd   :  { %1628 = vmatpush.bf16.msra.mxu0 %v4998_v1  ;;  %v6734_v1 = vld [vmem:[#allocation5 + $0x268] sm:$0xf0] }
  0xce   :  { %1656 = vmatpush.bf16.msra.mxu2 %v5190_v4  ;;  %1621 = vmatmul.bf16.vlgmr.msrb.gmra.mxu3 %v7781_v6  ;;  %v5262_v6 = vor.u32 %v6791_v34, %v5261_v33  ;;  %v4925_v4 = vld [vmem:[#allocation5 + $0x188] sm:$0xf]  ;;  %v5034_v12 = vor.u32 %v6734_v1, %v5033_v0  ;;  %v6828_v0 = vld [vmem:[#allocation7 + $0x14] sm:$0xf0] }
  0xcf   :  { %1669 = vmatpush.bf16.msra.mxu3 %v5298_v2  ;;  %1642 = vmatpush.bf16.msra.mxu1 %v5094_v9  ;;  %v4938_v2 = vor.u32 %v6710_v57, %v4937_v54  ;;  %v6782_v9 = vld [vmem:[#allocation5 + $0x3e8] sm:$0xf0]  ;;  %v6838_v33 = vld [vmem:[#allocation7 + $0x64] sm:$0xf0] }
  0xd0   :  { %v5226_v19 = vor.u32 %v6782_v9, %v5225_v8  ;;  %v5446_v38 = vor.u32 %v6838_v33, %v5445_v31  ;;  %v6830_v54 = vld [vmem:[#allocation7 + $0x24] sm:$0xf0]  ;;  %v6806_v57 = vld [vmem:[#allocation5 + $0x4a8] sm:$0xf0] }
  0xd1   :  { %1629 = vmatpush.bf16.msra.mxu0 %v4986_v14  ;;  %v6755_v14 = vld [vmem:[#allocation5 + $0x310] sm:$0xf0] }
  0xd2   :  { %1657 = vmatpush.bf16.msra.mxu2 %v5178_v17  ;;  %v4926_v17 = vor.u32 %v6707_v5, %v4925_v4  ;;  %v6839_v4 = vld [vmem:[#allocation7 + $0x74] sm:$0xf]  ;;  %v5455_v5 = vld [vmem:[#allocation7 + $0x78] sm:$0xf0] }
  0xd3   :  { %1670 = vmatpush.bf16.msra.mxu3 %v5286_v15  ;;  %1643 = vmatpush.bf16.msra.mxu1 %v5082_v22  ;;  %v5021_v15 = vld [vmem:[#allocation5 + $0x248] sm:$0xf]  ;;  %v5118_v22 = vor.u32 %v6755_v14, %v5117_v13  ;;  %v6837_v14 = vld [vmem:[#allocation7 + $0x64] sm:$0xf] }
  0xd5   :  { %1630 = vmatpush.bf16.msra.mxu0 %v4974_v27  ;;  %v6821_v27 = vld [vmem:[#allocation5 + $0x520] sm:$0xf0] }
  0xd6   :  { %1658 = vmatpush.bf16.msra.mxu2 %v5166_v30  ;;  %v5214_v30 = vor.u32 %v6779_v23, %v5213_v20  ;;  %v5382_v34 = vor.u32 %v6821_v27, %v5381_v26  ;;  %v6833_v27 = vld [vmem:[#allocation7 + $0x44] sm:$0xf] }
  0xd7   :  { %1671 = vmatpush.bf16.msra.mxu3 %v5274_v28  ;;  %1644 = vmatpush.bf16.msra.mxu1 %v5070_v35  ;;  %v5022_v28 = vor.u32 %v6731_v16, %v5021_v15  ;;  %v5369_v35 = vld [vmem:[#allocation5 + $0x500] sm:$0xf]  ;;  %v5447_v15 = vld [vmem:[#allocation7 + $0x68] sm:$0xf0]  ;;  %v5398_v16 = vor.u32 %v6826_v11, %v5397_v10 }
  0xd8   :  { %v5450_v20 = vor.u32 %v6837_v14, %v5447_v15  ;;  %v5493_v11 = vld [vmem:[#allocation7 + $0xc0] sm:$0xf] }
  0xd9   :  { %1631 = vmatpush.bf16.msra.mxu0 %v4962_v40  ;;  %v5370_v40 = vor.u32 %v6818_v36, %v5369_v35  ;;  %v5423_v35 = vld [vmem:[#allocation7 + $0x38] sm:$0xf0] }
  0xda   :  { %1659 = vmatpush.bf16.msra.mxu2 %v5154_v43  ;;  %v5438_v43 = vor.u32 %v6836_v55, %v5437_v39  ;;  %v6829_v55 = vld [vmem:[#allocation7 + $0x24] sm:$0xf] }
  0xdb   :  { %1672 = vmatpush.bf16.msra.mxu3 %v5262_v6  ;;  %1645 = vmatpush.bf16.msra.mxu1 %v5058_v47  ;;  %v5357_v6 = vld [vmem:[#allocation5 + $0x4e8] sm:$0xf]  ;;  %v6812_v47 = vld [vmem:[#allocation5 + $0x4d8] sm:$0xf0] }
  0xdc   :  { %v5358_v44 = vor.u32 %v6815_v42, %v5357_v6  ;;  %v5346_v48 = vor.u32 %v6812_v47, %v5345_v46  ;;  %v6856_v6 = vld [vmem:[#allocation7 + $0xf4] sm:$0xf0]  ;;  %v6854_v46 = vld [vmem:[#allocation7 + $0xe4] sm:$0xf0]  ;;  %v5415_v47 = vld [vmem:[#allocation7 + $0x28] sm:$0xf0] }
  0xdd   :  { %1632 = vmatpush.bf16.msra.mxu0 %v4950_v52  ;;  %v5422_v52 = vor.u32 %v6832_v50, %v5421_v49  ;;  %v5511_v49 = vld [vmem:[#allocation7 + $0xe8] sm:$0xf0] }
  0xde   :  { %1660 = vmatpush.bf16.msra.mxu2 %v5142_v56  ;;  %v5321_v56 = vld [vmem:[#allocation5 + $0x4a0] sm:$0xf] }
  0xdf   :  { %1673 = vmatpush.bf16.msra.mxu3 %v5250_v53  ;;  %1646 = vmatpush.bf16.msra.mxu1 %v5046_v60  ;;  %v5413_v53 = vld [vmem:[#allocation7 + $0x20] sm:$0xf]  ;;  %v7813_v60 = vld [vmem:[%s7932_s8] sm:$0x7]  ;;  %v5322_v61 = vor.u32 %v6806_v57, %v5321_v56  ;;  %v6827_v56 = vld [vmem:[#allocation7 + $0x14] sm:$0xf] }
  0xe0   :  { %v5414_v58 = vor.u32 %v6830_v54, %v5413_v53  ;;  %v501_v8 = vperm.slane %v7813_v60, 0  ;;  %v5418_v53 = vor.u32 %v6829_v55, %v5415_v47  ;;  %v5407_v57 = vld [vmem:[#allocation7 + $0x18] sm:$0xf0] }
  0xe1   :  { %1633 = vmatpush.bf16.msra.mxu0 %v4938_v2  ;;  %v5309_v2 = vld [vmem:[#allocation5 + $0x488] sm:$0xf] }
  0xe2   :  { %1661 = vmatpush.bf16.msra.mxu2 %v5130_v7  ;;  %v5406_v7 = vor.u32 %v6828_v0, %v5405_v63  ;;  %v5501_v63 = vld [vmem:[#allocation7 + $0xd0] sm:$0xf]  ;;  %v6852_v0 = vld [vmem:[#allocation7 + $0xd4] sm:$0xf0] }
  0xe3   :  { %1674 = vmatpush.bf16.msra.mxu3 %v5238_v3  ;;  %1647 = vmatpush.bf16.msra.mxu1 %v5034_v12  ;;  %v6803_v3 = vld [vmem:[#allocation5 + $0x490] sm:$0xf0]  ;;  %v5458_v12 = vor.u32 %v6839_v4, %v5455_v5  ;;  %v6825_v4 = vld [vmem:[#allocation7 + $0x4] sm:$0xf]  ;;  %v5399_v5 = vld [vmem:[#allocation7 + $0x8] sm:$0xf0] }
  0xe4   :  { %v5310_v9 = vor.u32 %v6803_v3, %v5309_v2  ;;  %v5410_v3 = vor.u32 %v6827_v56, %v5407_v57 }
  0xe5   :  { %1634 = vmatpush.bf16.msra.mxu0 %v4926_v17  ;;  %v1412_v59 = vpop.f32.mrf.mxu0 }
  0xe6   :  { %1662 = vmatpush.bf16.msra.mxu2 %v5118_v22  ;;  %v1413_v17 = vadd.f32 %v1412_v59, %v501_v8  ;;  %v5439_v22 = vld [vmem:[#allocation7 + $0x58] sm:$0xf0] }
  0xe7   :  { %1675 = vmatpush.bf16.msra.mxu3 %v5226_v19  ;;  %1648 = vmatpush.bf16.msra.mxu1 %v5022_v28  ;;  %v1426_v1 = vpop.f32.mrf.mxu1  ;;  %v5431_v28 = vld [vmem:[#allocation7 + $0x48] sm:$0xf0] }
  0xe8   :  { %1635 = vmatmul.bf16.vlgmr.msra.gmra.mxu0 %v7778_v62  ;;  %v5429_v62 = vld [vmem:[#allocation7 + $0x40] sm:$0xf]  ;;  %v1427_v23 = vadd.f32 %v1426_v1, %v1413_v17  ;;  %v5434_v33 = vor.u32 %v6833_v27, %v5431_v28  ;;  %v6851_v1 = vld [vmem:[#allocation7 + $0xd4] sm:$0xf]  ;;  %v5485_v28 = vld [vmem:[#allocation7 + $0xb0] sm:$0xf] }
  0xe9   :  { %1683 = vmatpush.bf16.msrb.mxu0 %v5394_v21  ;;  %1663 = vmatmul.bf16.vlgmr.msra.gmra.mxu2 %v7788_v32  ;;  %v5430_v32 = vor.u32 %v6834_v45, %v5429_v62  ;;  %v6835_v21 = vld [vmem:[#allocation7 + $0x54] sm:$0xf]  ;;  %v5519_v62 = vld [vmem:[#allocation7 + $0xf8] sm:$0xf0]  ;;  %v5509_v45 = vld [vmem:[#allocation7 + $0xe0] sm:$0xf] }
  0xea   :  { %1649 = vmatmul.bf16.vlgmr.msra.gmra.mxu1 %v7785_v18  ;;  %v6809_v18 = vld [vmem:[#allocation5 + $0x4c0] sm:$0xf0]  ;;  %v5442_v25 = vor.u32 %v6835_v21, %v5439_v22 }
  0xeb   :  { %2012 = vmatpush.bf16.msrb.mxu1 %v5454_v29  ;;  %1676 = vmatpush.bf16.msra.mxu3 %v5214_v30 }
  0xed   :  { %1684 = vmatpush.bf16.msrb.mxu0 %v5382_v34  ;;  %v1414_v19 = vpop.f32.mrf.mxu0  ;;  %v6831_v34 = vld [vmem:[#allocation7 + $0x34] sm:$0xf] }
  0xee   :  { %1677 = vmatmul.bf16.vlgmr.msra.gmra.mxu3 %v7792_v41  ;;  %v5334_v41 = vor.u32 %v6809_v18, %v5333_v51  ;;  %v1440_v13 = vpop.f32.mrf.mxu2  ;;  %v1415_v30 = vadd.f32 %v1414_v19, %v501_v8  ;;  %v5510_v18 = vor.u32 %v6854_v46, %v5509_v45  ;;  %v5503_v8 = vld [vmem:[#allocation7 + $0xd8] sm:$0xf0]  ;;  %v502_v45 = vperm.slane %v7813_v60, 1 }
  0xef   :  { %2013 = vmatpush.bf16.msrb.mxu1 %v5446_v38  ;;  %v1428_v24 = vpop.f32.mrf.mxu1  ;;  %v1454_v26 = vpop.f32.mrf.mxu3  ;;  %v1441_v29 = vadd.f32 %v1440_v13, %v1427_v23  ;;  %v5506_v10 = vor.u32 %v6851_v1, %v5503_v8  ;;  %v6849_v13 = vld [vmem:[#allocation7 + $0xc4] sm:$0xf] }
  0xf0   :  { %v1429_v36 = vadd.f32 %v1428_v24, %v1415_v30  ;;  %v6847_v30 = vld [vmem:[#allocation7 + $0xb4] sm:$0xf] }
  0xf1   :  { %1685 = vmatpush.bf16.msrb.mxu0 %v5370_v40  ;;  %v1455_v38 = vadd.f32 %v1454_v26, %v1441_v29  ;;  %v5517_v40 = vld [vmem:[#allocation7 + $0xf0] sm:$0xf]  ;;  %v6848_v29 = vld [vmem:[#allocation7 + $0xb4] sm:$0xf0] }
  0xf3   :  { %2014 = vmatpush.bf16.msrb.mxu1 %v5438_v43  ;;  %v5426_v43 = vor.u32 %v6831_v34, %v5423_v35  ;;  %v5477_v35 = vld [vmem:[#allocation7 + $0xa0] sm:$0xf] }
  0xf5   :  { %1686 = vmatpush.bf16.msrb.mxu0 %v5358_v44  ;;  %v5518_v44 = vor.u32 %v6856_v6, %v5517_v40  ;;  %v5479_v40 = vld [vmem:[#allocation7 + $0xa8] sm:$0xf0] }
  0xf6   :  { %v1442_v31 = vpop.f32.mrf.mxu2 }
  0xf7   :  { %2015 = vmatpush.bf16.msrb.mxu1 %v5430_v32  ;;  %v1443_v50 = vadd.f32 %v1442_v31, %v1429_v36  ;;  %2026 = vmatpush.bf16.msrb.mxu2 %v5518_v44  ;;  %v5486_v31 = vor.u32 %v6848_v29, %v5485_v28  ;;  %v6846_v36 = vld [vmem:[#allocation7 + $0xa4] sm:$0xf0]  ;;  %v6869_v28 = vld [vmem:[#allocation7 + $0x164] sm:$0xf]  ;;  %v5575_v29 = vld [vmem:[#allocation7 + $0x168] sm:$0xf0] }
  0xf8   :  { %v5478_v55 = vor.u32 %v6846_v36, %v5477_v35  ;;  %v5565_v36 = vld [vmem:[#allocation7 + $0x150] sm:$0xf] }
  0xf9   :  { %1687 = vmatpush.bf16.msrb.mxu0 %v5346_v48  ;;  %v6853_v48 = vld [vmem:[#allocation7 + $0xe4] sm:$0xf] }
  0xfb   :  { %2016 = vmatpush.bf16.msrb.mxu1 %v5422_v52  ;;  %v1456_v52 = vpop.f32.mrf.mxu3  ;;  %2027 = vmatpush.bf16.msrb.mxu2 %v5510_v18  ;;  %v5463_v18 = vld [vmem:[#allocation7 + $0x88] sm:$0xf0] }
  0xfc   :  { %v1457_v59 = vadd.f32 %v1456_v52, %v1443_v50 }
  0xfd   :  { %1688 = vmatpush.bf16.msrb.mxu0 %v5334_v41  ;;  %v5514_v41 = vor.u32 %v6853_v48, %v5511_v49  ;;  %v6842_v48 = vld [vmem:[#allocation7 + $0x84] sm:$0xf0]  ;;  %v6841_v49 = vld [vmem:[#allocation7 + $0x84] sm:$0xf] }
  0xff   :  { %2017 = vmatpush.bf16.msrb.mxu1 %v5414_v58 }
 0x101   :  { %1689 = vmatpush.bf16.msrb.mxu0 %v5322_v61 }
 0x103   :  { %2018 = vmatpush.bf16.msrb.mxu1 %v5406_v7  ;;  %v5502_v7 = vor.u32 %v6852_v0, %v5501_v63 }
 0x105   :  { %1690 = vmatpush.bf16.msrb.mxu0 %v5310_v9  ;;  %v1468_v39 = vpop.f32.mrf.mxu0  ;;  %2028 = vmatpush.bf16.msrb.mxu2 %v5502_v7 }
 0x106   :  { %v1469_v51 = vadd.f32 %v1468_v39, %v1455_v38  ;;  %v6845_v38 = vld [vmem:[#allocation7 + $0xa4] sm:$0xf] }
 0x107   :  { %2019 = vmatpush.bf16.msrb.mxu1 %v5398_v16  ;;  %v5495_v16 = vld [vmem:[#allocation7 + $0xc8] sm:$0xf0]  ;;  %v5482_v6 = vor.u32 %v6845_v38, %v5479_v40  ;;  %v6868_v38 = vld [vmem:[#allocation7 + $0x154] sm:$0xf0]  ;;  %v5567_v40 = vld [vmem:[#allocation7 + $0x158] sm:$0xf0] }
 0x108   :  { %1691 = vmatmul.bf16.vlgmr.msrb.gmra.mxu0 %v7790_v37  ;;  %v6855_v37 = vld [vmem:[#allocation7 + $0xf4] sm:$0xf]  ;;  %v5498_v17 = vor.u32 %v6849_v13, %v5495_v16  ;;  %v6872_v16 = vld [vmem:[#allocation7 + $0x174] sm:$0xf0] }
 0x109   :  { %2054 = vmatpush.bf16.msra.mxu0 %v5458_v12  ;;  %v1482_v42 = vpop.f32.mrf.mxu1  ;;  %v5522_v32 = vor.u32 %v6855_v37, %v5519_v62  ;;  %v6850_v12 = vld [vmem:[#allocation7 + $0xc4] sm:$0xf0]  ;;  %v5469_v37 = vld [vmem:[#allocation7 + $0x90] sm:$0xf]  ;;  %v5471_v62 = vld [vmem:[#allocation7 + $0x98] sm:$0xf0] }
 0x10a   :  { %v1483_v58 = vadd.f32 %v1482_v42, %v1469_v51  ;;  %v5494_v15 = vor.u32 %v6850_v12, %v5493_v11  ;;  %v6844_v42 = vld [vmem:[#allocation7 + $0x94] sm:$0xf0] }
 0x10b   :  { %2068 = vmatpush.bf16.msra.mxu1 %v5522_v32  ;;  %v5470_v44 = vor.u32 %v6844_v42, %v5469_v37  ;;  %v5461_v32 = vld [vmem:[#allocation7 + $0x80] sm:$0xf]  ;;  %v6866_v37 = vld [vmem:[#allocation7 + $0x144] sm:$0xf0] }
 0x10c   :  { %v1496_v54 = vpop.f32.mrf.mxu2  ;;  %2029 = vmatpush.bf16.msrb.mxu2 %v5494_v15  ;;  %v5462_v51 = vor.u32 %v6842_v48, %v5461_v32  ;;  %v5581_v15 = vld [vmem:[#allocation7 + $0x170] sm:$0xf]  ;;  %v6863_v32 = vld [vmem:[#allocation7 + $0x134] sm:$0xf] }
 0x10d   :  { %2055 = vmatpush.bf16.msra.mxu0 %v5450_v20  ;;  %v1470_v61 = vpop.f32.mrf.mxu0  ;;  %v1497_v14 = vadd.f32 %v1496_v54, %v1483_v58  ;;  %v5402_v20 = vor.u32 %v6825_v4, %v5399_v5 }
 0x10e   :  { %v1471_v2 = vadd.f32 %v1470_v61, %v1457_v59 }
 0x10f   :  { %2069 = vmatpush.bf16.msra.mxu1 %v5514_v41  ;;  %v1703_v22 = vmul.f32 0.2, %v1497_v14  ;;  %vm1697_vm0 = vcmp.gt.f32.partialorder %v1497_v14, 0.0  ;;  %v5466_v41 = vor.u32 %v6841_v49, %v5463_v18  ;;  %v5551_v49 = vld [vmem:[#allocation7 + $0x138] sm:$0xf0] }
 0x110   :  { %2030 = vmatpush.bf16.msrb.mxu2 %v5486_v31  ;;  %v1510_v39 = vpop.f32.mrf.mxu3  ;;  %v5541_v18 = vld [vmem:[#allocation7 + $0x120] sm:$0xf] }
 0x111   :  { %2056 = vmatpush.bf16.msra.mxu0 %v5442_v25  ;;  %v1484_v9 = vpop.f32.mrf.mxu1  ;;  %v1709_v25 = vsel %vm1697_vm0, %v1497_v14, %v1703_v22  ;;  %v1511_v52 = vadd.f32 %v1510_v39, %v502_v45  ;;  %v6867_v39 = vld [vmem:[#allocation7 + $0x154] sm:$0xf] }
 0x112   :  { %v1485_v19 = vadd.f32 %v1484_v9, %v1471_v2  ;;  %v5570_v42 = vor.u32 %v6867_v39, %v5567_v40 }
 0x113   :  { %2070 = vmatpush.bf16.msra.mxu1 %v5506_v10 }
 0x114   :  { %v1498_v21 = vpop.f32.mrf.mxu2  ;;  %2031 = vmatpush.bf16.msrb.mxu2 %v5478_v55  ;;  %v5566_v55 = vor.u32 %v6868_v38, %v5565_v36 }
 0x115   :  { %2057 = vmatpush.bf16.msra.mxu0 %v5434_v33  ;;  %v1499_v23 = vadd.f32 %v1498_v21, %v1485_v19  ;;  %v5487_v33 = vld [vmem:[#allocation7 + $0xb8] sm:$0xf0] }
 0x116   :  { %v5490_v34 = vor.u32 %v6847_v30, %v5487_v33  ;;  %v5583_v21 = vld [vmem:[#allocation7 + $0x178] sm:$0xf0] }
 0x117   :  { %2071 = vmatpush.bf16.msra.mxu1 %v5498_v17  ;;  %vm1700_vm1 = vcmp.gt.f32.partialorder %v1499_v23, 0.0  ;;  %v1706_v24 = vmul.f32 0.2, %v1499_v23  ;;  %v6871_v17 = vld [vmem:[#allocation7 + $0x174] sm:$0xf] }
 0x118   :  { %2032 = vmatpush.bf16.msrb.mxu2 %v5470_v44  ;;  %v5559_v44 = vld [vmem:[#allocation7 + $0x148] sm:$0xf0] }
 0x119   :  { %2058 = vmatpush.bf16.msra.mxu0 %v5426_v43  ;;  %v1712_v26 = vsel %vm1700_vm1, %v1499_v23, %v1706_v24  ;;  %v6843_v43 = vld [vmem:[#allocation7 + $0x94] sm:$0xf]  ;;  %v5586_v24 = vor.u32 %v6871_v17, %v5583_v21 }
 0x11a   :  { %v1715_v27 = vpack.c.bf16 %v1712_v26, %v1709_v25  ;;  %v5474_v46 = vor.u32 %v6843_v43, %v5471_v62  ;;  %v5573_v26 = vld [vmem:[#allocation7 + $0x160] sm:$0xf]  ;;  %v6865_v43 = vld [vmem:[#allocation7 + $0x144] sm:$0xf] }
 0x11b   :  { %2072 = vmatpush.bf16.msra.mxu1 %v5490_v34  ;;  %v5578_v34 = vor.u32 %v6869_v28, %v5575_v29 }
 0x11c   :  { %2020 = vmatmul.bf16.vlgmr.msrb.gmra.mxu1 %v1715_v27  ;;  %2033 = vmatpush.bf16.msrb.mxu2 %v5462_v51 }
 0x11d   :  { %2059 = vmatpush.bf16.msra.mxu0 %v5418_v53  ;;  %v1512_v53 = vpop.f32.mrf.mxu3 }
 0x11e   :  { %v1513_v59 = vadd.f32 %v1512_v53, %v502_v45  ;;  %v5562_v45 = vor.u32 %v6865_v43, %v5559_v44  ;;  %v6879_v43 = vld [vmem:[#allocation8 + $0x30] sm:$0xff] }
 0x11f   :  { %2073 = vmatpush.bf16.msra.mxu1 %v5482_v6  ;;  %v5557_v6 = vld [vmem:[#allocation7 + $0x140] sm:$0xf]  ;;  %v6887_v44 = vld [vmem:[#allocation8 + $0x70] sm:$0xff] }
 0x120   :  { %2082 = vmatpush.bf16.msra.mxu2 %v5586_v24  ;;  %v5558_v62 = vor.u32 %v6866_v37, %v5557_v6  ;;  %v6880_v37 = vld [vmem:[#allocation8 + $0x38] sm:$0xff] }
 0x121   :  { %2060 = vmatpush.bf16.msra.mxu0 %v5410_v3 }
 0x123   :  { %2074 = vmatpush.bf16.msra.mxu1 %v5474_v46  ;;  %v5549_v46 = vld [vmem:[#allocation7 + $0x130] sm:$0xf] }
 0x124   :  { %2083 = vmatpush.bf16.msra.mxu2 %v5578_v34 }
 0x125   :  { %2061 = vmatpush.bf16.msra.mxu0 %v5402_v20  ;;  %v1524_v47 = vpop.f32.mrf.mxu0  ;;  %v5582_v20 = vor.u32 %v6872_v16, %v5581_v15 }
 0x126   :  { %v1525_v54 = vadd.f32 %v1524_v47, %v1511_v52  ;;  %v6864_v47 = vld [vmem:[#allocation7 + $0x134] sm:$0xf0]  ;;  %v6862_v52 = vld [vmem:[#allocation7 + $0x124] sm:$0xf0] }
 0x127   :  { %2075 = vmatpush.bf16.msra.mxu1 %v5466_v41  ;;  %2040 = vmatpush.bf16.msrb.mxu3 %v5582_v20  ;;  %v5550_v48 = vor.u32 %v6864_v47, %v5549_v46  ;;  %v6861_v41 = vld [vmem:[#allocation7 + $0x124] sm:$0xf]  ;;  %v5542_v53 = vor.u32 %v6862_v52, %v5541_v18  ;;  %v6882_v18 = vld [vmem:[#allocation8 + $0x48] sm:$0xff] }
 0x128   :  { %2062 = vmatmul.bf16.vlgmr.msra.gmra.mxu0 %v1715_v27  ;;  %v6870_v27 = vld [vmem:[#allocation7 + $0x164] sm:$0xf0]  ;;  %2084 = vmatpush.bf16.msra.mxu2 %v5570_v42  ;;  %v6888_v42 = vld [vmem:[#allocation8 + $0x78] sm:$0xff]  ;;  %v6877_v46 = vld [vmem:[#allocation8 + $0x20] sm:$0xff] }
 0x129   :  { %v1538_v50 = vpop.f32.mrf.mxu1  ;;  %v5574_v33 = vor.u32 %v6870_v27, %v5573_v26  ;;  %2256 = vmatpush.bf16.msrb.mxu0 %v6888_v42  ;;  %v6885_v47 = vld [vmem:[#allocation8 + $0x60] sm:$0xff]  ;;  %v7162_v42 = vld [vmem:[%s7934_s10] ss:$0 sm:$0xff] }
 0x12a   :  { %v1539_v58 = vadd.f32 %v1538_v50, %v1525_v54  ;;  %v5554_v50 = vor.u32 %v6863_v32, %v5551_v49  ;;  %v5543_v54 = vld [vmem:[#allocation7 + $0x128] sm:$0xf0]  ;;  %v6876_v32 = vld [vmem:[#allocation8 + $0x18] sm:$0xff]  ;;  %v6875_v49 = vld [vmem:[#allocation8 + $0x10] sm:$0xff] }
 0x12b   :  { %2041 = vmatpush.bf16.msrb.mxu3 %v5574_v33 }
 0x12c   :  { %v1552_v57 = vpop.f32.mrf.mxu2  ;;  %2085 = vmatpush.bf16.msra.mxu2 %v5562_v45  ;;  %v6886_v45 = vld [vmem:[#allocation8 + $0x68] sm:$0xff] }
 0x12d   :  { %v1526_v56 = vpop.f32.mrf.mxu0  ;;  %v1553_v1 = vadd.f32 %v1552_v57, %v1539_v58  ;;  %v5533_v58 = vld [vmem:[#allocation7 + $0x110] sm:$0xf]  ;;  %2257 = vmatpush.bf16.msrb.mxu0 %v6887_v44 }
 0x12e   :  { %v1527_v0 = vadd.f32 %v1526_v56, %v1513_v59  ;;  %v5546_v56 = vor.u32 %v6861_v41, %v5543_v54  ;;  %v6860_v59 = vld [vmem:[#allocation7 + $0x114] sm:$0xf0]  ;;  %v6873_v41 = vld [vmem:[#allocation8] sm:$0xff] }
 0x12f   :  { %2042 = vmatpush.bf16.msrb.mxu3 %v5566_v55 }
 0x130   :  { %v1566_v63 = vpop.f32.mrf.mxu3  ;;  %2086 = vmatpush.bf16.msra.mxu2 %v5554_v50  ;;  %v6883_v50 = vld [vmem:[#allocation8 + $0x50] sm:$0xff] }
 0x131   :  { %v1540_v61 = vpop.f32.mrf.mxu1  ;;  %v1567_v3 = vadd.f32 %v1566_v63, %v1553_v1  ;;  %v5534_v63 = vor.u32 %v6860_v59, %v5533_v58  ;;  %2258 = vmatpush.bf16.msrb.mxu0 %v6886_v45  ;;  %v6895_v58 = vld [vmem:[#allocation10 + $0x30] sm:$0xff] }
 0x132   :  { %v1541_v2 = vadd.f32 %v1540_v61, %v1527_v0  ;;  %v6859_v61 = vld [vmem:[#allocation7 + $0x114] sm:$0xf]  ;;  %v5535_v0 = vld [vmem:[#allocation7 + $0x118] sm:$0xf0] }
 0x133   :  { %2043 = vmatpush.bf16.msrb.mxu3 %v5558_v62  ;;  %v5538_v1 = vor.u32 %v6859_v61, %v5535_v0  ;;  %v6878_v62 = vld [vmem:[#allocation8 + $0x28] sm:$0xff] }
 0x134   :  { %v1554_v5 = vpop.f32.mrf.mxu2  ;;  %2087 = vmatpush.bf16.msra.mxu2 %v5546_v56  ;;  %v6896_v56 = vld [vmem:[#allocation10 + $0x38] sm:$0xff] }
 0x135   :  { %v1555_v9 = vadd.f32 %v1554_v5, %v1541_v2  ;;  %v5525_v2 = vld [vmem:[#allocation7 + $0x100] sm:$0xf]  ;;  %v503_v5 = vperm.slane %v7813_v60, 2  ;;  %2259 = vmatpush.bf16.msrb.mxu0 %v6885_v47  ;;  %2345 = vmatpush.bf16.msrb.mxu1 %v6896_v56 }
 0x136   :  { %v6897_v56 = vld [vmem:[#allocation11] sm:$0xff] }
 0x137   :  { %2044 = vmatpush.bf16.msrb.mxu3 %v5550_v48  ;;  %v6884_v48 = vld [vmem:[#allocation8 + $0x58] sm:$0xff] }
 0x138   :  { %v1568_v10 = vpop.f32.mrf.mxu3  ;;  %2088 = vmatpush.bf16.msra.mxu2 %v5538_v1 }
 0x139   :  { %v1569_v12 = vadd.f32 %v1568_v10, %v1555_v9  ;;  %2260 = vmatpush.bf16.msrb.mxu0 %v6884_v48  ;;  %2346 = vmatpush.bf16.msrb.mxu1 %v6895_v58  ;;  %v6920_v58 = vld [vmem:[#allocation13 + $0x74] sm:$0xf0] }
 0x13b   :  { %2045 = vmatpush.bf16.msrb.mxu3 %v5542_v53  ;;  %v6881_v53 = vld [vmem:[#allocation8 + $0x40] sm:$0xff] }
 0x13d   :  { %2261 = vmatpush.bf16.msrb.mxu0 %v6883_v50 }
 0x13f   :  { %2046 = vmatpush.bf16.msrb.mxu3 %v5534_v63  ;;  %v1766_v63 = vld [vmem:[#allocation16] sm:$0x3] }
 0x140   :  { %v1768_v1 = vperm.slane %v1766_v63, 0 }
 0x141   :  { %2262 = vmatpush.bf16.msrb.mxu0 %v6882_v18 }
 0x145   :  { %v1580_v4 = vpop.f32.mrf.mxu0  ;;  %2263 = vmatpush.bf16.msrb.mxu0 %v6881_v53  ;;  %v6899_v53 = vld [vmem:[#allocation11 + $0x10] sm:$0xff] }
 0x146   :  { %v1581_v8 = vadd.f32 %v1580_v4, %v1567_v3  ;;  %v6858_v3 = vld [vmem:[#allocation7 + $0x104] sm:$0xf0]  ;;  %v6857_v4 = vld [vmem:[#allocation7 + $0x104] sm:$0xf] }
 0x147   :  { %v1594_v7 = vpop.f32.mrf.mxu1 }
 0x148   :  { %v1595_v11 = vadd.f32 %v1594_v7, %v1581_v8  ;;  %v5526_v7 = vor.u32 %v6858_v3, %v5525_v2  ;;  %v5527_v8 = vld [vmem:[#allocation7 + $0x108] sm:$0xf0]  ;;  %v1769_v2 = vperm.slane %v1766_v63, 1  ;;  %v5775_v63 = vld [vmem:[#allocation13 + $0x78] sm:$0xf0] }
 0x149   :  { %v5530_v10 = vor.u32 %v6857_v4, %v5527_v8 }
 0x14a   :  { %v1704_v22 = vmul.f32 0.2, %v1595_v11  ;;  %vm1698_vm2 = vcmp.gt.f32.partialorder %v1595_v11, 0.0  ;;  %2047 = vmatpush.bf16.msrb.mxu3 %v5526_v7 }
 0x14b   :  { %2089 = vmatpush.bf16.msra.mxu2 %v5530_v10 }
 0x14c   :  { %v1710_v30 = vsel %vm1698_vm2, %v1595_v11, %v1704_v22  ;;  %v1608_v51 = vpop.f32.mrf.mxu2 }
 0x14d   :  { %v1582_v13 = vpop.f32.mrf.mxu0 }
 0x14e   :  { %v1583_v14 = vadd.f32 %v1582_v13, %v1569_v12  ;;  %v1609_v12 = vadd.f32 %v1608_v51, %v503_v5  ;;  %2242 = vmatpush.bf16.msra.mxu3 %v6880_v37  ;;  %v6874_v51 = vld [vmem:[#allocation8 + $0x8] sm:$0xff]  ;;  %v6901_v37 = vld [vmem:[#allocation11 + $0x20] sm:$0xff] }
 0x14f   :  { %v1596_v19 = vpop.f32.mrf.mxu1 }
 0x150   :  { %v1597_v23 = vadd.f32 %v1596_v19, %v1583_v14 }
 0x151   :  { %v1622_v57 = vpop.f32.mrf.mxu3 }
 0x152   :  { %vm1701_vm3 = vcmp.gt.f32.partialorder %v1597_v23, 0.0  ;;  %v1707_v25 = vmul.f32 0.2, %v1597_v23  ;;  %v1623_v15 = vadd.f32 %v1622_v57, %v1609_v12  ;;  %2243 = vmatpush.bf16.msra.mxu3 %v6879_v43 }
 0x154   :  { %v1713_v31 = vsel %vm1701_vm3, %v1597_v23, %v1707_v25  ;;  %v1610_v9 = vpop.f32.mrf.mxu2 }
 0x155   :  { %v1716_v35 = vpack.c.bf16 %v1713_v31, %v1710_v30  ;;  %v1611_v16 = vadd.f32 %v1610_v9, %v503_v5 }
 0x156   :  { %2244 = vmatpush.bf16.msra.mxu3 %v6878_v62 }
 0x157   :  { %2034 = vmatmul.bf16.vlgmr.msrb.gmra.mxu2 %v1716_v35  ;;  %2076 = vmatmul.bf16.vlgmr.msra.gmra.mxu1 %v1716_v35 }
 0x159   :  { %v1624_v13 = vpop.f32.mrf.mxu3 }
 0x15a   :  { %v1625_v19 = vadd.f32 %v1624_v13, %v1611_v16  ;;  %2245 = vmatpush.bf16.msra.mxu3 %v6877_v46 }
 0x15e   :  { %2246 = vmatpush.bf16.msra.mxu3 %v6876_v32 }
 0x162   :  { %2247 = vmatpush.bf16.msra.mxu3 %v6875_v49 }
 0x165   :  { %v1636_v11 = vpop.f32.mrf.mxu0 }
 0x166   :  { %v1637_v20 = vadd.f32 %v1636_v11, %v1623_v15  ;;  %2248 = vmatpush.bf16.msra.mxu3 %v6874_v51 }
 0x167   :  { %v1650_v14 = vpop.f32.mrf.mxu1 }
 0x168   :  { %v1651_v23 = vadd.f32 %v1650_v14, %v1637_v20 }
 0x16a   :  { %2249 = vmatpush.bf16.msra.mxu3 %v6873_v41  ;;  %v6900_v41 = vld [vmem:[#allocation11 + $0x18] sm:$0xff] }
 0x16c   :  { %v1664_v17 = vpop.f32.mrf.mxu2 }
 0x16d   :  { %v1638_v21 = vpop.f32.mrf.mxu0  ;;  %v1665_v25 = vadd.f32 %v1664_v17, %v1651_v23 }
 0x16e   :  { %v1639_v24 = vadd.f32 %v1638_v21, %v1625_v19 }
 0x16f   :  { %v1652_v60 = vpop.f32.mrf.mxu1 }
 0x170   :  { %v1653_v26 = vadd.f32 %v1652_v60, %v1639_v24 }
 0x171   :  { %v1678_v22 = vpop.f32.mrf.mxu3 }
 0x172   :  { %v1679_v29 = vadd.f32 %v1678_v22, %v1665_v25 }
 0x174   :  { %v1666_v27 = vpop.f32.mrf.mxu2 }
 0x175   :  { %v1667_v30 = vadd.f32 %v1666_v27, %v1653_v26 }
 0x179   :  { %v1680_v31 = vpop.f32.mrf.mxu3 }
 0x17a   :  { %v1681_v34 = vadd.f32 %v1680_v31, %v1667_v30 }
 0x185   :  { %v1692_v28 = vpop.f32.mrf.mxu0 }
 0x186   :  { %v1693_v33 = vadd.f32 %v1692_v28, %v1679_v29 }
 0x188   :  { %v1705_v36 = vmul.f32 0.2, %v1693_v33  ;;  %vm1699_vm4 = vcmp.gt.f32.partialorder %v1693_v33, 0.0 }
 0x18a   :  { %v1711_v55 = vsel %vm1699_vm4, %v1693_v33, %v1705_v36  ;;  %v6894_v33 = vld [vmem:[#allocation10 + $0x28] sm:$0xff]  ;;  %v6891_v36 = vld [vmem:[#allocation10 + $0x10] sm:$0xff] }
 0x18b   :  { %2347 = vmatpush.bf16.msrb.mxu1 %v6894_v33  ;;  %v6911_v33 = vld [vmem:[#allocation13 + $0x34] sm:$0xf] }
 0x18d   :  { %v1694_v35 = vpop.f32.mrf.mxu0 }
 0x18e   :  { %v1695_v38 = vadd.f32 %v1694_v35, %v1681_v34  ;;  %v6893_v34 = vld [vmem:[#allocation10 + $0x20] sm:$0xff]  ;;  %v6892_v35 = vld [vmem:[#allocation10 + $0x18] sm:$0xff] }
 0x18f   :  { %2348 = vmatpush.bf16.msrb.mxu1 %v6893_v34 }
 0x190   :  { %vm1702_vm5 = vcmp.gt.f32.partialorder %v1695_v38, 0.0  ;;  %v1708_v39 = vmul.f32 0.2, %v1695_v38 }
 0x192   :  { %v1714_v40 = vsel %vm1702_vm5, %v1695_v38, %v1708_v39  ;;  %v6890_v38 = vld [vmem:[#allocation10 + $0x8] sm:$0xff]  ;;  %v6889_v39 = vld [vmem:[#allocation10] sm:$0xff] }
 0x193   :  { %v1717_v6 = vpack.c.bf16 %v1714_v40, %v1711_v55  ;;  %2349 = vmatpush.bf16.msrb.mxu1 %v6892_v35  ;;  %v6904_v55 = vld [vmem:[#allocation11 + $0x38] sm:$0xff]  ;;  %v6903_v40 = vld [vmem:[#allocation11 + $0x30] sm:$0xff] }
 0x194   :  { %2436 = vmatpush.bf16.msrb.mxu2 %v6904_v55  ;;  %v5743_v35 = vld [vmem:[#allocation13 + $0x38] sm:$0xf0]  ;;  %v6909_v55 = vld [vmem:[#allocation13 + $0x24] sm:$0xf] }
 0x195   :  { %2048 = vmatmul.bf16.vlgmr.msrb.gmra.mxu3 %v1717_v6  ;;  %2090 = vmatmul.bf16.vlgmr.msra.gmra.mxu2 %v1717_v6  ;;  %v6902_v6 = vld [vmem:[#allocation11 + $0x28] sm:$0xff] }
 0x197   :  { %2350 = vmatpush.bf16.msrb.mxu1 %v6891_v36  ;;  %v5746_v36 = vor.u32 %v6911_v33, %v5743_v35  ;;  %v5927_v33 = vld [vmem:[#allocation14 + $0x12c] sm:$0xf0]  ;;  %v5817_v35 = vld [vmem:[#allocation14 + $0x48] sm:$0xf] }
 0x198   :  { %2437 = vmatpush.bf16.msrb.mxu2 %v6903_v40 }
 0x199   :  { %v2021_v52 = vpop.f32.mrf.mxu1 }
 0x19a   :  { %v2022_v5 = vadd.f32 %v2021_v52, %v1768_v1 }
 0x19b   :  { %2351 = vmatpush.bf16.msrb.mxu1 %v6890_v38  ;;  %v5733_v38 = vld [vmem:[#allocation13 + $0x20] sm:$0xf] }
 0x19c   :  { %2438 = vmatpush.bf16.msrb.mxu2 %v6902_v6  ;;  %v5735_v6 = vld [vmem:[#allocation13 + $0x28] sm:$0xf0] }
 0x19f   :  { %2352 = vmatpush.bf16.msrb.mxu1 %v6889_v39  ;;  %v6910_v39 = vld [vmem:[#allocation13 + $0x24] sm:$0xf0] }
 0x1a0   :  { %2439 = vmatpush.bf16.msrb.mxu2 %v6901_v37  ;;  %v5734_v40 = vor.u32 %v6910_v39, %v5733_v38  ;;  %v5738_v37 = vor.u32 %v6909_v55, %v5735_v6  ;;  %v5843_v38 = vld [vmem:[#allocation14 + $0x84] sm:$0xf0] }
 0x1a1   :  { %v2023_v57 = vpop.f32.mrf.mxu1 }
 0x1a2   :  { %v2024_v12 = vadd.f32 %v2023_v57, %v1768_v1  ;;  %v5773_v57 = vld [vmem:[#allocation13 + $0x70] sm:$0xf]  ;;  %v6918_v1 = vld [vmem:[#allocation13 + $0x64] sm:$0xf0] }
 0x1a4   :  { %2440 = vmatpush.bf16.msrb.mxu2 %v6900_v41  ;;  %v5949_v41 = vld [vmem:[#allocation14 + $0x150] sm:$0xf] }
 0x1a5   :  { %v2063_v59 = vpop.f32.mrf.mxu0 }
 0x1a6   :  { %v2064_v7 = vadd.f32 %v2063_v59, %v1769_v2  ;;  %v6919_v59 = vld [vmem:[#allocation13 + $0x74] sm:$0xf] }
 0x1a8   :  { %2441 = vmatpush.bf16.msrb.mxu2 %v6899_v53 }
 0x1ad   :  { %v2065_v8 = vpop.f32.mrf.mxu0 }
 0x1ae   :  { %v2066_v13 = vadd.f32 %v2065_v8, %v1769_v2  ;;  %v5778_v2 = vor.u32 %v6919_v59, %v5775_v63  ;;  %v5757_v8 = vld [vmem:[#allocation13 + $0x50] sm:$0xf]  ;;  %v5937_v63 = vld [vmem:[#allocation14 + $0x138] sm:$0xf] }
 0x1af   :  { %v5853_v59 = vld [vmem:[#allocation14 + $0x90] sm:$0xf] }
 0x1b0   :  { %2573 = vmatpush.bf16.msra.mxu0 %v5778_v2 }
 0x1d4   :  { %v2077_v0 = vpop.f32.mrf.mxu1 }
 0x1d5   :  { %v2078_v9 = vadd.f32 %v2077_v0, %v2064_v7  ;;  %v5765_v0 = vld [vmem:[#allocation13 + $0x60] sm:$0xf] }
 0x1da   :  { %v2035_v54 = vpop.f32.mrf.mxu2 }
 0x1db   :  { %v2036_v10 = vadd.f32 %v2035_v54, %v2022_v5  ;;  %v6898_v54 = vld [vmem:[#allocation11 + $0x8] sm:$0xff]  ;;  %v5766_v5 = vor.u32 %v6918_v1, %v5765_v0  ;;  %v6940_v0 = vld [vmem:[#allocation14 + $0x98] sm:$0xf0]  ;;  %v6961_v1 = vld [vmem:[#allocation14 + $0x140] sm:$0xf0] }
 0x1dc   :  { %v2079_v11 = vpop.f32.mrf.mxu1  ;;  %2442 = vmatpush.bf16.msrb.mxu2 %v6898_v54  ;;  %v6964_v54 = vld [vmem:[#allocation14 + $0x158] sm:$0xf0]  ;;  %v5854_v2 = vor.u32 %v6940_v0, %v5853_v59  ;;  %v5969_v0 = vld [vmem:[#allocation14 + $0x170] sm:$0xf] }
 0x1dd   :  { %v2080_v16 = vadd.f32 %v2079_v11, %v2066_v13  ;;  %v5759_v11 = vld [vmem:[#allocation13 + $0x58] sm:$0xf0] }
 0x1e0   :  { %2443 = vmatpush.bf16.msrb.mxu2 %v6897_v56  ;;  %v5865_v56 = vld [vmem:[#allocation14 + $0xa8] sm:$0xf] }
 0x1e2   :  { %v2037_v61 = vpop.f32.mrf.mxu2 }
 0x1e3   :  { %v2038_v17 = vadd.f32 %v2037_v61, %v2024_v12  ;;  %v5774_v61 = vor.u32 %v6920_v58, %v5773_v57  ;;  %v6943_v57 = vld [vmem:[#allocation14 + $0xb0] sm:$0xf0] }
 0x1e4   :  { %v5866_v58 = vor.u32 %v6943_v57, %v5865_v56  ;;  %v5877_v57 = vld [vmem:[#allocation14 + $0xc0] sm:$0xf] }
 0x1e5   :  { %2559 = vmatpush.bf16.msrb.mxu3 %v5774_v61  ;;  %v5950_v61 = vor.u32 %v6964_v54, %v5949_v41 }
 0x1e6   :  { %2929 = vmatpush.bf16.msra.mxu1 %v5866_v58  ;;  %v6946_v58 = vld [vmem:[#allocation14 + $0xc8] sm:$0xf0] }
 0x1e7   :  { %v5878_v59 = vor.u32 %v6946_v58, %v5877_v57  ;;  %v6953_v57 = vld [vmem:[#allocation14 + $0x100] sm:$0xf0] }
 0x1e9   :  { %2560 = vmatpush.bf16.msrb.mxu3 %v5766_v5 }
 0x1ea   :  { %2930 = vmatpush.bf16.msra.mxu1 %v5854_v2  ;;  %v6968_v2 = vld [vmem:[#allocation14 + $0x178] sm:$0xf0] }
 0x218   :  { %v2049_v3 = vpop.f32.mrf.mxu3  ;;  %v2091_v4 = vpop.f32.mrf.mxu2 }
 0x219   :  { %v2050_v14 = vadd.f32 %v2049_v3, %v2036_v10  ;;  %v2092_v15 = vadd.f32 %v2091_v4, %v2078_v9  ;;  %v6917_v3 = vld [vmem:[#allocation13 + $0x64] sm:$0xf]  ;;  %v5767_v4 = vld [vmem:[#allocation13 + $0x68] sm:$0xf0]  ;;  %v6916_v9 = vld [vmem:[#allocation13 + $0x54] sm:$0xf0] }
 0x21a   :  { %v5770_v7 = vor.u32 %v6917_v3, %v5767_v4  ;;  %v6915_v10 = vld [vmem:[#allocation13 + $0x54] sm:$0xf]  ;;  %v5758_v12 = vor.u32 %v6916_v9, %v5757_v8  ;;  %v6966_v3 = vld [vmem:[#allocation14 + $0x16c] sm:$0xf]  ;;  %v5963_v4 = vld [vmem:[#allocation14 + $0x174] sm:$0xf0] }
 0x21b   :  { %v2100_v21 = vmul.f32 0.2, %v2050_v14  ;;  %v2101_v22 = vmul.f32 0.2, %v2092_v15  ;;  %vm2096_vm6 = vcmp.gt.f32.partialorder %v2050_v14, 0.0  ;;  %vm2097_vm7 = vcmp.gt.f32.partialorder %v2092_v15, 0.0 }
 0x21c   :  { %2574 = vmatpush.bf16.msra.mxu0 %v5770_v7  ;;  %v5762_v13 = vor.u32 %v6915_v10, %v5759_v11  ;;  %2561 = vmatpush.bf16.msrb.mxu3 %v5758_v12  ;;  %v5966_v5 = vor.u32 %v6966_v3, %v5963_v4  ;;  %v5841_v7 = vld [vmem:[#allocation14 + $0x78] sm:$0xf]  ;;  %v6937_v8 = vld [vmem:[#allocation14 + $0x80] sm:$0xf0]  ;;  %v6963_v9 = vld [vmem:[#allocation14 + $0x154] sm:$0xf]  ;;  %v5938_v11 = vor.u32 %v6961_v1, %v5937_v63 }
 0x21d   :  { %v2104_v26 = vsel %vm2096_vm6, %v2050_v14, %v2100_v21  ;;  %v2105_v27 = vsel %vm2097_vm7, %v2092_v15, %v2101_v22  ;;  %v5749_v14 = vld [vmem:[#allocation13 + $0x40] sm:$0xf]  ;;  %v6914_v15 = vld [vmem:[#allocation13 + $0x44] sm:$0xf0]  ;;  %v5915_v63 = vld [vmem:[#allocation14 + $0x114] sm:$0xf0] }
 0x21e   :  { %v7163_v21 = vld [vmem:[#allocation17] ss:$0 sm:$0xff]  ;;  %v5793_v3 = vld [vmem:[#allocation14 + $0x18] sm:$0xf]  ;;  %v6925_v4 = vld [vmem:[#allocation14 + $0x20] sm:$0xf0] }
 0x21f   :  { %v5951_v10 = vld [vmem:[#allocation14 + $0x15c] sm:$0xf0] }
 0x220   :  { %v2051_v19 = vpop.f32.mrf.mxu3  ;;  %v2093_v20 = vpop.f32.mrf.mxu2  ;;  %2575 = vmatpush.bf16.msra.mxu0 %v5762_v13  ;;  %v5954_v12 = vor.u32 %v6963_v9, %v5951_v10  ;;  %v6942_v13 = vld [vmem:[#allocation14 + $0xac] sm:$0xf]  ;;  %v5831_v9 = vld [vmem:[#allocation14 + $0x6c] sm:$0xf0] }
 0x221   :  { %v2052_v23 = vadd.f32 %v2051_v19, %v2038_v17  ;;  %v2094_v24 = vadd.f32 %v2093_v20, %v2080_v16  ;;  %v6913_v16 = vld [vmem:[#allocation13 + $0x44] sm:$0xf]  ;;  %v5751_v17 = vld [vmem:[#allocation13 + $0x48] sm:$0xf0]  ;;  %v5750_v19 = vor.u32 %v6914_v15, %v5749_v14  ;;  %v5867_v14 = vld [vmem:[#allocation14 + $0xb4] sm:$0xf0] }
 0x222   :  { %v5754_v20 = vor.u32 %v6913_v16, %v5751_v17  ;;  %v5925_v15 = vld [vmem:[#allocation14 + $0x120] sm:$0xf]  ;;  %v6958_v16 = vld [vmem:[#allocation14 + $0x128] sm:$0xf0]  ;;  %v5842_v17 = vor.u32 %v6937_v8, %v5841_v7  ;;  %v5794_v7 = vor.u32 %v6925_v4, %v5793_v3  ;;  %v6933_v8 = vld [vmem:[#allocation14 + $0x64] sm:$0xf] }
 0x223   :  { %vm2098_vm8 = vcmp.gt.f32.partialorder %v2052_v23, 0.0  ;;  %v2102_v60 = vmul.f32 0.2, %v2052_v23  ;;  %vm2099_vm9 = vcmp.gt.f32.partialorder %v2094_v24, 0.0  ;;  %v2103_v25 = vmul.f32 0.2, %v2094_v24  ;;  %2562 = vmatpush.bf16.msrb.mxu3 %v5750_v19 }
 0x224   :  { %2576 = vmatpush.bf16.msra.mxu0 %v5754_v20  ;;  %v5870_v19 = vor.u32 %v6942_v13, %v5867_v14  ;;  %v6960_v20 = vld [vmem:[#allocation14 + $0x13c] sm:$0xf]  ;;  %2931 = vmatpush.bf16.msra.mxu1 %v5842_v17  ;;  %v5834_v10 = vor.u32 %v6933_v8, %v5831_v9  ;;  %v5957_v13 = vld [vmem:[#allocation14 + $0x158] sm:$0xf]  ;;  %v6922_v17 = vld [vmem:[#allocation14 + $0x8] sm:$0xf0] }
 0x225   :  { %v2106_v28 = vsel %vm2098_vm8, %v2052_v23, %v2102_v60  ;;  %v2107_v29 = vsel %vm2099_vm9, %v2094_v24, %v2103_v25  ;;  %v6929_v4 = vld [vmem:[#allocation14 + $0x40] sm:$0xf0]  ;;  %v5801_v9 = vld [vmem:[#allocation14 + $0x20] sm:$0xf] }
 0x226   :  { %v2108_v30 = vpack.c.bf16 %v2106_v28, %v2104_v26  ;;  %v2109_v31 = vpack.c.bf16 %v2107_v29, %v2105_v27 }
 0x228   :  { %2250 = vmatmul.bf16.vlgmr.msra.gmra.mxu3 %v2108_v30  ;;  %2264 = vmatmul.bf16.vlgmr.msrb.gmra.mxu0 %v2109_v31  ;;  %v5741_v30 = vld [vmem:[#allocation13 + $0x30] sm:$0xf]  ;;  %v6912_v31 = vld [vmem:[#allocation13 + $0x34] sm:$0xf0] }
 0x229   :  { %v5742_v34 = vor.u32 %v6912_v31, %v5741_v30  ;;  %2577 = vmatpush.bf16.msra.mxu0 %v5746_v36  ;;  %v6957_v31 = vld [vmem:[#allocation14 + $0x124] sm:$0xf]  ;;  %v6931_v36 = vld [vmem:[#allocation14 + $0x50] sm:$0xf0] }
 0x22b   :  { %2563 = vmatpush.bf16.msrb.mxu3 %v5742_v34  ;;  %v6936_v34 = vld [vmem:[#allocation14 + $0x7c] sm:$0xf] }
 0x22c   :  { %v5846_v39 = vor.u32 %v6936_v34, %v5843_v38  ;;  %v5807_v34 = vld [vmem:[#allocation14 + $0x3c] sm:$0xf0]  ;;  %v6941_v38 = vld [vmem:[#allocation14 + $0xa0] sm:$0xf0] }
 0x22d   :  { %2578 = vmatpush.bf16.msra.mxu0 %v5738_v37  ;;  %v5901_v37 = vld [vmem:[#allocation14 + $0xf0] sm:$0xf] }
 0x22f   :  { %2564 = vmatpush.bf16.msrb.mxu3 %v5734_v40  ;;  %v5930_v40 = vor.u32 %v6957_v31, %v5927_v33  ;;  %v6927_v33 = vld [vmem:[#allocation14 + $0x34] sm:$0xf] }
 0x2a5   :  { %v2265_v43 = vpop.f32.mrf.mxu0 }
 0x2ab   :  { %v2251_v44 = vpop.f32.mrf.mxu3 }
 0x2ac   :  { %v2252_v62 = vadd.f32 %v7162_v42, %v2251_v44  ;;  %v6907_v44 = vld [vmem:[#allocation13 + $0x14] sm:$0xf] }
 0x2ad   :  { %v2267_v32 = vpop.f32.mrf.mxu0 }
 0x2ae   :  { %v2266_v45 = vadd.f32 %v2265_v43, %v2252_v62  ;;  %v6908_v43 = vld [vmem:[#allocation13 + $0x14] sm:$0xf0] }
 0x2b0   :  { %v2272_v48 = vmul.f32 0.2, %v2266_v45  ;;  %vm2270_vm10 = vcmp.gt.f32.partialorder %v2266_v45, 0.0 }
 0x2b2   :  { %v2274_v51 = vsel %vm2270_vm10, %v2266_v45, %v2272_v48  ;;  %v5727_v45 = vld [vmem:[#allocation13 + $0x18] sm:$0xf0]  ;;  %v6905_v48 = vld [vmem:[#allocation13 + $0x4] sm:$0xf] }
 0x2b3   :  { %v2253_v46 = vpop.f32.mrf.mxu3 }
 0x2b4   :  { %v2254_v47 = vadd.f32 %v7162_v42, %v2253_v46  ;;  %v5725_v42 = vld [vmem:[#allocation13 + $0x10] sm:$0xf]  ;;  %v5730_v46 = vor.u32 %v6907_v44, %v5727_v45  ;;  %v7164_v44 = vld [vmem:[#allocation19] ss:$0 sm:$0xff]  ;;  %v6928_v45 = vld [vmem:[#allocation14 + $0x38] sm:$0xf0] }
 0x2b5   :  { %v5726_v62 = vor.u32 %v6908_v43, %v5725_v42  ;;  %v6952_v42 = vld [vmem:[#allocation14 + $0xf8] sm:$0xf0]  ;;  %v5818_v43 = vor.u32 %v6931_v36, %v5817_v35  ;;  %v5861_v35 = vld [vmem:[#allocation14 + $0x98] sm:$0xf]  ;;  %v5810_v36 = vor.u32 %v6927_v33, %v5807_v34  ;;  %v7077_v34 = vld [vmem:[#allocation22 + $0x360] sm:$0xf0] }
 0x2b6   :  { %v2268_v49 = vadd.f32 %v2267_v32, %v2254_v47  ;;  %2579 = vmatpush.bf16.msra.mxu0 %v5730_v46  ;;  %v5717_v47 = vld [vmem:[#allocation13] sm:$0xf]  ;;  %v6906_v32 = vld [vmem:[#allocation13 + $0x4] sm:$0xf0]  ;;  %v5902_v46 = vor.u32 %v6952_v42, %v5901_v37  ;;  %v6959_v42 = vld [vmem:[#allocation14 + $0x130] sm:$0xf0] }
 0x2b7   :  { %2565 = vmatpush.bf16.msrb.mxu3 %v5726_v62  ;;  %v5805_v62 = vld [vmem:[#allocation14 + $0x30] sm:$0xf] }
 0x2b8   :  { %vm2271_vm11 = vcmp.gt.f32.partialorder %v2268_v49, 0.0  ;;  %v2273_v50 = vmul.f32 0.2, %v2268_v49 }
 0x2ba   :  { %v2275_v18 = vsel %vm2271_vm11, %v2268_v49, %v2273_v50  ;;  %v5718_v49 = vor.u32 %v6906_v32, %v5717_v47  ;;  %v5719_v50 = vld [vmem:[#allocation13 + $0x8] sm:$0xf0]  ;;  %v5889_v47 = vld [vmem:[#allocation14 + $0xd8] sm:$0xf]  ;;  %v6949_v32 = vld [vmem:[#allocation14 + $0xe0] sm:$0xf0] }
 0x2bb   :  { %v2276_v52 = vpack.c.bf16 %v2275_v18, %v2274_v51  ;;  %v5722_v51 = vor.u32 %v6905_v48, %v5719_v50  ;;  %v5961_v18 = vld [vmem:[#allocation14 + $0x168] sm:$0xf]  ;;  %v5806_v48 = vor.u32 %v6928_v45, %v5805_v62  ;;  %v5890_v50 = vor.u32 %v6949_v32, %v5889_v47  ;;  %v5849_v45 = vld [vmem:[#allocation14 + $0x80] sm:$0xf]  ;;  %v6938_v47 = vld [vmem:[#allocation14 + $0x88] sm:$0xf0] }
 0x2bc   :  { %2566 = vmatpush.bf16.msrb.mxu3 %v5718_v49  ;;  %v5795_v62 = vld [vmem:[#allocation14 + $0x24] sm:$0xf0]  ;;  %v5850_v32 = vor.u32 %v6938_v47, %v5849_v45 }
 0x2bd   :  { %2353 = vmatmul.bf16.vlgmr.msrb.gmra.mxu1 %v2276_v52  ;;  %2580 = vmatpush.bf16.msra.mxu0 %v5722_v51  ;;  %v6967_v52 = vld [vmem:[#allocation14 + $0x170] sm:$0xf0] }
 0x2be   :  { %v5962_v53 = vor.u32 %v6967_v52, %v5961_v18 }
 0x2c0   :  { %2943 = vmatpush.bf16.msra.mxu2 %v5962_v53  ;;  %2957 = vmatpush.bf16.msra.mxu3 %v5870_v19 }
 0x2c1   :  { %2971 = vmatpush.bf16.msrb.mxu0 %v5966_v5  ;;  %v5970_v5 = vor.u32 %v6968_v2, %v5969_v0  ;;  %v5897_v0 = vld [vmem:[#allocation14 + $0xe0] sm:$0xf]  ;;  %v5813_v2 = vld [vmem:[#allocation14 + $0x38] sm:$0xf] }
 0x2c2   :  { %v5814_v8 = vor.u32 %v6929_v4, %v5813_v2 }
 0x2c4   :  { %2944 = vmatpush.bf16.msra.mxu2 %v5950_v61  ;;  %v6954_v61 = vld [vmem:[#allocation14 + $0x10c] sm:$0xf] }
 0x2c5   :  { %2972 = vmatpush.bf16.msrb.mxu0 %v5954_v12  ;;  %v5918_v1 = vor.u32 %v6954_v61, %v5915_v63  ;;  %v5903_v12 = vld [vmem:[#allocation14 + $0xfc] sm:$0xf0]  ;;  %v6932_v61 = vld [vmem:[#allocation14 + $0x58] sm:$0xf0] }
 0x2c8   :  { %2945 = vmatpush.bf16.msra.mxu2 %v5938_v11  ;;  %v6951_v11 = vld [vmem:[#allocation14 + $0xf4] sm:$0xf] }
 0x2c9   :  { %v5906_v14 = vor.u32 %v6951_v11, %v5903_v12 }
 0x33a   :  { %v2354_v22 = vpop.f32.mrf.mxu1 }
 0x33b   :  { %v2355_v23 = vadd.f32 %v7163_v21, %v2354_v22  ;;  %v6934_v22 = vld [vmem:[#allocation14 + $0x68] sm:$0xf0] }
 0x33d   :  { %vm2359_vm12 = vcmp.gt.f32.partialorder %v2355_v23, 0.0  ;;  %v2361_v24 = vmul.f32 0.2, %v2355_v23 }
 0x33f   :  { %v2363_v60 = vsel %vm2359_vm12, %v2355_v23, %v2361_v24  ;;  %v5939_v23 = vld [vmem:[#allocation14 + $0x144] sm:$0xf0]  ;;  %v6939_v24 = vld [vmem:[#allocation14 + $0x94] sm:$0xf] }
 0x340   :  { %2365 = vst [vmem:[#allocation24] sm:$0xff] %v2363_v60 }
 0x342   :  { %v2356_v25 = vpop.f32.mrf.mxu1 }
 0x343   :  { %v2357_v26 = vadd.f32 %v7163_v21, %v2356_v25  ;;  %v5829_v21 = vld [vmem:[#allocation14 + $0x60] sm:$0xf]  ;;  %v5926_v25 = vor.u32 %v6958_v16, %v5925_v15  ;;  %v6965_v15 = vld [vmem:[#allocation14 + $0x160] sm:$0xf0] }
 0x344   :  { %v5830_v30 = vor.u32 %v6934_v22, %v5829_v21  ;;  %v5781_v16 = vld [vmem:[#allocation14] sm:$0xf]  ;;  %v5958_v19 = vor.u32 %v6965_v15, %v5957_v13  ;;  %v6930_v21 = vld [vmem:[#allocation14 + $0x4c] sm:$0xf]  ;;  %v5819_v22 = vld [vmem:[#allocation14 + $0x54] sm:$0xf0] }
 0x345   :  { %vm2360_vm13 = vcmp.gt.f32.partialorder %v2357_v26, 0.0  ;;  %v2362_v27 = vmul.f32 0.2, %v2357_v26  ;;  %2946 = vmatpush.bf16.msra.mxu2 %v5926_v25  ;;  %v2473_v13 = vld [vmem:[#allocation20] sm:$0x3] }
 0x346   :  { %2932 = vmatpush.bf16.msra.mxu1 %v5830_v30  ;;  %v6962_v30 = vld [vmem:[#allocation14 + $0x148] sm:$0xf0] }
 0x347   :  { %v2364_v28 = vsel %vm2360_vm13, %v2357_v26, %v2362_v27  ;;  %v5913_v26 = vld [vmem:[#allocation14 + $0x108] sm:$0xf]  ;;  %v6955_v27 = vld [vmem:[#allocation14 + $0x110] sm:$0xf0] }
 0x348   :  { %v2367_v29 = vpack.c.bf16 %v2364_v28, %v2363_v60  ;;  %2366 = vst [vmem:[#allocation24 + $0x8] sm:$0xff] %v2364_v28  ;;  %v5855_v60 = vld [vmem:[#allocation14 + $0x9c] sm:$0xf0]  ;;  %v5942_v28 = vor.u32 %v6960_v20, %v5939_v23  ;;  %v5914_v55 = vor.u32 %v6955_v27, %v5913_v26  ;;  %v5782_v20 = vor.u32 %v6922_v17, %v5781_v16  ;;  %v5873_v23 = vld [vmem:[#allocation14 + $0xb0] sm:$0xf] }
 0x349   :  { %v6948_v26 = vld [vmem:[#allocation14 + $0xdc] sm:$0xf]  ;;  %v5891_v27 = vld [vmem:[#allocation14 + $0xe4] sm:$0xf0]  ;;  %v6923_v17 = vld [vmem:[#allocation14 + $0x10] sm:$0xf0] }
 0x34a   :  { %2444 = vmatmul.bf16.vlgmr.msrb.gmra.mxu2 %v2367_v29  ;;  %v5858_v29 = vor.u32 %v6939_v24, %v5855_v60  ;;  %2973 = vmatpush.bf16.msrb.mxu0 %v5942_v28  ;;  %v5822_v24 = vor.u32 %v6930_v21, %v5819_v22  ;;  %v6944_v60 = vld [vmem:[#allocation14 + $0xb8] sm:$0xf0]  ;;  %v5945_v28 = vld [vmem:[#allocation14 + $0x140] sm:$0xf]  ;;  %v5789_v16 = vld [vmem:[#allocation14 + $0x8] sm:$0xf] }
 0x34b   :  { %2947 = vmatpush.bf16.msra.mxu2 %v5914_v55  ;;  %2933 = vmatpush.bf16.msra.mxu1 %v5818_v43  ;;  %v5874_v25 = vor.u32 %v6944_v60, %v5873_v23  ;;  %v5946_v31 = vor.u32 %v6962_v30, %v5945_v28  ;;  %v6945_v55 = vld [vmem:[#allocation14 + $0xc4] sm:$0xf]  ;;  %v6169_v22 = vld [vmem:[#allocation22 + $0x188] sm:$0xf]  ;;  %v7021_v23 = vld [vmem:[#allocation22 + $0x1a0] sm:$0xf0] }
 0x34c   :  { %2958 = vmatpush.bf16.msra.mxu3 %v5858_v29  ;;  %v5894_v29 = vor.u32 %v6948_v26, %v5891_v27  ;;  %v6170_v60 = vor.u32 %v7021_v23, %v6169_v22  ;;  %v7014_v26 = vld [vmem:[#allocation22 + $0x168] sm:$0xf0]  ;;  %v6393_v28 = vld [vmem:[#allocation22 + $0x348] sm:$0xf]  ;;  %v6561_v22 = vld [vmem:[#allocation22 + $0x498] sm:$0xf] }
 0x34d   :  { %v7119_v23 = vld [vmem:[#allocation22 + $0x4b0] sm:$0xf0] }
 0x34e   :  { %2974 = vmatpush.bf16.msrb.mxu0 %v5930_v40  ;;  %v5879_v40 = vld [vmem:[#allocation14 + $0xcc] sm:$0xf0] }
 0x34f   :  { %2948 = vmatpush.bf16.msra.mxu2 %v5902_v46  ;;  %2934 = vmatpush.bf16.msra.mxu1 %v5806_v48  ;;  %v5882_v37 = vor.u32 %v6945_v55, %v5879_v40  ;;  %v5921_v48 = vld [vmem:[#allocation14 + $0x110] sm:$0xf] }
 0x350   :  { %2959 = vmatpush.bf16.msra.mxu3 %v5846_v39  ;;  %v5862_v39 = vor.u32 %v6941_v38, %v5861_v35  ;;  %v6171_v35 = vld [vmem:[#allocation22 + $0x1a4] sm:$0xf0]  ;;  %v6113_v38 = vld [vmem:[#allocation22 + $0x118] sm:$0xf] }
 0x352   :  { %2975 = vmatpush.bf16.msrb.mxu0 %v5918_v1  ;;  %v6950_v1 = vld [vmem:[#allocation14 + $0xe8] sm:$0xf0] }
 0x353   :  { %2949 = vmatpush.bf16.msra.mxu2 %v5890_v50  ;;  %2935 = vmatpush.bf16.msra.mxu1 %v5794_v7  ;;  %v5898_v3 = vor.u32 %v6950_v1, %v5897_v0  ;;  %v6947_v7 = vld [vmem:[#allocation14 + $0xd0] sm:$0xf0]  ;;  %v6993_v0 = vld [vmem:[#allocation22 + $0xc0] sm:$0xf0] }
 0x354   :  { %2960 = vmatpush.bf16.msra.mxu3 %v5834_v10  ;;  %v6926_v10 = vld [vmem:[#allocation14 + $0x28] sm:$0xf0] }
 0x355   :  { %v5802_v12 = vor.u32 %v6926_v10, %v5801_v9  ;;  %v6589_v9 = vld [vmem:[#allocation22 + $0x4d0] sm:$0xf]  ;;  %v7126_v10 = vld [vmem:[#allocation22 + $0x4e8] sm:$0xf0] }
 0x356   :  { %2976 = vmatpush.bf16.msrb.mxu0 %v5906_v14  ;;  %v2476_v14 = vperm.slane %v2473_v13, 1 }
 0x357   :  { %2950 = vmatpush.bf16.msra.mxu2 %v5878_v59  ;;  %2936 = vmatpush.bf16.msra.mxu1 %v5782_v20  ;;  %v5825_v59 = vld [vmem:[#allocation14 + $0x50] sm:$0xf] }
 0x358   :  { %2961 = vmatpush.bf16.msra.mxu3 %v5822_v24  ;;  %v5826_v63 = vor.u32 %v6932_v61, %v5825_v59  ;;  %v2475_v24 = vperm.slane %v2473_v13, 0  ;;  %v6115_v61 = vld [vmem:[#allocation22 + $0x134] sm:$0xf0] }
 0x35a   :  { %2977 = vmatpush.bf16.msrb.mxu0 %v5894_v29 }
 0x35b   :  { %2999 = vmatpush.bf16.msrb.mxu2 %v5970_v5  ;;  %2985 = vmatpush.bf16.msrb.mxu1 %v5874_v25  ;;  %v5885_v5 = vld [vmem:[#allocation14 + $0xc8] sm:$0xf]  ;;  %v6141_v25 = vld [vmem:[#allocation22 + $0x150] sm:$0xf] }
 0x35c   :  { %2962 = vmatpush.bf16.msra.mxu3 %v5810_v36  ;;  %v5886_v11 = vor.u32 %v6947_v7, %v5885_v5  ;;  %v6142_v33 = vor.u32 %v7014_v26, %v6141_v25  ;;  %v6394_v36 = vor.u32 %v7077_v34, %v6393_v28  ;;  %v6309_v5 = vld [vmem:[#allocation22 + $0x2a0] sm:$0xf]  ;;  %v6059_v26 = vld [vmem:[#allocation22 + $0xc4] sm:$0xf0]  ;;  %v6979_v28 = vld [vmem:[#allocation22 + $0x50] sm:$0xf0] }
 0x35d   :  { %v6533_v34 = vld [vmem:[#allocation22 + $0x460] sm:$0xf] }
 0x35e   :  { %2978 = vmatpush.bf16.msrb.mxu0 %v5882_v37  ;;  %v7070_v37 = vld [vmem:[#allocation22 + $0x328] sm:$0xf0] }
 0x35f   :  { %3000 = vmatpush.bf16.msrb.mxu2 %v5958_v19  ;;  %2986 = vmatpush.bf16.msrb.mxu1 %v5862_v39  ;;  %v5790_v19 = vor.u32 %v6923_v17, %v5789_v16  ;;  %v7007_v39 = vld [vmem:[#allocation22 + $0x130] sm:$0xf0]  ;;  %v6986_v16 = vld [vmem:[#allocation22 + $0x88] sm:$0xf0] }
 0x360   :  { %v6114_v45 = vor.u32 %v7007_v39, %v6113_v38  ;;  %v6983_v38 = vld [vmem:[#allocation22 + $0x74] sm:$0xf] }
 0x363   :  { %3001 = vmatpush.bf16.msrb.mxu2 %v5946_v31  ;;  %2987 = vmatpush.bf16.msrb.mxu1 %v5850_v32  ;;  %v7018_v31 = vld [vmem:[#allocation22 + $0x18c] sm:$0xf]  ;;  %v6143_v32 = vld [vmem:[#allocation22 + $0x16c] sm:$0xf0] }
 0x3cd   :  { %v2445_v6 = vpop.f32.mrf.mxu2 }
 0x3ce   :  { %v2446_v49 = vadd.f32 %v7164_v44, %v2445_v6  ;;  %v5933_v6 = vld [vmem:[#allocation14 + $0x128] sm:$0xf] }
 0x3cf   :  { %v5934_v43 = vor.u32 %v6959_v42, %v5933_v6  ;;  %v6365_v6 = vld [vmem:[#allocation22 + $0x310] sm:$0xf] }
 0x3d0   :  { %v2452_v18 = vmul.f32 0.2, %v2446_v49  ;;  %vm2450_vm14 = vcmp.gt.f32.partialorder %v2446_v49, 0.0 }
 0x3d1   :  { %3002 = vmatpush.bf16.msrb.mxu2 %v5934_v43 }
 0x3d2   :  { %v2454_v53 = vsel %vm2450_vm14, %v2446_v49, %v2452_v18  ;;  %v6956_v49 = vld [vmem:[#allocation14 + $0x118] sm:$0xf0]  ;;  %v5783_v18 = vld [vmem:[#allocation14 + $0xc] sm:$0xf0] }
 0x3d3   :  { %v5922_v50 = vor.u32 %v6956_v49, %v5921_v48  ;;  %v6366_v48 = vor.u32 %v7070_v37, %v6365_v6  ;;  %v6085_v49 = vld [vmem:[#allocation22 + $0xe0] sm:$0xf]  ;;  %v6972_v6 = vld [vmem:[#allocation22 + $0x18] sm:$0xf0] }
 0x3d5   :  { %v2447_v51 = vpop.f32.mrf.mxu2  ;;  %3003 = vmatpush.bf16.msrb.mxu2 %v5922_v50  ;;  %v7000_v50 = vld [vmem:[#allocation22 + $0xf8] sm:$0xf0] }
 0x3d6   :  { %v2448_v52 = vadd.f32 %v7164_v44, %v2447_v51  ;;  %v6924_v44 = vld [vmem:[#allocation14 + $0x1c] sm:$0xf]  ;;  %v6921_v51 = vld [vmem:[#allocation14 + $0x4] sm:$0xf]  ;;  %v6086_v59 = vor.u32 %v7000_v50, %v6085_v49 }
 0x3d7   :  { %v5798_v46 = vor.u32 %v6924_v44, %v5795_v62  ;;  %v6174_v44 = vor.u32 %v7018_v31, %v6171_v35  ;;  %v7011_v62 = vld [vmem:[#allocation22 + $0x154] sm:$0xf]  ;;  %v6253_v31 = vld [vmem:[#allocation22 + $0x230] sm:$0xf]  ;;  %v7112_v35 = vld [vmem:[#allocation22 + $0x478] sm:$0xf0] }
 0x3d8   :  { %vm2451_vm15 = vcmp.gt.f32.partialorder %v2448_v52, 0.0  ;;  %v2453_v41 = vmul.f32 0.2, %v2448_v52  ;;  %v6976_v50 = vld [vmem:[#allocation22 + $0x3c] sm:$0xf] }
 0x3d9   :  { %2963 = vmatpush.bf16.msra.mxu3 %v5798_v46 }
 0x3da   :  { %v2455_v54 = vsel %vm2451_vm15, %v2448_v52, %v2453_v41  ;;  %v5837_v52 = vld [vmem:[#allocation14 + $0x68] sm:$0xf]  ;;  %v5786_v41 = vor.u32 %v6921_v51, %v5783_v18 }
 0x3db   :  { %v2456_v56 = vpack.c.bf16 %v2455_v54, %v2454_v53  ;;  %v6935_v53 = vld [vmem:[#allocation14 + $0x70] sm:$0xf0] }
 0x3dc   :  { %v5838_v54 = vor.u32 %v6935_v53, %v5837_v52  ;;  %v6337_v52 = vld [vmem:[#allocation22 + $0x2d8] sm:$0xf]  ;;  %v6617_v53 = vld [vmem:[#allocation22 + $0x508] sm:$0xf] }
 0x3dd   :  { %2567 = vmatmul.bf16.vlgmr.msrb.gmra.mxu3 %v2456_v56  ;;  %2581 = vmatmul.bf16.vlgmr.msra.gmra.mxu0 %v2456_v56  ;;  %v5909_v56 = vld [vmem:[#allocation14 + $0xf8] sm:$0xf] }
 0x3de   :  { %2964 = vmatpush.bf16.msra.mxu3 %v5786_v41  ;;  %v5910_v58 = vor.u32 %v6953_v57, %v5909_v56  ;;  %2988 = vmatpush.bf16.msrb.mxu1 %v5838_v54  ;;  %v7063_v41 = vld [vmem:[#allocation22 + $0x2f0] sm:$0xf0]  ;;  %v7133_v54 = vld [vmem:[#allocation22 + $0x520] sm:$0xf0]  ;;  %v6146_v57 = vor.u32 %v7011_v62, %v6143_v32  ;;  %v6225_v62 = vld [vmem:[#allocation22 + $0x1f8] sm:$0xf] }
 0x3df   :  { %4120 = vmatpush.bf16.msra.mxu0 %v6394_v36  ;;  %v6618_v4 = vor.u32 %v7133_v54, %v6617_v53  ;;  %v7105_v32 = vld [vmem:[#allocation22 + $0x440] sm:$0xf0]  ;;  %v7067_v53 = vld [vmem:[#allocation22 + $0x314] sm:$0xf]  ;;  %v6367_v54 = vld [vmem:[#allocation22 + $0x32c] sm:$0xf0] }
 0x3e0   :  { %3004 = vmatpush.bf16.msrb.mxu2 %v5910_v58  ;;  %v7004_v58 = vld [vmem:[#allocation22 + $0x11c] sm:$0xf] }
 0x3e2   :  { %2989 = vmatpush.bf16.msrb.mxu1 %v5826_v63  ;;  %4106 = vmatpush.bf16.msrb.mxu3 %v6170_v60  ;;  %v6057_v63 = vld [vmem:[#allocation22 + $0xa8] sm:$0xf]  ;;  %v6990_v60 = vld [vmem:[#allocation22 + $0xac] sm:$0xf] }
 0x3e3   :  { %4121 = vmatpush.bf16.msra.mxu0 %v6366_v48  ;;  %v6058_v13 = vor.u32 %v6993_v0, %v6057_v63  ;;  %v6062_v36 = vor.u32 %v6990_v60, %v6059_v26  ;;  %v7091_v60 = vld [vmem:[#allocation22 + $0x3d0] sm:$0xf0]  ;;  %v7053_v26 = vld [vmem:[#allocation22 + $0x2a4] sm:$0xf] }
 0x3e4   :  { %3005 = vmatpush.bf16.msrb.mxu2 %v5898_v3  ;;  %v6338_v3 = vor.u32 %v7063_v41, %v6337_v52 }
 0x3e6   :  { %2990 = vmatpush.bf16.msrb.mxu1 %v5814_v8  ;;  %4107 = vmatpush.bf16.msrb.mxu3 %v6142_v33  ;;  %v7056_v8 = vld [vmem:[#allocation22 + $0x2b8] sm:$0xf0]  ;;  %v7042_v33 = vld [vmem:[#allocation22 + $0x248] sm:$0xf0] }
 0x3e7   :  { %4122 = vmatpush.bf16.msra.mxu0 %v6338_v3  ;;  %v6310_v17 = vor.u32 %v7056_v8, %v6309_v5  ;;  %v6254_v37 = vor.u32 %v7042_v33, %v6253_v31  ;;  %v7028_v5 = vld [vmem:[#allocation22 + $0x1d8] sm:$0xf0]  ;;  %v7130_v8 = vld [vmem:[#allocation22 + $0x50c] sm:$0xf] }
 0x3e8   :  { %3006 = vmatpush.bf16.msrb.mxu2 %v5886_v11  ;;  %v6118_v11 = vor.u32 %v7004_v58, %v6115_v61  ;;  %v6370_v58 = vor.u32 %v7067_v53, %v6367_v54  ;;  %v7078_v61 = vld [vmem:[#allocation22 + $0x368] sm:$0xf0]  ;;  %v7116_v33 = vld [vmem:[#allocation22 + $0x49c] sm:$0xf]  ;;  %v7043_v53 = vld [vmem:[#allocation22 + $0x250] sm:$0xf0] }
 0x3ea   :  { %2991 = vmatpush.bf16.msrb.mxu1 %v5802_v12  ;;  %4108 = vmatpush.bf16.msrb.mxu3 %v6114_v45  ;;  %v6997_v12 = vld [vmem:[#allocation22 + $0xe4] sm:$0xf]  ;;  %v7035_v45 = vld [vmem:[#allocation22 + $0x210] sm:$0xf0] }
 0x3eb   :  { %4123 = vmatpush.bf16.msra.mxu0 %v6310_v17  ;;  %v6226_v52 = vor.u32 %v7035_v45, %v6225_v62 }
 0x3ee   :  { %2992 = vmatpush.bf16.msrb.mxu1 %v5790_v19  ;;  %4109 = vmatpush.bf16.msrb.mxu3 %v6086_v59  ;;  %v6590_v19 = vor.u32 %v7126_v10, %v6589_v9  ;;  %v6401_v59 = vld [vmem:[#allocation22 + $0x350] sm:$0xf]  ;;  %v6619_v9 = vld [vmem:[#allocation22 + $0x524] sm:$0xf0] }
 0x3ef   :  { %v6402_v0 = vor.u32 %v7078_v61, %v6401_v59  ;;  %v6622_v10 = vor.u32 %v7130_v8, %v6619_v9  ;;  %v7032_v59 = vld [vmem:[#allocation22 + $0x1fc] sm:$0xf]  ;;  %v6227_v61 = vld [vmem:[#allocation22 + $0x214] sm:$0xf0]  ;;  %v6479_v8 = vld [vmem:[#allocation22 + $0x40c] sm:$0xf0] }
 0x3f2   :  { %4110 = vmatpush.bf16.msrb.mxu3 %v6058_v13 }
 0x45a   :  { %v2582_v15 = vpop.f32.mrf.mxu0 }
 0x45b   :  { %v2583_v20 = vadd.f32 %v2582_v15, %v2476_v14  ;;  %v6029_v15 = vld [vmem:[#allocation22 + $0x70] sm:$0xf] }
 0x45c   :  { %v6030_v25 = vor.u32 %v6986_v16, %v6029_v15  ;;  %v6339_v15 = vld [vmem:[#allocation22 + $0x2f4] sm:$0xf0]  ;;  %v6345_v16 = vld [vmem:[#allocation22 + $0x2e0] sm:$0xf] }
 0x45d   :  { %vm2588_vm0 = vcmp.gt.f32.partialorder %v2583_v20, 0.0  ;;  %v2592_v29 = vmul.f32 0.2, %v2583_v20 }
 0x45e   :  { %4111 = vmatpush.bf16.msrb.mxu3 %v6030_v25 }
 0x45f   :  { %v2596_v42 = vsel %vm2588_vm0, %v2583_v20, %v2592_v29  ;;  %v6281_v20 = vld [vmem:[#allocation22 + $0x268] sm:$0xf] }
 0x460   :  { %v2568_v21 = vpop.f32.mrf.mxu3 }
 0x461   :  { %v2569_v55 = vadd.f32 %v2568_v21, %v2475_v24  ;;  %v7049_v21 = vld [vmem:[#allocation22 + $0x280] sm:$0xf0] }
 0x462   :  { %v2584_v27 = vpop.f32.mrf.mxu0  ;;  %v6282_v29 = vor.u32 %v7049_v21, %v6281_v20  ;;  %v7123_v20 = vld [vmem:[#allocation22 + $0x4d4] sm:$0xf]  ;;  %v6591_v21 = vld [vmem:[#allocation22 + $0x4ec] sm:$0xf0] }
 0x463   :  { %v2585_v30 = vadd.f32 %v2584_v27, %v2476_v14  ;;  %vm2587_vm2 = vcmp.gt.f32.partialorder %v2569_v55, 0.0  ;;  %v2591_v51 = vmul.f32 0.2, %v2569_v55  ;;  %v6087_v14 = vld [vmem:[#allocation22 + $0xfc] sm:$0xf0] }
 0x464   :  { %v6001_v27 = vld [vmem:[#allocation22 + $0x38] sm:$0xf]  ;;  %4124 = vmatpush.bf16.msra.mxu0 %v6282_v29 }
 0x465   :  { %vm2590_vm1 = vcmp.gt.f32.partialorder %v2585_v30, 0.0  ;;  %v2594_v40 = vmul.f32 0.2, %v2585_v30  ;;  %v2595_v1 = vsel %vm2587_vm2, %v2569_v55, %v2591_v51  ;;  %v6002_v39 = vor.u32 %v6979_v28, %v6001_v27  ;;  %v6031_v55 = vld [vmem:[#allocation22 + $0x8c] sm:$0xf0] }
 0x466   :  { %v6034_v48 = vor.u32 %v6983_v38, %v6031_v55  ;;  %v6003_v51 = vld [vmem:[#allocation22 + $0x54] sm:$0xf0]  ;;  %v6311_v27 = vld [vmem:[#allocation22 + $0x2bc] sm:$0xf0]  ;;  %v6317_v28 = vld [vmem:[#allocation22 + $0x2a8] sm:$0xf] }
 0x467   :  { %v2598_v43 = vsel %vm2590_vm1, %v2585_v30, %v2594_v40  ;;  %v6562_v30 = vor.u32 %v7119_v23, %v6561_v22  ;;  %v5973_v40 = vld [vmem:[#allocation22] sm:$0xf]  ;;  %4112 = vmatpush.bf16.msrb.mxu3 %v6002_v39  ;;  %v6594_v23 = vor.u32 %v7123_v20, %v6591_v21  ;;  %v6314_v29 = vor.u32 %v7053_v26, %v6311_v27  ;;  %v7084_v38 = vld [vmem:[#allocation22 + $0x398] sm:$0xf0]  ;;  %v7046_v55 = vld [vmem:[#allocation22 + $0x26c] sm:$0xf] }
 0x468   :  { %v7823_v46 = vpack.c.bf16 %v2598_v43, %v2596_v42  ;;  %v2570_v47 = vpop.f32.mrf.mxu3  ;;  %v6534_v42 = vor.u32 %v7112_v35, %v6533_v34  ;;  %v7074_v43 = vld [vmem:[#allocation22 + $0x34c] sm:$0xf]  ;;  %v5974_v49 = vor.u32 %v6972_v6, %v5973_v40  ;;  %4125 = vmatpush.bf16.msra.mxu0 %v6254_v37  ;;  %v6563_v34 = vld [vmem:[#allocation22 + $0x4b4] sm:$0xf0]  ;;  %v6283_v40 = vld [vmem:[#allocation22 + $0x284] sm:$0xf0] }
 0x469   :  { %v2571_v18 = vadd.f32 %v2570_v47, %v2475_v24  ;;  %v6090_v24 = vor.u32 %v6997_v12, %v6087_v14  ;;  %v6505_v47 = vld [vmem:[#allocation22 + $0x428] sm:$0xf]  ;;  %v7098_v12 = vld [vmem:[#allocation22 + $0x408] sm:$0xf0]  ;;  %v7060_v14 = vld [vmem:[#allocation22 + $0x2dc] sm:$0xf]  ;;  %v6566_v35 = vor.u32 %v7116_v33, %v6563_v34  ;;  %v6286_v37 = vor.u32 %v7046_v55, %v6283_v40 }
 0x46a   :  { %2951 = vmatmul.bf16.vlgmr.msra.gmra.mxu2 %v7823_v46  ;;  %2979 = vmatmul.bf16.vlgmr.msrb.gmra.mxu0 %v7823_v46  ;;  %v6506_v41 = vor.u32 %v7105_v32, %v6505_v47  ;;  %v6342_v17 = vor.u32 %v7060_v14, %v6339_v15  ;;  %v6177_v6 = vld [vmem:[#allocation22 + $0x190] sm:$0xf]  ;;  %v7109_v47 = vld [vmem:[#allocation22 + $0x464] sm:$0xf]  ;;  %v6535_v32 = vld [vmem:[#allocation22 + $0x47c] sm:$0xf0] }
 0x46b   :  { %vm2589_vm3 = vcmp.gt.f32.partialorder %v2571_v18, 0.0  ;;  %v2593_v56 = vmul.f32 0.2, %v2571_v18  ;;  %4148 = vmatpush.bf16.msra.mxu2 %v6174_v44  ;;  %v6395_v44 = vld [vmem:[#allocation22 + $0x364] sm:$0xf0]  ;;  %4113 = vmatpush.bf16.msrb.mxu3 %v5974_v49 }
 0x46c   :  { %4126 = vmatpush.bf16.msra.mxu0 %v6226_v52  ;;  %v7039_v49 = vld [vmem:[#allocation22 + $0x234] sm:$0xf]  ;;  %v7001_v14 = vld [vmem:[#allocation22 + $0x100] sm:$0xf0]  ;;  %v6205_v15 = vld [vmem:[#allocation22 + $0x1c8] sm:$0xf] }
 0x46d   :  { %v2597_v2 = vsel %vm2589_vm3, %v2571_v18, %v2593_v56  ;;  %v6398_v18 = vor.u32 %v7074_v43, %v6395_v44  ;;  %v6006_v56 = vor.u32 %v6976_v50, %v6003_v51  ;;  %v6289_v43 = vld [vmem:[#allocation22 + $0x270] sm:$0xf]  ;;  %v7050_v44 = vld [vmem:[#allocation22 + $0x288] sm:$0xf0]  ;;  %v6149_v51 = vld [vmem:[#allocation22 + $0x158] sm:$0xf] }
 0x46e   :  { %v7828_v7 = vpack.c.bf16 %v2597_v2, %v2595_v1  ;;  %v6373_v1 = vld [vmem:[#allocation22 + $0x318] sm:$0xf]  ;;  %v7071_v2 = vld [vmem:[#allocation22 + $0x330] sm:$0xf0]  ;;  %v6290_v45 = vor.u32 %v7050_v44, %v6289_v43  ;;  %v6255_v50 = vld [vmem:[#allocation22 + $0x24c] sm:$0xf0] }
 0x46f   :  { %4149 = vmatpush.bf16.msra.mxu2 %v6146_v57  ;;  %v5975_v57 = vld [vmem:[#allocation22 + $0x1c] sm:$0xf0]  ;;  %v6374_v3 = vor.u32 %v7071_v2, %v6373_v1  ;;  %v7015_v52 = vld [vmem:[#allocation22 + $0x170] sm:$0xf0]  ;;  %v7008_v1 = vld [vmem:[#allocation22 + $0x138] sm:$0xf0] }
 0x470   :  { %2937 = vmatmul.bf16.vlgmr.msra.gmra.mxu1 %v7828_v7  ;;  %2965 = vmatmul.bf16.vlgmr.msra.gmra.mxu3 %v7828_v7  ;;  %v6150_v54 = vor.u32 %v7015_v52, %v6149_v51  ;;  %v6233_v2 = vld [vmem:[#allocation22 + $0x200] sm:$0xf]  ;;  %v7088_v20 = vld [vmem:[#allocation22 + $0x3bc] sm:$0xf]  ;;  %v6451_v21 = vld [vmem:[#allocation22 + $0x3d4] sm:$0xf0] }
 0x471   :  { %4134 = vmatpush.bf16.msra.mxu1 %v6618_v4  ;;  %4162 = vmatpush.bf16.msra.mxu3 %v6398_v18  ;;  %v6197_v4 = vld [vmem:[#allocation22 + $0x1c0] sm:$0xf]  ;;  %v6258_v18 = vor.u32 %v7039_v49, %v6255_v50  ;;  %v6980_v33 = vld [vmem:[#allocation22 + $0x58] sm:$0xf0]  ;;  %v7837_v34 = vld [vmem:[%s7938_s14] sm:$0x7] }
 0x472   :  { %v6423_v26 = vld [vmem:[#allocation22 + $0x39c] sm:$0xf0]  ;;  %v2668_v43 = vperm.slane %v7837_v34, 1  ;;  %v6625_v51 = vld [vmem:[#allocation22 + $0x510] sm:$0xf] }
 0x473   :  { %4150 = vmatpush.bf16.msra.mxu2 %v6118_v11  ;;  %v6477_v11 = vld [vmem:[#allocation22 + $0x3f0] sm:$0xf]  ;;  %v7131_v52 = vld [vmem:[#allocation22 + $0x514] sm:$0xf] }
 0x474   :  { %v6478_v13 = vor.u32 %v7098_v12, %v6477_v11  ;;  %v6199_v11 = vld [vmem:[#allocation22 + $0x1dc] sm:$0xf0]  ;;  %v6093_v12 = vld [vmem:[#allocation22 + $0xe8] sm:$0xf] }
 0x475   :  { %4135 = vmatpush.bf16.msra.mxu1 %v6590_v19  ;;  %4163 = vmatpush.bf16.msra.mxu3 %v6370_v58  ;;  %v7064_v19 = vld [vmem:[#allocation22 + $0x2f8] sm:$0xf0] }
 0x476   :  { %v6346_v22 = vor.u32 %v7064_v19, %v6345_v16  ;;  %v6094_v16 = vor.u32 %v7001_v14, %v6093_v12  ;;  %v7019_v12 = vld [vmem:[#allocation22 + $0x194] sm:$0xf] }
 0x477   :  { %4151 = vmatpush.bf16.msra.mxu2 %v6090_v24  ;;  %v6449_v24 = vld [vmem:[#allocation22 + $0x3b8] sm:$0xf] }
 0x478   :  { %v6450_v25 = vor.u32 %v7091_v60, %v6449_v24  ;;  %v6994_v24 = vld [vmem:[#allocation22 + $0xc8] sm:$0xf0] }
 0x479   :  { %4136 = vmatpush.bf16.msra.mxu1 %v6562_v30  ;;  %4164 = vmatpush.bf16.msra.mxu3 %v6342_v17  ;;  %v7057_v30 = vld [vmem:[#allocation22 + $0x2c0] sm:$0xf0] }
 0x47a   :  { %3007 = vmatmul.bf16.vlgmr.msrb.gmra.mxu2 %v7823_v46  ;;  %v6969_v46 = vld [vmem:[#allocation22 + $0x4] sm:$0xf]  ;;  %v6318_v31 = vor.u32 %v7057_v30, %v6317_v28  ;;  %v6037_v28 = vld [vmem:[#allocation22 + $0x78] sm:$0xf] }
 0x47b   :  { %4152 = vmatpush.bf16.msra.mxu2 %v6062_v36  ;;  %v5978_v63 = vor.u32 %v6969_v46, %v5975_v57  ;;  %v6421_v36 = vld [vmem:[#allocation22 + $0x380] sm:$0xf]  ;;  %v7102_v46 = vld [vmem:[#allocation22 + $0x42c] sm:$0xf]  ;;  %v6507_v57 = vld [vmem:[#allocation22 + $0x444] sm:$0xf0] }
 0x47c   :  { %v6422_v39 = vor.u32 %v7084_v38, %v6421_v36  ;;  %v6510_v58 = vor.u32 %v7102_v46, %v6507_v57  ;;  %v7029_v17 = vld [vmem:[#allocation22 + $0x1e0] sm:$0xf0]  ;;  %v2667_v36 = vperm.slane %v7837_v34, 0  ;;  %v5981_v38 = vld [vmem:[#allocation22 + $0x8] sm:$0xf]  ;;  %v2669_v46 = vperm.slane %v7837_v34, 2 }
 0x47d   :  { %4137 = vmatpush.bf16.msra.mxu1 %v6534_v42  ;;  %4165 = vmatpush.bf16.msra.mxu3 %v6314_v29  ;;  %v7022_v42 = vld [vmem:[#allocation22 + $0x1a8] sm:$0xf0]  ;;  %v6206_v19 = vor.u32 %v7029_v17, %v6205_v15  ;;  %v6987_v29 = vld [vmem:[#allocation22 + $0x90] sm:$0xf0]  ;;  %v6569_v17 = vld [vmem:[#allocation22 + $0x4a0] sm:$0xf] }
 0x47e   :  { %v6178_v62 = vor.u32 %v7022_v42, %v6177_v6  ;;  %v6038_v30 = vor.u32 %v6987_v29, %v6037_v28  ;;  %v7110_v34 = vld [vmem:[#allocation22 + $0x46c] sm:$0xf] }
 0x47f   :  { %4153 = vmatpush.bf16.msra.mxu2 %v6034_v48  ;;  %v6538_v48 = vor.u32 %v7109_v47, %v6535_v32 }
 0x480   :  { %2993 = vmatmul.bf16.vlgmr.msrb.gmra.mxu1 %v7828_v7  ;;  %v6198_v7 = vor.u32 %v7028_v5, %v6197_v4 }
 0x481   :  { %4138 = vmatpush.bf16.msra.mxu1 %v6506_v41  ;;  %4166 = vmatpush.bf16.msra.mxu3 %v6286_v37  ;;  %v6261_v41 = vld [vmem:[#allocation22 + $0x238] sm:$0xf] }
 0x482   :  { %4127 = vmatpush.bf16.msra.mxu0 %v6198_v7  ;;  %v7095_v7 = vld [vmem:[#allocation22 + $0x3f4] sm:$0xf] }
 0x483   :  { %4154 = vmatpush.bf16.msra.mxu2 %v6006_v56  ;;  %v6262_v56 = vor.u32 %v7043_v53, %v6261_v41  ;;  %v6482_v9 = vor.u32 %v7095_v7, %v6479_v8  ;;  %v6627_v41 = vld [vmem:[#allocation22 + $0x52c] sm:$0xf0]  ;;  %v7124_v7 = vld [vmem:[#allocation22 + $0x4dc] sm:$0xf]  ;;  %v6599_v8 = vld [vmem:[#allocation22 + $0x4f4] sm:$0xf0] }
 0x485   :  { %4139 = vmatpush.bf16.msra.mxu1 %v6478_v13  ;;  %4167 = vmatpush.bf16.msra.mxu3 %v6258_v18  ;;  %v7134_v18 = vld [vmem:[#allocation22 + $0x528] sm:$0xf0] }
 0x486   :  { %4176 = vmatpush.bf16.msrb.mxu0 %v6622_v10  ;;  %v7025_v10 = vld [vmem:[#allocation22 + $0x1c4] sm:$0xf]  ;;  %v6626_v57 = vor.u32 %v7134_v18, %v6625_v51  ;;  %v6998_v51 = vld [vmem:[#allocation22 + $0xec] sm:$0xf]  ;;  %v6095_v18 = vld [vmem:[#allocation22 + $0x104] sm:$0xf0] }
 0x487   :  { %4155 = vmatpush.bf16.msra.mxu2 %v5978_v63  ;;  %v6121_v63 = vld [vmem:[#allocation22 + $0x120] sm:$0xf]  ;;  %v6202_v13 = vor.u32 %v7025_v10, %v6199_v11 }
 0x488   :  { %v6122_v4 = vor.u32 %v7008_v1, %v6121_v63  ;;  %v6597_v1 = vld [vmem:[#allocation22 + $0x4d8] sm:$0xf] }
 0x489   :  { %4140 = vmatpush.bf16.msra.mxu1 %v6450_v25  ;;  %v7081_v25 = vld [vmem:[#allocation22 + $0x384] sm:$0xf] }
 0x48a   :  { %4177 = vmatpush.bf16.msrb.mxu0 %v6594_v23  ;;  %v6065_v23 = vld [vmem:[#allocation22 + $0xb0] sm:$0xf]  ;;  %v6426_v27 = vor.u32 %v7081_v25, %v6423_v26  ;;  %v7012_v25 = vld [vmem:[#allocation22 + $0x15c] sm:$0xf]  ;;  %v6151_v26 = vld [vmem:[#allocation22 + $0x174] sm:$0xf0] }
 0x48b   :  { %4204 = vmatpush.bf16.msrb.mxu2 %v6402_v0  ;;  %v6230_v0 = vor.u32 %v7032_v59, %v6227_v61  ;;  %v6066_v60 = vor.u32 %v6994_v24, %v6065_v23 }
 0x48d   :  { %4141 = vmatpush.bf16.msra.mxu1 %v6422_v39  ;;  %4168 = vmatpush.bf16.msra.mxu3 %v6230_v0  ;;  %v6973_v39 = vld [vmem:[#allocation22 + $0x20] sm:$0xf0]  ;;  %v6630_v0 = vor.u32 %v7131_v52, %v6627_v41 }
 0x48e   :  { %4178 = vmatpush.bf16.msrb.mxu0 %v6566_v35  ;;  %v5982_v6 = vor.u32 %v6973_v39, %v5981_v38  ;;  %v6154_v38 = vor.u32 %v7012_v25, %v6151_v26  ;;  %v6319_v25 = vld [vmem:[#allocation22 + $0x2c4] sm:$0xf0]  ;;  %v7082_v26 = vld [vmem:[#allocation22 + $0x38c] sm:$0xf] }
 0x48f   :  { %4205 = vmatpush.bf16.msrb.mxu2 %v6374_v3  ;;  %v7036_v3 = vld [vmem:[#allocation22 + $0x218] sm:$0xf0] }
 0x490   :  { %v6234_v5 = vor.u32 %v7036_v3, %v6233_v2  ;;  %v7127_v2 = vld [vmem:[#allocation22 + $0x4f0] sm:$0xf0] }
 0x491   :  { %4190 = vmatpush.bf16.msrb.mxu1 %v6178_v62  ;;  %4169 = vmatpush.bf16.msra.mxu3 %v6202_v13  ;;  %v6598_v11 = vor.u32 %v7127_v2, %v6597_v1  ;;  %v6179_v13 = vld [vmem:[#allocation22 + $0x1ac] sm:$0xf0]  ;;  %v6487_v1 = vld [vmem:[#allocation22 + $0x414] sm:$0xf0] }
 0x492   :  { %4179 = vmatpush.bf16.msrb.mxu0 %v6538_v48  ;;  %v6182_v24 = vor.u32 %v7019_v12, %v6179_v13  ;;  %v6347_v12 = vld [vmem:[#allocation22 + $0x2fc] sm:$0xf0]  ;;  %v7089_v13 = vld [vmem:[#allocation22 + $0x3c4] sm:$0xf] }
 0x493   :  { %4206 = vmatpush.bf16.msrb.mxu2 %v6346_v22  ;;  %v6454_v22 = vor.u32 %v7088_v20, %v6451_v21  ;;  %v7117_v20 = vld [vmem:[#allocation22 + $0x4a4] sm:$0xf]  ;;  %v6571_v21 = vld [vmem:[#allocation22 + $0x4bc] sm:$0xf0] }
 0x494   :  { %v6574_v29 = vor.u32 %v7117_v20, %v6571_v21  ;;  %v6429_v20 = vld [vmem:[#allocation22 + $0x388] sm:$0xf] }
 0x495   :  { %4191 = vmatpush.bf16.msrb.mxu1 %v6150_v54 }
 0x496   :  { %4180 = vmatpush.bf16.msrb.mxu0 %v6510_v58 }
 0x497   :  { %4207 = vmatpush.bf16.msrb.mxu2 %v6318_v31  ;;  %v6009_v31 = vld [vmem:[#allocation22 + $0x40] sm:$0xf] }
 0x498   :  { %v6010_v35 = vor.u32 %v6980_v33, %v6009_v31  ;;  %v7113_v33 = vld [vmem:[#allocation22 + $0x480] sm:$0xf0] }
 0x499   :  { %4192 = vmatpush.bf16.msrb.mxu1 %v6122_v4 }
 0x49a   :  { %4181 = vmatpush.bf16.msrb.mxu0 %v6482_v9 }
 0x49b   :  { %4208 = vmatpush.bf16.msrb.mxu2 %v6290_v45 }
 0x49d   :  { %4193 = vmatpush.bf16.msrb.mxu1 %v6094_v16  ;;  %v6602_v16 = vor.u32 %v7124_v7, %v6599_v8 }
 0x49e   :  { %4182 = vmatpush.bf16.msrb.mxu0 %v6454_v22 }
 0x49f   :  { %4209 = vmatpush.bf16.msrb.mxu2 %v6262_v56 }
 0x4a1   :  { %4194 = vmatpush.bf16.msrb.mxu1 %v6066_v60 }
 0x4a2   :  { %4183 = vmatpush.bf16.msrb.mxu0 %v6426_v27 }
 0x4a3   :  { %4210 = vmatpush.bf16.msrb.mxu2 %v6234_v5 }
 0x4a5   :  { %4195 = vmatpush.bf16.msrb.mxu1 %v6038_v30  ;;  %v6541_v30 = vld [vmem:[#allocation22 + $0x468] sm:$0xf] }
 0x4a7   :  { %4211 = vmatpush.bf16.msrb.mxu2 %v6206_v19  ;;  %v7120_v19 = vld [vmem:[#allocation22 + $0x4b8] sm:$0xf0] }
 0x4a8   :  { %v6570_v28 = vor.u32 %v7120_v19, %v6569_v17  ;;  %v6984_v17 = vld [vmem:[#allocation22 + $0x7c] sm:$0xf]  ;;  %v6039_v19 = vld [vmem:[#allocation22 + $0x94] sm:$0xf0] }
 0x4a9   :  { %4196 = vmatpush.bf16.msrb.mxu1 %v6010_v35  ;;  %v6543_v35 = vld [vmem:[#allocation22 + $0x484] sm:$0xf0] }
 0x4ad   :  { %4197 = vmatpush.bf16.msrb.mxu1 %v5982_v6  ;;  %v6513_v6 = vld [vmem:[#allocation22 + $0x430] sm:$0xf] }
 0x4e7   :  { %v2980_v42 = vpop.f32.mrf.mxu0 }
 0x4ed   :  { %v2938_v55 = vpop.f32.mrf.mxu1  ;;  %v2952_v40 = vpop.f32.mrf.mxu2 }
 0x4ee   :  { %v2939_v37 = vadd.f32 %v2938_v55, %v2667_v36  ;;  %v7005_v55 = vld [vmem:[#allocation22 + $0x124] sm:$0xf] }
 0x4ef   :  { %v2982_v59 = vpop.f32.mrf.mxu0 }
 0x4f0   :  { %v2953_v62 = vadd.f32 %v2952_v40, %v2939_v37  ;;  %v6123_v40 = vld [vmem:[#allocation22 + $0x13c] sm:$0xf0] }
 0x4f2   :  { %v3019_v49 = vmul.f32 0.2, %v2953_v62  ;;  %vm3013_vm4 = vcmp.gt.f32.partialorder %v2953_v62, 0.0 }
 0x4f3   :  { %v2966_v44 = vpop.f32.mrf.mxu3 }
 0x4f4   :  { %v2967_v32 = vadd.f32 %v2966_v44, %v2668_v43  ;;  %v3025_v58 = vsel %vm3013_vm4, %v2953_v62, %v3019_v49  ;;  %v6546_v44 = vor.u32 %v7110_v34, %v6543_v35  ;;  %v7106_v62 = vld [vmem:[#allocation22 + $0x448] sm:$0xf0]  ;;  %v6126_v49 = vor.u32 %v7005_v55, %v6123_v40  ;;  %v6977_v35 = vld [vmem:[#allocation22 + $0x44] sm:$0xf] }
 0x4f5   :  { %v2940_v45 = vpop.f32.mrf.mxu1  ;;  %v2954_v47 = vpop.f32.mrf.mxu2 }
 0x4f6   :  { %v2941_v48 = vadd.f32 %v2940_v45, %v2667_v36  ;;  %v2981_v53 = vadd.f32 %v2980_v42, %v2967_v32  ;;  %v7075_v45 = vld [vmem:[#allocation22 + $0x354] sm:$0xf] }
 0x4f7   :  { %v7103_v32 = vld [vmem:[#allocation22 + $0x434] sm:$0xf] }
 0x4f8   :  { %v2955_v50 = vadd.f32 %v2954_v47, %v2941_v48  ;;  %v3020_v9 = vmul.f32 0.2, %v2981_v53  ;;  %vm3014_vm6 = vcmp.gt.f32.partialorder %v2981_v53, 0.0  ;;  %v6403_v47 = vld [vmem:[#allocation22 + $0x36c] sm:$0xf0] }
 0x4fa   :  { %vm3016_vm5 = vcmp.gt.f32.partialorder %v2955_v50, 0.0  ;;  %v3022_v54 = vmul.f32 0.2, %v2955_v50  ;;  %v3026_v22 = vsel %vm3014_vm6, %v2981_v53, %v3020_v9  ;;  %v6514_v53 = vor.u32 %v7106_v62, %v6513_v6  ;;  %v6457_v9 = vld [vmem:[#allocation22 + $0x3c0] sm:$0xf] }
 0x4fb   :  { %v2968_v56 = vpop.f32.mrf.mxu3  ;;  %v7047_v6 = vld [vmem:[#allocation22 + $0x274] sm:$0xf]  ;;  %v7013_v62 = vld [vmem:[#allocation22 + $0x164] sm:$0xf] }
 0x4fc   :  { %v3028_v61 = vsel %vm3016_vm5, %v2955_v50, %v3022_v54  ;;  %v2969_v63 = vadd.f32 %v2968_v56, %v2668_v43  ;;  %v6542_v43 = vor.u32 %v7113_v33, %v6541_v30  ;;  %v6515_v50 = vld [vmem:[#allocation22 + $0x44c] sm:$0xf0]  ;;  %v6406_v56 = vor.u32 %v7075_v45, %v6403_v47  ;;  %v7023_v30 = vld [vmem:[#allocation22 + $0x1b0] sm:$0xf0]  ;;  %v6187_v33 = vld [vmem:[#allocation22 + $0x1b4] sm:$0xf0] }
 0x4fd   :  { %v7842_v3 = vpack.c.bf16 %v3028_v61, %v3025_v58  ;;  %v2994_v4 = vpop.f32.mrf.mxu1  ;;  %v3008_v5 = vpop.f32.mrf.mxu2  ;;  %v7099_v58 = vld [vmem:[#allocation22 + $0x410] sm:$0xf0]  ;;  %v6098_v61 = vor.u32 %v6998_v51, %v6095_v18  ;;  %v6159_v45 = vld [vmem:[#allocation22 + $0x17c] sm:$0xf0]  ;;  %v6970_v47 = vld [vmem:[#allocation22 + $0xc] sm:$0xf] }
 0x4fe   :  { %v2983_v10 = vadd.f32 %v2982_v59, %v2969_v63  ;;  %v2995_v15 = vadd.f32 %v2994_v4, %v2669_v46  ;;  %v7068_v59 = vld [vmem:[#allocation22 + $0x31c] sm:$0xf]  ;;  %v6375_v63 = vld [vmem:[#allocation22 + $0x334] sm:$0xf0]  ;;  %v6991_v4 = vld [vmem:[#allocation22 + $0xb4] sm:$0xf]  ;;  %v6162_v18 = vor.u32 %v7013_v62, %v6159_v45 }
 0x4ff   :  { %4114 = vmatmul.bf16.vlgmr.msrb.gmra.mxu3 %v7842_v3  ;;  %4156 = vmatmul.bf16.vlgmr.msra.gmra.mxu2 %v7842_v3  ;;  %v6378_v7 = vor.u32 %v7068_v59, %v6375_v63  ;;  %v6381_v63 = vld [vmem:[#allocation22 + $0x320] sm:$0xf]  ;;  %v6981_v45 = vld [vmem:[#allocation22 + $0x60] sm:$0xf0] }
 0x500   :  { %vm3017_vm7 = vcmp.gt.f32.partialorder %v2983_v10, 0.0  ;;  %v3023_v14 = vmul.f32 0.2, %v2983_v10  ;;  %4218 = vmatpush.bf16.msrb.mxu3 %v6626_v57  ;;  %4260 = vmatpush.bf16.msra.mxu2 %v6630_v0  ;;  %v3009_v27 = vadd.f32 %v3008_v5, %v2995_v15  ;;  %v6485_v57 = vld [vmem:[#allocation22 + $0x3f8] sm:$0xf] }
 0x501   :  { %v7096_v0 = vld [vmem:[#allocation22 + $0x3fc] sm:$0xf]  ;;  %v6486_v2 = vor.u32 %v7099_v58, %v6485_v57  ;;  %v6067_v5 = vld [vmem:[#allocation22 + $0xcc] sm:$0xf0]  ;;  %v7006_v57 = vld [vmem:[#allocation22 + $0x12c] sm:$0xf] }
 0x502   :  { %v3029_v23 = vsel %vm3017_vm7, %v2983_v10, %v3023_v14  ;;  %v3021_v37 = vmul.f32 0.2, %v3009_v27  ;;  %vm3015_vm8 = vcmp.gt.f32.partialorder %v3009_v27, 0.0  ;;  %v6490_v8 = vor.u32 %v7096_v0, %v6487_v1  ;;  %v7092_v10 = vld [vmem:[#allocation22 + $0x3d8] sm:$0xf0] }
 0x503   :  { %v7847_v60 = vpack.c.bf16 %v3029_v23, %v3026_v22  ;;  %v6459_v14 = vld [vmem:[#allocation22 + $0x3dc] sm:$0xf0]  ;;  %v6070_v15 = vor.u32 %v6991_v4, %v6067_v5  ;;  %v7085_v23 = vld [vmem:[#allocation22 + $0x3a0] sm:$0xf0]  ;;  %v6131_v58 = vld [vmem:[#allocation22 + $0x144] sm:$0xf0] }
 0x504   :  { %4219 = vmatpush.bf16.msrb.mxu3 %v6598_v11  ;;  %4261 = vmatpush.bf16.msra.mxu2 %v6602_v16  ;;  %v3027_v52 = vsel %vm3015_vm8, %v3009_v27, %v3021_v37  ;;  %v7061_v11 = vld [vmem:[#allocation22 + $0x2e4] sm:$0xf]  ;;  %v6458_v16 = vor.u32 %v7092_v10, %v6457_v9  ;;  %v6462_v22 = vor.u32 %v7089_v13, %v6459_v14  ;;  %v6431_v27 = vld [vmem:[#allocation22 + $0x3a4] sm:$0xf0]  ;;  %v6291_v37 = vld [vmem:[#allocation22 + $0x28c] sm:$0xf0] }
 0x505   :  { %v2996_v31 = vpop.f32.mrf.mxu1  ;;  %4128 = vmatmul.bf16.vlgmr.msra.gmra.mxu0 %v7847_v60  ;;  %v3010_v39 = vpop.f32.mrf.mxu2  ;;  %v6350_v21 = vor.u32 %v7061_v11, %v6347_v12  ;;  %v6430_v34 = vor.u32 %v7085_v23, %v6429_v20  ;;  %v7072_v0 = vld [vmem:[#allocation22 + $0x338] sm:$0xf0]  ;;  %v7033_v4 = vld [vmem:[#allocation22 + $0x204] sm:$0xf]  ;;  %v6235_v5 = vld [vmem:[#allocation22 + $0x21c] sm:$0xf0] }
 0x506   :  { %v2997_v36 = vadd.f32 %v2996_v31, %v2669_v46  ;;  %4232 = vmatpush.bf16.msra.mxu0 %v6182_v24  ;;  %v6518_v46 = vor.u32 %v7103_v32, %v6515_v50  ;;  %v7054_v24 = vld [vmem:[#allocation22 + $0x2ac] sm:$0xf]  ;;  %v7020_v31 = vld [vmem:[#allocation22 + $0x19c] sm:$0xf]  ;;  %v5983_v32 = vld [vmem:[#allocation22 + $0x24] sm:$0xf0]  ;;  %v6382_v11 = vor.u32 %v7072_v0, %v6381_v63  ;;  %v6238_v12 = vor.u32 %v7033_v4, %v6235_v5 }
 0x507   :  { %v6190_v40 = vor.u32 %v7020_v31, %v6187_v33  ;;  %v7079_v50 = vld [vmem:[#allocation22 + $0x370] sm:$0xf0]  ;;  %v6103_v10 = vld [vmem:[#allocation22 + $0x10c] sm:$0xf0]  ;;  %v6353_v13 = vld [vmem:[#allocation22 + $0x2e8] sm:$0xf] }
 0x508   :  { %v3011_v42 = vadd.f32 %v3010_v39, %v2997_v36  ;;  %4220 = vmatpush.bf16.msrb.mxu3 %v6570_v28  ;;  %4262 = vmatpush.bf16.msra.mxu2 %v6574_v29  ;;  %v6185_v28 = vld [vmem:[#allocation22 + $0x198] sm:$0xf]  ;;  %v6042_v29 = vor.u32 %v6984_v17, %v6039_v19  ;;  %v6011_v36 = vld [vmem:[#allocation22 + $0x5c] sm:$0xf0]  ;;  %v6434_v39 = vor.u32 %v7082_v26, %v6431_v27  ;;  %v6999_v9 = vld [vmem:[#allocation22 + $0xf4] sm:$0xf] }
 0x509   :  { %v6186_v55 = vor.u32 %v7023_v30, %v6185_v28  ;;  %v7065_v14 = vld [vmem:[#allocation22 + $0x300] sm:$0xf0]  ;;  %v7026_v17 = vld [vmem:[#allocation22 + $0x1cc] sm:$0xf]  ;;  %v6207_v19 = vld [vmem:[#allocation22 + $0x1e4] sm:$0xf0] }
 0x50a   :  { %vm3018_vm9 = vcmp.gt.f32.partialorder %v3011_v42, 0.0  ;;  %v3024_v48 = vmul.f32 0.2, %v3011_v42  ;;  %4233 = vmatpush.bf16.msra.mxu0 %v6154_v38  ;;  %v6322_v38 = vor.u32 %v7054_v24, %v6319_v25  ;;  %v6073_v20 = vld [vmem:[#allocation22 + $0xb8] sm:$0xf]  ;;  %v6354_v24 = vor.u32 %v7065_v14, %v6353_v13 }
 0x50b   :  { %v7135_v23 = vld [vmem:[#allocation22 + $0x530] sm:$0xf0]  ;;  %v6992_v25 = vld [vmem:[#allocation22 + $0xbc] sm:$0xf]  ;;  %v6075_v26 = vld [vmem:[#allocation22 + $0xd4] sm:$0xf0]  ;;  %v6210_v27 = vor.u32 %v7026_v17, %v6207_v19 }
 0x50c   :  { %v3030_v41 = vsel %vm3018_vm9, %v3011_v42, %v3024_v48  ;;  %4221 = vmatpush.bf16.msrb.mxu3 %v6542_v43  ;;  %4263 = vmatpush.bf16.msra.mxu2 %v6546_v44  ;;  %v6157_v42 = vld [vmem:[#allocation22 + $0x160] sm:$0xf]  ;;  %v6014_v43 = vor.u32 %v6977_v35, %v6011_v36  ;;  %v7016_v44 = vld [vmem:[#allocation22 + $0x178] sm:$0xf0]  ;;  %v6294_v48 = vor.u32 %v7047_v6, %v6291_v37  ;;  %v6325_v28 = vld [vmem:[#allocation22 + $0x2b0] sm:$0xf] }
 0x50d   :  { %v7850_v54 = vpack.c.bf16 %v3030_v41, %v3027_v52  ;;  %v6158_v51 = vor.u32 %v7016_v44, %v6157_v42  ;;  %v7040_v52 = vld [vmem:[#allocation22 + $0x23c] sm:$0xf]  ;;  %v6263_v41 = vld [vmem:[#allocation22 + $0x254] sm:$0xf0]  ;;  %v6045_v33 = vld [vmem:[#allocation22 + $0x80] sm:$0xf] }
 0x50e   :  { %4234 = vmatpush.bf16.msra.mxu0 %v6126_v49  ;;  %v6409_v49 = vld [vmem:[#allocation22 + $0x358] sm:$0xf]  ;;  %v6988_v35 = vld [vmem:[#allocation22 + $0x98] sm:$0xf0]  ;;  %v6605_v36 = vld [vmem:[#allocation22 + $0x4e0] sm:$0xf] }
 0x50f   :  { %4142 = vmatmul.bf16.vlgmr.msra.gmra.mxu1 %v7850_v54  ;;  %4170 = vmatmul.bf16.vlgmr.msra.gmra.mxu3 %v7847_v60  ;;  %v6410_v59 = vor.u32 %v7079_v50, %v6409_v49  ;;  %v6297_v6 = vld [vmem:[#allocation22 + $0x278] sm:$0xf]  ;;  %v7051_v37 = vld [vmem:[#allocation22 + $0x290] sm:$0xf0]  ;;  %v6046_v42 = vor.u32 %v6988_v35, %v6045_v33  ;;  %v6017_v44 = vld [vmem:[#allocation22 + $0x48] sm:$0xf] }
 0x510   :  { %4212 = vmatmul.bf16.vlgmr.msrb.gmra.mxu2 %v7847_v60  ;;  %4222 = vmatpush.bf16.msrb.mxu3 %v6514_v53  ;;  %v6129_v53 = vld [vmem:[#allocation22 + $0x128] sm:$0xf]  ;;  %v6978_v49 = vld [vmem:[#allocation22 + $0x4c] sm:$0xf]  ;;  %v7076_v0 = vld [vmem:[#allocation22 + $0x35c] sm:$0xf] }
 0x511   :  { %4246 = vmatpush.bf16.msra.mxu1 %v6406_v56  ;;  %4264 = vmatpush.bf16.msra.mxu2 %v6518_v46  ;;  %v5986_v56 = vor.u32 %v6970_v47, %v5983_v32  ;;  %v7009_v46 = vld [vmem:[#allocation22 + $0x140] sm:$0xf0]  ;;  %v6577_v47 = vld [vmem:[#allocation22 + $0x4a8] sm:$0xf]  ;;  %v7080_v4 = vld [vmem:[#allocation22 + $0x378] sm:$0xf0] }
 0x512   :  { %4235 = vmatpush.bf16.msra.mxu0 %v6098_v61  ;;  %v6266_v61 = vor.u32 %v7040_v52, %v6263_v41  ;;  %v6130_v1 = vor.u32 %v7009_v46, %v6129_v53  ;;  %v7121_v32 = vld [vmem:[#allocation22 + $0x4c0] sm:$0xf0]  ;;  %v6019_v50 = vld [vmem:[#allocation22 + $0x64] sm:$0xf0]  ;;  %v6018_v52 = vor.u32 %v6981_v45, %v6017_v44  ;;  %v5989_v53 = vld [vmem:[#allocation22 + $0x10] sm:$0xf] }
 0x513   :  { %v6578_v41 = vor.u32 %v7121_v32, %v6577_v47  ;;  %v6549_v46 = vld [vmem:[#allocation22 + $0x470] sm:$0xf]  ;;  %v6241_v5 = vld [vmem:[#allocation22 + $0x208] sm:$0xf]  ;;  %v7107_v13 = vld [vmem:[#allocation22 + $0x450] sm:$0xf0] }
 0x514   :  { %4223 = vmatpush.bf16.msrb.mxu3 %v6486_v2  ;;  %v6134_v2 = vor.u32 %v7006_v57, %v6131_v58  ;;  %v6022_v57 = vor.u32 %v6978_v49, %v6019_v50  ;;  %v7114_v58 = vld [vmem:[#allocation22 + $0x488] sm:$0xf0]  ;;  %v6383_v17 = vld [vmem:[#allocation22 + $0x33c] sm:$0xf0]  ;;  %v6389_v19 = vld [vmem:[#allocation22 + $0x328] sm:$0xf] }
 0x515   :  { %4247 = vmatpush.bf16.msra.mxu1 %v6378_v7  ;;  %4265 = vmatpush.bf16.msra.mxu2 %v6490_v8  ;;  %v6101_v7 = vld [vmem:[#allocation22 + $0xf0] sm:$0xf]  ;;  %v7002_v8 = vld [vmem:[#allocation22 + $0x108] sm:$0xf0]  ;;  %v6355_v33 = vld [vmem:[#allocation22 + $0x304] sm:$0xf0] }
 0x516   :  { %4184 = vmatmul.bf16.vlgmr.msrb.gmra.mxu0 %v7850_v54  ;;  %v6361_v35 = vld [vmem:[#allocation22 + $0x2f0] sm:$0xf]  ;;  %v6333_v45 = vld [vmem:[#allocation22 + $0x2b8] sm:$0xf]  ;;  %v7059_v47 = vld [vmem:[#allocation22 + $0x2d0] sm:$0xf0] }
 0x517   :  { %4236 = vmatpush.bf16.msra.mxu0 %v6070_v15  ;;  %v6102_v15 = vor.u32 %v7002_v8, %v6101_v7  ;;  %v7037_v7 = vld [vmem:[#allocation22 + $0x220] sm:$0xf0]  ;;  %v6327_v44 = vld [vmem:[#allocation22 + $0x2cc] sm:$0xf0]  ;;  %v6579_v49 = vld [vmem:[#allocation22 + $0x4c4] sm:$0xf0] }
 0x518   :  { %4224 = vmatpush.bf16.msrb.mxu3 %v6458_v16  ;;  %v6106_v16 = vor.u32 %v6999_v9, %v6103_v10  ;;  %v6550_v9 = vor.u32 %v7114_v58, %v6549_v46  ;;  %v7024_v46 = vld [vmem:[#allocation22 + $0x1b8] sm:$0xf0]  ;;  %v6305_v58 = vld [vmem:[#allocation22 + $0x280] sm:$0xf] }
 0x519   :  { %4248 = vmatpush.bf16.msra.mxu1 %v6350_v21  ;;  %4266 = vmatpush.bf16.msra.mxu2 %v6462_v22  ;;  %v6995_v21 = vld [vmem:[#allocation22 + $0xd0] sm:$0xf0]  ;;  %v6633_v22 = vld [vmem:[#allocation22 + $0x518] sm:$0xf] }
 0x51a   :  { %v6074_v30 = vor.u32 %v6995_v21, %v6073_v20  ;;  %v6634_v31 = vor.u32 %v7135_v23, %v6633_v22  ;;  %v7073_v20 = vld [vmem:[#allocation22 + $0x340] sm:$0xf0]  ;;  %v6213_v21 = vld [vmem:[#allocation22 + $0x1d0] sm:$0xf]  ;;  %v7030_v22 = vld [vmem:[#allocation22 + $0x1e8] sm:$0xf0] }
 0x51b   :  { %4237 = vmatpush.bf16.msra.mxu0 %v6042_v29  ;;  %v7058_v29 = vld [vmem:[#allocation22 + $0x2c8] sm:$0xf0] }
 0x51c   :  { %4225 = vmatpush.bf16.msrb.mxu3 %v6430_v34  ;;  %v6078_v34 = vor.u32 %v6992_v25, %v6075_v26  ;;  %v6635_v25 = vld [vmem:[#allocation22 + $0x534] sm:$0xf0] }
 0x51d   :  { %4249 = vmatpush.bf16.msra.mxu1 %v6322_v38  ;;  %4267 = vmatpush.bf16.msra.mxu2 %v6434_v39  ;;  %v7128_v38 = vld [vmem:[#allocation22 + $0x4f8] sm:$0xf0]  ;;  %v6326_v39 = vor.u32 %v7058_v29, %v6325_v28  ;;  %v6390_v29 = vor.u32 %v7073_v20, %v6389_v19  ;;  %v6243_v20 = vld [vmem:[#allocation22 + $0x224] sm:$0xf0] }
 0x51e   :  { %v7100_v28 = vld [vmem:[#allocation22 + $0x418] sm:$0xf0] }
 0x51f   :  { %4238 = vmatpush.bf16.msra.mxu0 %v6014_v43  ;;  %4198 = vmatmul.bf16.vlgmr.msrb.gmra.mxu1 %v7842_v3  ;;  %v6606_v43 = vor.u32 %v7128_v38, %v6605_v36  ;;  %v7066_v36 = vld [vmem:[#allocation22 + $0x308] sm:$0xf0] }
 0x520   :  { %4274 = vmatpush.bf16.msra.mxu3 %v6186_v55  ;;  %4268 = vmatmul.bf16.vlgmr.msra.gmra.mxu2 %v7850_v54  ;;  %v6985_v55 = vld [vmem:[#allocation22 + $0x84] sm:$0xf] }
 0x521   :  { %4316 = vmatpush.bf16.msrb.mxu2 %v6190_v40  ;;  %4226 = vmatmul.bf16.vlgmr.msrb.gmra.mxu3 %v7850_v54  ;;  %v6047_v40 = vld [vmem:[#allocation22 + $0x9c] sm:$0xf0] }
 0x522   :  { %4250 = vmatpush.bf16.msra.mxu1 %v6294_v48  ;;  %v6050_v62 = vor.u32 %v6985_v55, %v6047_v40  ;;  %v6298_v48 = vor.u32 %v7051_v37, %v6297_v6  ;;  %v6607_v55 = vld [vmem:[#allocation22 + $0x4fc] sm:$0xf0]  ;;  %v6465_v6 = vld [vmem:[#allocation22 + $0x3c8] sm:$0xf]  ;;  %v7093_v37 = vld [vmem:[#allocation22 + $0x3e0] sm:$0xf0] }
 0x523   :  { %4239 = vmatpush.bf16.msra.mxu0 %v5986_v56  ;;  %v6974_v56 = vld [vmem:[#allocation22 + $0x28] sm:$0xf0]  ;;  %v6466_v32 = vor.u32 %v7093_v37, %v6465_v6  ;;  %v6467_v37 = vld [vmem:[#allocation22 + $0x3e4] sm:$0xf0] }
 0x524   :  { %4275 = vmatpush.bf16.msra.mxu3 %v6158_v51  ;;  %v6269_v51 = vld [vmem:[#allocation22 + $0x240] sm:$0xf]  ;;  %v5990_v8 = vor.u32 %v6974_v56, %v5989_v53  ;;  %v6299_v53 = vld [vmem:[#allocation22 + $0x294] sm:$0xf0]  ;;  %v7090_v6 = vld [vmem:[#allocation22 + $0x3cc] sm:$0xf] }
 0x525   :  { %4317 = vmatpush.bf16.msrb.mxu2 %v6162_v18  ;;  %v7044_v18 = vld [vmem:[#allocation22 + $0x258] sm:$0xf0]  ;;  %v6193_v56 = vld [vmem:[#allocation22 + $0x1a0] sm:$0xf] }
 0x526   :  { %4251 = vmatpush.bf16.msra.mxu1 %v6266_v61  ;;  %4240 = vmatmul.bf16.vlgmr.msra.gmra.mxu0 %v7842_v3  ;;  %v5991_v61 = vld [vmem:[#allocation22 + $0x2c] sm:$0xf0]  ;;  %v6270_v63 = vor.u32 %v7044_v18, %v6269_v51  ;;  %v7086_v18 = vld [vmem:[#allocation22 + $0x3a8] sm:$0xf0] }
 0x527   :  { %4288 = vmatpush.bf16.msrb.mxu0 %v6410_v59  ;;  %v6971_v59 = vld [vmem:[#allocation22 + $0x14] sm:$0xf]  ;;  %v6437_v51 = vld [vmem:[#allocation22 + $0x390] sm:$0xf] }
 0x528   :  { %4276 = vmatpush.bf16.msra.mxu3 %v6130_v1  ;;  %v6411_v1 = vld [vmem:[#allocation22 + $0x374] sm:$0xf0]  ;;  %v5994_v10 = vor.u32 %v6971_v59, %v5991_v61  ;;  %v7052_v59 = vld [vmem:[#allocation22 + $0x298] sm:$0xf0]  ;;  %v6438_v61 = vor.u32 %v7086_v18, %v6437_v51  ;;  %v6439_v51 = vld [vmem:[#allocation22 + $0x3ac] sm:$0xf0] }
 0x529   :  { %4318 = vmatpush.bf16.msrb.mxu2 %v6134_v2  ;;  %v6417_v2 = vld [vmem:[#allocation22 + $0x360] sm:$0xf] }
 0x52a   :  { %4252 = vmatpush.bf16.msra.mxu1 %v6238_v12  ;;  %v6521_v12 = vld [vmem:[#allocation22 + $0x438] sm:$0xf]  ;;  %v6418_v14 = vor.u32 %v7080_v4, %v6417_v2  ;;  %v6194_v2 = vor.u32 %v7024_v46, %v6193_v56  ;;  %v7041_v4 = vld [vmem:[#allocation22 + $0x244] sm:$0xf]  ;;  %v6585_v46 = vld [vmem:[#allocation22 + $0x4b0] sm:$0xf] }
 0x52b   :  { %4289 = vmatpush.bf16.msrb.mxu0 %v6382_v11  ;;  %v6414_v11 = vor.u32 %v7076_v0, %v6411_v1  ;;  %v6522_v23 = vor.u32 %v7107_v13, %v6521_v12  ;;  %v6551_v0 = vld [vmem:[#allocation22 + $0x48c] sm:$0xf0]  ;;  %v7045_v12 = vld [vmem:[#allocation22 + $0x260] sm:$0xf0]  ;;  %v7104_v13 = vld [vmem:[#allocation22 + $0x43c] sm:$0xf] }
 0x52c   :  { %4277 = vmatpush.bf16.msra.mxu3 %v6102_v15  ;;  %v6242_v15 = vor.u32 %v7037_v7, %v6241_v5  ;;  %v6306_v5 = vor.u32 %v7052_v59, %v6305_v58  ;;  %v6271_v7 = vld [vmem:[#allocation22 + $0x25c] sm:$0xf0] }
 0x52d   :  { %4319 = vmatpush.bf16.msrb.mxu2 %v6106_v16  ;;  %v7069_v16 = vld [vmem:[#allocation22 + $0x324] sm:$0xf] }
 0x52e   :  { %4253 = vmatpush.bf16.msra.mxu1 %v6210_v27  ;;  %v6386_v26 = vor.u32 %v7069_v16, %v6383_v17  ;;  %v6493_v27 = vld [vmem:[#allocation22 + $0x400] sm:$0xf]  ;;  %v7034_v17 = vld [vmem:[#allocation22 + $0x20c] sm:$0xf] }
 0x52f   :  { %4290 = vmatpush.bf16.msrb.mxu0 %v6354_v24  ;;  %v7132_v24 = vld [vmem:[#allocation22 + $0x51c] sm:$0xf]  ;;  %v6494_v38 = vor.u32 %v7100_v28, %v6493_v27  ;;  %v6495_v27 = vld [vmem:[#allocation22 + $0x41c] sm:$0xf0]  ;;  %v6246_v28 = vor.u32 %v7034_v17, %v6243_v20  ;;  %v6445_v17 = vld [vmem:[#allocation22 + $0x398] sm:$0xf] }
 0x530   :  { %4278 = vmatpush.bf16.msra.mxu3 %v6074_v30  ;;  %v6214_v30 = vor.u32 %v7030_v22, %v6213_v21  ;;  %v6137_v21 = vld [vmem:[#allocation22 + $0x130] sm:$0xf]  ;;  %v7010_v22 = vld [vmem:[#allocation22 + $0x148] sm:$0xf0] }
 0x531   :  { %4320 = vmatpush.bf16.msrb.mxu2 %v6078_v34  ;;  %4254 = vmatmul.bf16.vlgmr.msra.gmra.mxu1 %v7847_v60  ;;  %v6638_v34 = vor.u32 %v7132_v24, %v6635_v25  ;;  %v6249_v24 = vld [vmem:[#allocation22 + $0x210] sm:$0xf]  ;;  %v7038_v25 = vld [vmem:[#allocation22 + $0x228] sm:$0xf0] }
 0x532   :  { %4302 = vmatpush.bf16.msrb.mxu1 %v6634_v31  ;;  %v7062_v31 = vld [vmem:[#allocation22 + $0x2ec] sm:$0xf] }
 0x533   :  { %4291 = vmatpush.bf16.msrb.mxu0 %v6326_v39  ;;  %v7125_v39 = vld [vmem:[#allocation22 + $0x4e4] sm:$0xf]  ;;  %v6358_v40 = vor.u32 %v7062_v31, %v6355_v33  ;;  %v6215_v31 = vld [vmem:[#allocation22 + $0x1ec] sm:$0xf0]  ;;  %v6250_v33 = vor.u32 %v7038_v25, %v6249_v24 }
 0x534   :  { %4279 = vmatpush.bf16.msra.mxu3 %v6046_v42  ;;  %v6362_v42 = vor.u32 %v7066_v36, %v6361_v35  ;;  %v7003_v35 = vld [vmem:[#allocation22 + $0x110] sm:$0xf0]  ;;  %v6221_v36 = vld [vmem:[#allocation22 + $0x1d8] sm:$0xf] }
 0x535   :  { %4321 = vmatpush.bf16.msrb.mxu2 %v6050_v62  ;;  %v6610_v62 = vor.u32 %v7125_v39, %v6607_v55  ;;  %v7031_v39 = vld [vmem:[#allocation22 + $0x1f0] sm:$0xf0]  ;;  %v6641_v55 = vld [vmem:[#allocation22 + $0x520] sm:$0xf] }
 0x536   :  { %4303 = vmatpush.bf16.msrb.mxu1 %v6606_v43  ;;  %v7055_v43 = vld [vmem:[#allocation22 + $0x2b4] sm:$0xf] }
 0x537   :  { %4292 = vmatpush.bf16.msrb.mxu0 %v6298_v48  ;;  %v7118_v48 = vld [vmem:[#allocation22 + $0x4ac] sm:$0xf]  ;;  %v6330_v50 = vor.u32 %v7055_v43, %v6327_v44  ;;  %v6222_v44 = vor.u32 %v7031_v39, %v6221_v36 }
 0x538   :  { %4280 = vmatpush.bf16.msra.mxu3 %v6018_v52  ;;  %v7048_v52 = vld [vmem:[#allocation22 + $0x27c] sm:$0xf] }
 0x539   :  { %4322 = vmatpush.bf16.msrb.mxu2 %v6022_v57  ;;  %v6582_v57 = vor.u32 %v7118_v48, %v6579_v49  ;;  %v6302_v1 = vor.u32 %v7048_v52, %v6299_v53  ;;  %v6613_v48 = vld [vmem:[#allocation22 + $0x4e8] sm:$0xf]  ;;  %v7129_v49 = vld [vmem:[#allocation22 + $0x500] sm:$0xf0] }
 0x53a   :  { %4304 = vmatpush.bf16.msrb.mxu1 %v6578_v41  ;;  %v6334_v41 = vor.u32 %v7059_v47, %v6333_v45  ;;  %v6081_v45 = vld [vmem:[#allocation22 + $0xc0] sm:$0xf]  ;;  %v6996_v47 = vld [vmem:[#allocation22 + $0xd8] sm:$0xf0]  ;;  %v6614_v52 = vor.u32 %v7129_v49, %v6613_v48  ;;  %v6989_v53 = vld [vmem:[#allocation22 + $0xa0] sm:$0xf0] }
 0x53b   :  { %4293 = vmatpush.bf16.msrb.mxu0 %v6270_v63  ;;  %v7111_v63 = vld [vmem:[#allocation22 + $0x474] sm:$0xf]  ;;  %v6082_v18 = vor.u32 %v6996_v47, %v6081_v45 }
 0x53c   :  { %4281 = vmatpush.bf16.msra.mxu3 %v5990_v8  ;;  %v6165_v8 = vld [vmem:[#allocation22 + $0x168] sm:$0xf] }
 0x53d   :  { %4323 = vmatpush.bf16.msrb.mxu2 %v5994_v10  ;;  %v6554_v10 = vor.u32 %v7111_v63, %v6551_v0  ;;  %v6982_v63 = vld [vmem:[#allocation22 + $0x68] sm:$0xf0]  ;;  %v6557_v0 = vld [vmem:[#allocation22 + $0x478] sm:$0xf] }
 0x53e   :  { %4305 = vmatpush.bf16.msrb.mxu1 %v6550_v9  ;;  %v7017_v9 = vld [vmem:[#allocation22 + $0x180] sm:$0xf0] }
 0x53f   :  { %4294 = vmatpush.bf16.msrb.mxu0 %v6242_v15  ;;  %4282 = vmatmul.bf16.vlgmr.msra.gmra.mxu3 %v7842_v3  ;;  %v6274_v15 = vor.u32 %v7041_v4, %v6271_v7  ;;  %v6166_v16 = vor.u32 %v7017_v9, %v6165_v8  ;;  %v6975_v7 = vld [vmem:[#allocation22 + $0x30] sm:$0xf0]  ;;  %v6529_v8 = vld [vmem:[#allocation22 + $0x440] sm:$0xf]  ;;  %v7108_v9 = vld [vmem:[#allocation22 + $0x458] sm:$0xf0] }
 0x540   :  { %4330 = vmatpush.bf16.msrb.mxu3 %v6414_v11  ;;  %4324 = vmatmul.bf16.vlgmr.msrb.gmra.mxu2 %v7842_v3  ;;  %v6277_v11 = vld [vmem:[#allocation22 + $0x248] sm:$0xf] }
 0x541   :  { %4372 = vmatpush.bf16.msra.mxu2 %v6418_v14  ;;  %v6523_v14 = vld [vmem:[#allocation22 + $0x454] sm:$0xf0]  ;;  %v6278_v19 = vor.u32 %v7045_v12, %v6277_v11  ;;  %v6501_v11 = vld [vmem:[#allocation22 + $0x408] sm:$0xf]  ;;  %v7101_v12 = vld [vmem:[#allocation22 + $0x420] sm:$0xf0] }
 0x542   :  { %4306 = vmatpush.bf16.msrb.mxu1 %v6522_v23  ;;  %v6526_v23 = vor.u32 %v7104_v13, %v6523_v14  ;;  %v6502_v13 = vor.u32 %v7101_v12, %v6501_v11  ;;  %v6473_v14 = vld [vmem:[#allocation22 + $0x3d0] sm:$0xf] }
 0x543   :  { %4295 = vmatpush.bf16.msrb.mxu0 %v6214_v30  ;;  %v7027_v30 = vld [vmem:[#allocation22 + $0x1d4] sm:$0xf] }
 0x544   :  { %4331 = vmatpush.bf16.msrb.mxu3 %v6386_v26  ;;  %v7097_v26 = vld [vmem:[#allocation22 + $0x404] sm:$0xf] }
 0x545   :  { %4373 = vmatpush.bf16.msra.mxu2 %v6390_v29  ;;  %v6138_v29 = vor.u32 %v7010_v22, %v6137_v21  ;;  %v7873_v21 = vld [vmem:[%s7940_s16] sm:$0xff]  ;;  %s7622_s16 = smov [#allocation24]  }
 0x546   :  { %4307 = vmatpush.bf16.msrb.mxu1 %v6494_v38  ;;  %4296 = vmatmul.bf16.vlgmr.msrb.gmra.mxu0 %v7847_v60  ;;  %v6498_v38 = vor.u32 %v7097_v26, %v6495_v27  ;;  %v3228_v24 = vperm.slane %v7873_v21, 0  ;;  %v3230_v48 = vperm.slane %v7873_v21, 2  ;;  %s4697_s23 = sshll.u32 %s7622_s16, 4  ;;  %s4698_s23 = int_to_ptr.vmem [resolvable:$true] %s4697_s23 }
 0x547   :  { %4344 = vmatpush.bf16.msra.mxu0 %v6638_v34  ;;  %v6109_v34 = vld [vmem:[#allocation22 + $0xf8] sm:$0xf]  ;;  %4705 = dma.vmem_to_hbm [thread:$0]  %s4698_s23, 256, %s4700_s5, [#allocation25], %s7613_s25, %s7613_s25, %s7614_s28  }
 0x548   :  { %4332 = vmatpush.bf16.msrb.mxu3 %v6358_v40  ;;  %v7136_v40 = vld [vmem:[#allocation22 + $0x538] sm:$0xf0]  ;;  %v6110_v43 = vor.u32 %v7003_v35, %v6109_v34  ;;  %s4684_s25 = sshll.u32 %s7623_s18, 4  ;;  %s4685_s25 = int_to_ptr.vmem [resolvable:$true] %s4684_s25 }
 0x549   :  { %4374 = vmatpush.bf16.msra.mxu2 %v6362_v42  ;;  %v6218_v42 = vor.u32 %v7027_v30, %v6215_v31  ;;  %v3229_v30 = vperm.slane %v7873_v21, 1 }
 0x54a   :  { %4308 = vmatpush.bf16.msrb.mxu1 %v6466_v32  ;;  %v6470_v32 = vor.u32 %v7090_v6, %v6467_v37 }
 0x54b   :  { %4345 = vmatpush.bf16.msra.mxu0 %v6610_v62  ;;  %v6642_v62 = vor.u32 %v7136_v40, %v6641_v55 }
 0x54c   :  { %4333 = vmatpush.bf16.msrb.mxu3 %v6330_v50  ;;  %v7083_v50 = vld [vmem:[#allocation22 + $0x394] sm:$0xf] }
 0x54d   :  { %4375 = vmatpush.bf16.msra.mxu2 %v6334_v41  ;;  %v6053_v41 = vld [vmem:[#allocation22 + $0x88] sm:$0xf]  ;;  %v6442_v56 = vor.u32 %v7083_v50, %v6439_v51 }
 0x54e   :  { %4309 = vmatpush.bf16.msrb.mxu1 %v6438_v61  ;;  %v6054_v58 = vor.u32 %v6989_v53, %v6053_v41  ;;  %v6025_v61 = vld [vmem:[#allocation22 + $0x50] sm:$0xf] }
 0x54f   :  { %4346 = vmatpush.bf16.msra.mxu0 %v6582_v57  ;;  %v7122_v57 = vld [vmem:[#allocation22 + $0x4c8] sm:$0xf0] }
 0x550   :  { %4334 = vmatpush.bf16.msrb.mxu3 %v6302_v1  ;;  %v6586_v59 = vor.u32 %v7122_v57, %v6585_v46  ;;  %v7115_v1 = vld [vmem:[#allocation22 + $0x490] sm:$0xf0] }
 0x551   :  { %4376 = vmatpush.bf16.msra.mxu2 %v6306_v5  ;;  %4310 = vmatmul.bf16.vlgmr.msrb.gmra.mxu1 %v7850_v54  ;;  %v6558_v4 = vor.u32 %v7115_v1, %v6557_v0  ;;  %v5997_v5 = vld [vmem:[#allocation22 + $0x18] sm:$0xf] }
 0x552   :  { %4358 = vmatpush.bf16.msra.mxu1 %v6194_v2  ;;  %v6026_v2 = vor.u32 %v6982_v63, %v6025_v61 }
 0x553   :  { %4347 = vmatpush.bf16.msra.mxu0 %v6554_v10  ;;  %v6530_v10 = vor.u32 %v7108_v9, %v6529_v8 }
 0x554   :  { %4335 = vmatpush.bf16.msrb.mxu3 %v6274_v15  ;;  %v7094_v15 = vld [vmem:[#allocation22 + $0x3e8] sm:$0xf0] }
 0x555   :  { %4377 = vmatpush.bf16.msra.mxu2 %v6278_v19  ;;  %v7087_v19 = vld [vmem:[#allocation22 + $0x3b0] sm:$0xf0] }
 0x556   :  { %4359 = vmatpush.bf16.msra.mxu1 %v6166_v16  ;;  %v6474_v16 = vor.u32 %v7094_v15, %v6473_v14  ;;  %v6446_v20 = vor.u32 %v7087_v19, %v6445_v17 }
 0x557   :  { %4348 = vmatpush.bf16.msra.mxu0 %v6526_v23 }
 0x558   :  { %4336 = vmatpush.bf16.msrb.mxu3 %v6246_v28 }
 0x559   :  { %4378 = vmatpush.bf16.msra.mxu2 %v6250_v33 }
 0x55a   :  { %4360 = vmatpush.bf16.msra.mxu1 %v6138_v29 }
 0x55b   :  { %4349 = vmatpush.bf16.msra.mxu0 %v6498_v38 }
 0x55c   :  { %4337 = vmatpush.bf16.msrb.mxu3 %v6218_v42 }
 0x55d   :  { %4379 = vmatpush.bf16.msra.mxu2 %v6222_v44 }
 0x55e   :  { %4361 = vmatpush.bf16.msra.mxu1 %v6110_v43 }
 0x55f   :  { %4350 = vmatpush.bf16.msra.mxu0 %v6470_v32  ;;  %4338 = vmatmul.bf16.vlgmr.msrb.gmra.mxu3 %v7847_v60 }
 0x560   :  { %4386 = vmatpush.bf16.msra.mxu3 %v6642_v62  ;;  %4380 = vmatmul.bf16.vlgmr.msra.gmra.mxu2 %v7847_v60  ;;  %v5998_v60 = vor.u32 %v6975_v7, %v5997_v5 }
 0x562   :  { %4362 = vmatpush.bf16.msra.mxu1 %v6082_v18 }
 0x563   :  { %4351 = vmatpush.bf16.msra.mxu0 %v6442_v56 }
 0x564   :  { %4387 = vmatpush.bf16.msra.mxu3 %v6614_v52 }
 0x566   :  { %4363 = vmatpush.bf16.msra.mxu1 %v6054_v58  ;;  %4352 = vmatmul.bf16.vlgmr.msra.gmra.mxu0 %v7850_v54 }
 0x568   :  { %4388 = vmatpush.bf16.msra.mxu3 %v6586_v59 }
 0x56a   :  { %4364 = vmatpush.bf16.msra.mxu1 %v6026_v2 }
 0x56c   :  { %4389 = vmatpush.bf16.msra.mxu3 %v6558_v4 }
 0x56e   :  { %4365 = vmatpush.bf16.msra.mxu1 %v5998_v60 }
 0x570   :  { %4390 = vmatpush.bf16.msra.mxu3 %v6530_v10 }
 0x571   :  { %4366 = vmatmul.bf16.vlgmr.msra.gmra.mxu1 %v7842_v3 }
 0x574   :  { %4391 = vmatpush.bf16.msra.mxu3 %v6502_v13 }
 0x578   :  { %4392 = vmatpush.bf16.msra.mxu3 %v6474_v16  ;;  %v3231_v16 = vperm.slane %v7873_v21, 3 }
 0x57c   :  { %4393 = vmatpush.bf16.msra.mxu3 %v6446_v20 }
 0x57f   :  { %4394 = vmatmul.bf16.vlgmr.msra.gmra.mxu3 %v7850_v54 }
 0x582   :  { %v4115_v22 = vpop.f32.mrf.mxu3  ;;  %v4129_v23 = vpop.f32.mrf.mxu0 }
 0x583   :  { %v4157_v25 = vpop.f32.mrf.mxu2  ;;  %v4116_v3 = vadd.f32 %v4115_v22, %v3228_v24 }
 0x584   :  { %v4158_v35 = vadd.f32 %v4157_v25, %v3229_v30 }
 0x585   :  { %v4130_v28 = vadd.f32 %v4129_v23, %v4116_v3 }
 0x58a   :  { %v4117_v26 = vpop.f32.mrf.mxu3  ;;  %v4131_v27 = vpop.f32.mrf.mxu0 }
 0x58b   :  { %v4118_v33 = vadd.f32 %v4117_v26, %v3228_v24  ;;  %v4159_v54 = vpop.f32.mrf.mxu2 }
 0x58c   :  { %v4143_v29 = vpop.f32.mrf.mxu1  ;;  %v4160_v45 = vadd.f32 %v4159_v54, %v3229_v30 }
 0x58d   :  { %v4144_v31 = vadd.f32 %v4143_v29, %v4130_v28  ;;  %v4132_v38 = vadd.f32 %v4131_v27, %v4118_v33 }
 0x58f   :  { %v6643_v34 = vmul.f32 -1.442695, %v4144_v31 }
 0x591   :  { %7165 = vpow2.f32 %v6643_v34 }
 0x592   :  { %v4171_v36 = vpop.f32.mrf.mxu3 }
 0x593   :  { %v4172_v39 = vadd.f32 %v4171_v36, %v4158_v35  ;;  %v4185_v55 = vpop.f32.mrf.mxu0  ;;  %v4213_v47 = vpop.f32.mrf.mxu2 }
 0x594   :  { %v4145_v40 = vpop.f32.mrf.mxu1 }
 0x595   :  { %v4186_v6 = vadd.f32 %v4185_v55, %v4172_v39  ;;  %v4146_v37 = vadd.f32 %v4145_v40, %v4132_v38 }
 0x597   :  { %v7166_v42 = vpop.eup %7165  ;;  %v6644_v43 = vmul.f32 -1.442695, %v4186_v6  ;;  %v6650_v44 = vmul.f32 -1.442695, %v4146_v37 }
 0x598   :  { %v4442_v62 = vadd.f32 1.0, %v7166_v42 }
 0x599   :  { %7167 = vpow2.f32 %v6644_v43 }
 0x59a   :  { %7169 = vrcp.f32 %v4442_v62  ;;  %v4173_v32 = vpop.f32.mrf.mxu3  ;;  %v4467_v2 = vand.u32 2147483648, %v4442_v62  ;;  %v4465_v8 = vand.u32 2147483647, %v4442_v62  ;;  %vm4461_vm11 = vweird.f32 %v4442_v62 }
 0x59b   :  { %7171 = vpow2.f32 %v6650_v44  ;;  %v4174_v49 = vadd.f32 %v4173_v32, %v4160_v45  ;;  %v4187_v50 = vpop.f32.mrf.mxu0  ;;  %v4215_v0 = vpop.f32.mrf.mxu2 }
 0x59c   :  { %v4199_v51 = vpop.f32.mrf.mxu1  ;;  %v4468_v14 = vor.u32 1.1754944e-38, %v4467_v2  ;;  %vm4466_vm13 = vcmp.eq.f32.partialorder %v4465_v8, 8.507059e+37 }
 0x59d   :  { %v4188_v18 = vadd.f32 %v4187_v50, %v4174_v49  ;;  %v4200_v52 = vadd.f32 %v4199_v51, %v3230_v48 }
 0x59f   :  { %v7168_v41 = vpop.eup %7167  ;;  %v6651_v53 = vmul.f32 -1.442695, %v4188_v18  ;;  %v4214_v59 = vadd.f32 %v4213_v47, %v4200_v52 }
 0x5a0   :  { %v7170_v56 = vpop.eup %7169  ;;  %v7878_v46 = vadd.f32 1.0, %v7168_v41 }
 0x5a1   :  { %v7172_v57 = vpop.eup %7171  ;;  %v4457_v58 = vmul.f32 %v7170_v56, %v4442_v62  ;;  %7173 = vpow2.f32 %v6651_v53  ;;  %vm4462_vm10 = vweird.f32 %v7170_v56 }
 0x5a2   :  { %7175 = vrcp.f32 %v7878_v46  ;;  %v7881_v63 = vadd.f32 1.0, %v7172_v57  ;;  %vm4463_vm12 = vmor %vm4461_vm11, %vm4462_vm10  ;;  %v4482_v22 = vand.u32 2147483648, %v7878_v46  ;;  %vm4476_vm14 = vweird.f32 %v7878_v46 }
 0x5a3   :  { %v4458_v61 = vsub.f32 1.0, %v4457_v58  ;;  %v4241_v12 = vpop.f32.mrf.mxu0  ;;  %v4480_v30 = vand.u32 2147483647, %v7878_v46  ;;  %v4269_v31 = vpop.f32.mrf.mxu2 }
 0x5a4   :  { %v4227_v1 = vpop.f32.mrf.mxu3  ;;  %v4201_v5 = vpop.f32.mrf.mxu1  ;;  %7177 = vrcp.f32 %v7881_v63  ;;  %v4242_v27 = vadd.f32 %v4241_v12, %v3231_v16  ;;  %v4483_v34 = vor.u32 1.1754944e-38, %v4482_v22  ;;  %v4570_v55 = vand.u32 2147483647, %v7881_v63 }
 0x5a5   :  { %v4228_v4 = vadd.f32 %v4227_v1, %v4214_v59  ;;  %v4459_v7 = vmul.f32 %v7170_v56, %v4458_v61  ;;  %v4202_v60 = vadd.f32 %v4201_v5, %v3230_v48  ;;  %v4572_v40 = vand.u32 2147483648, %v7881_v63 }
 0x5a6   :  { %vm4481_vm2 = vcmp.eq.f32.partialorder %v4480_v30, 8.507059e+37  ;;  %vm4566_vm3 = vweird.f32 %v7881_v63  ;;  %vm4571_vm5 = vcmp.eq.f32.partialorder %v4570_v55, 8.507059e+37 }
 0x5a7   :  { %v6645_v9 = vmul.f32 -1.442695, %v4228_v4  ;;  %v7174_v10 = vpop.eup %7173  ;;  %v4460_v11 = vadd.f32 %v7170_v56, %v4459_v7  ;;  %v4216_v23 = vadd.f32 %v4215_v0, %v4202_v60  ;;  %v4573_v48 = vor.u32 1.1754944e-38, %v4572_v40 }
 0x5a8   :  { %v7176_v13 = vpop.eup %7175  ;;  %v7890_v15 = vadd.f32 1.0, %v7174_v10 }
 0x5a9   :  { %7179 = vpow2.f32 %v6645_v9  ;;  %v4464_v17 = vsel %vm4463_vm12, %v7170_v56, %v4460_v11  ;;  %v4472_v19 = vmul.f32 %v7176_v13, %v7878_v46  ;;  %vm4477_vm15 = vweird.f32 %v7176_v13 }
 0x5aa   :  { %v4469_v20 = vsel %vm4466_vm13, %v4468_v14, %v4464_v17  ;;  %7181 = vrcp.f32 %v7890_v15  ;;  %v7178_v24 = vpop.eup %7177  ;;  %vm4478_vm0 = vmor %vm4476_vm14, %vm4477_vm15  ;;  %v4585_v18 = vand.u32 2147483647, %v7890_v15  ;;  %v4587_v52 = vand.u32 2147483648, %v7890_v15 }
 0x5ab   :  { %4666 = vst [vmem:[#allocation23] sm:$0xff] %v4469_v20  ;;  %v4473_v25 = vsub.f32 1.0, %v4472_v19  ;;  %v4562_v26 = vmul.f32 %v7178_v24, %v7881_v63  ;;  %vm4567_vm1 = vweird.f32 %v7178_v24  ;;  %v4243_v45 = vpop.f32.mrf.mxu0  ;;  %vm4581_vm7 = vweird.f32 %v7890_v15  ;;  %v4271_v0 = vpop.f32.mrf.mxu2 }
 0x5ac   :  { %v4229_v3 = vpop.f32.mrf.mxu3  ;;  %vm4568_vm4 = vmor %vm4566_vm3, %vm4567_vm1  ;;  %v4244_v41 = vadd.f32 %v4243_v45, %v3231_v16  ;;  %v4588_v1 = vor.u32 1.1754944e-38, %v4587_v52  ;;  %vm4586_vm9 = vcmp.eq.f32.partialorder %v4585_v18, 8.507059e+37 }
 0x5ad   :  { %v4230_v28 = vadd.f32 %v4229_v3, %v4216_v23  ;;  %v4474_v29 = vmul.f32 %v7176_v13, %v4473_v25  ;;  %v4563_v35 = vsub.f32 1.0, %v4562_v26  ;;  %v3232_v23 = vperm.slane %v7873_v21, 4 }
 0x5ae   :  { %v4255_v33 = vpop.f32.mrf.mxu1 }
 0x5af   :  { %v7180_v54 = vpop.eup %7179  ;;  %v6652_v36 = vmul.f32 -1.442695, %v4230_v28  ;;  %v4256_v38 = vadd.f32 %v4255_v33, %v4242_v27  ;;  %v4475_v39 = vadd.f32 %v7176_v13, %v4474_v29  ;;  %v4564_v42 = vmul.f32 %v7178_v24, %v4563_v35 }
 0x5b0   :  { %v7901_v6 = vadd.f32 1.0, %v7180_v54  ;;  %v7182_v37 = vpop.eup %7181 }
 0x5b1   :  { %7183 = vpow2.f32 %v6652_v36  ;;  %v4270_v43 = vadd.f32 %v4269_v31, %v4256_v38  ;;  %v4479_v44 = vsel %vm4478_vm0, %v7176_v13, %v4475_v39  ;;  %v4577_v62 = vmul.f32 %v7182_v37, %v7890_v15 }
 0x5b2   :  { %7185 = vrcp.f32 %v7901_v6  ;;  %v4484_v47 = vsel %vm4481_vm2, %v4483_v34, %v4479_v44  ;;  %v4565_v32 = vadd.f32 %v7178_v24, %v4564_v42  ;;  %vm4582_vm6 = vweird.f32 %v7182_v37 }
 0x5b3   :  { %4667 = vst [vmem:[#allocation23 + $0x8] sm:$0xff] %v4484_v47  ;;  %v4578_v49 = vsub.f32 1.0, %v4577_v62  ;;  %v6646_v50 = vmul.f32 -1.442695, %v4270_v43  ;;  %vm4583_vm8 = vmor %vm4581_vm7, %vm4582_vm6  ;;  %v4495_v10 = vand.u32 2147483647, %v7901_v6  ;;  %vm4491_vm11 = vweird.f32 %v7901_v6 }
 0x5b4   :  { %v4569_v51 = vsel %vm4568_vm4, %v7178_v24, %v4565_v32  ;;  %v4497_v11 = vand.u32 2147483648, %v7901_v6 }
 0x5b5   :  { %v4574_v53 = vsel %vm4571_vm5, %v4573_v48, %v4569_v51  ;;  %v4579_v56 = vmul.f32 %v7182_v37, %v4578_v49  ;;  %7187 = vpow2.f32 %v6646_v50  ;;  %vm4496_vm13 = vcmp.eq.f32.partialorder %v4495_v10, 8.507059e+37 }
 0x5b6   :  { %v4257_v46 = vpop.f32.mrf.mxu1  ;;  %4673 = vst [vmem:[#allocation23 + $0x38] sm:$0xff] %v4574_v53  ;;  %v4498_v16 = vor.u32 1.1754944e-38, %v4497_v11 }
 0x5b7   :  { %v7184_v57 = vpop.eup %7183  ;;  %v4258_v58 = vadd.f32 %v4257_v46, %v4244_v41  ;;  %v4580_v61 = vadd.f32 %v7182_v37, %v4579_v56 }
 0x5b8   :  { %v7186_v59 = vpop.eup %7185  ;;  %v4451_v63 = vadd.f32 1.0, %v7184_v57 }
 0x5b9   :  { %v4487_v2 = vmul.f32 %v7186_v59, %v7901_v6  ;;  %v4272_v4 = vadd.f32 %v4271_v0, %v4258_v58  ;;  %v4584_v5 = vsel %vm4583_vm8, %v7182_v37, %v4580_v61  ;;  %vm4492_vm10 = vweird.f32 %v7186_v59 }
 0x5ba   :  { %7189 = vrcp.f32 %v4451_v63  ;;  %v4589_v7 = vsel %vm4586_vm9, %v4588_v1, %v4584_v5  ;;  %vm4493_vm12 = vmor %vm4491_vm11, %vm4492_vm10  ;;  %v4602_v3 = vand.u32 2147483648, %v4451_v63  ;;  %v4600_v29 = vand.u32 2147483647, %v4451_v63 }
 0x5bb   :  { %v4488_v8 = vsub.f32 1.0, %v4487_v2  ;;  %v6653_v9 = vmul.f32 -1.442695, %v4272_v4  ;;  %v7188_v60 = vpop.eup %7187  ;;  %4674 = vst [vmem:[#allocation23 + $0x40] sm:$0xff] %v4589_v7  ;;  %vm4596_vm15 = vweird.f32 %v4451_v63  ;;  %v3233_v5 = vperm.slane %v7873_v21, 5 }
 0x5bc   :  { %v4445_v13 = vadd.f32 1.0, %v7188_v60  ;;  %v4603_v34 = vor.u32 1.1754944e-38, %v4602_v3  ;;  %vm4601_vm1 = vcmp.eq.f32.partialorder %v4600_v29, 8.507059e+37 }
 0x5bd   :  { %v4489_v12 = vmul.f32 %v7186_v59, %v4488_v8  ;;  %7191 = vpow2.f32 %v6653_v9 }
 0x5be   :  { %7193 = vrcp.f32 %v4445_v13  ;;  %v4510_v38 = vand.u32 2147483647, %v4445_v13  ;;  %v4512_v39 = vand.u32 2147483648, %v4445_v13  ;;  %vm4506_vm3 = vweird.f32 %v4445_v13 }
 0x5bf   :  { %v4490_v14 = vadd.f32 %v7186_v59, %v4489_v12 }
 0x5c0   :  { %v7190_v15 = vpop.eup %7189  ;;  %v4513_v45 = vor.u32 1.1754944e-38, %v4512_v39  ;;  %vm4511_vm5 = vcmp.eq.f32.partialorder %v4510_v38, 8.507059e+37 }
 0x5c1   :  { %v4494_v17 = vsel %vm4493_vm12, %v7186_v59, %v4490_v14  ;;  %v4592_v19 = vmul.f32 %v7190_v15, %v4451_v63  ;;  %vm4597_vm14 = vweird.f32 %v7190_v15 }
 0x5c2   :  { %v4283_v20 = vpop.f32.mrf.mxu3  ;;  %v4499_v22 = vsel %vm4496_vm13, %v4498_v16, %v4494_v17  ;;  %vm4598_vm0 = vmor %vm4596_vm15, %vm4597_vm14 }
 0x5c3   :  { %v7192_v24 = vpop.eup %7191  ;;  %4668 = vst [vmem:[#allocation23 + $0x10] sm:$0xff] %v4499_v22  ;;  %v4593_v25 = vsub.f32 1.0, %v4592_v19  ;;  %v4284_v31 = vadd.f32 %v4283_v20, %v3232_v23  ;;  %v4297_v54 = vpop.f32.mrf.mxu0 }
 0x5c4   :  { %v4452_v26 = vadd.f32 1.0, %v7192_v24  ;;  %v7194_v27 = vpop.eup %7193  ;;  %v4325_v4 = vpop.f32.mrf.mxu2 }
 0x5c5   :  { %v4594_v28 = vmul.f32 %v7190_v15, %v4593_v25  ;;  %v4502_v30 = vmul.f32 %v7194_v27, %v4445_v13  ;;  %vm4507_vm2 = vweird.f32 %v7194_v27  ;;  %v4298_v6 = vadd.f32 %v4297_v54, %v4284_v31 }
 0x5c6   :  { %7195 = vrcp.f32 %v4452_v26  ;;  %vm4508_vm4 = vmor %vm4506_vm3, %vm4507_vm2  ;;  %v4617_v18 = vand.u32 2147483648, %v4452_v26  ;;  %v4615_v41 = vand.u32 2147483647, %v4452_v26  ;;  %vm4611_vm7 = vweird.f32 %v4452_v26 }
 0x5c7   :  { %v4595_v33 = vadd.f32 %v7190_v15, %v4594_v28  ;;  %v4503_v35 = vsub.f32 1.0, %v4502_v30  ;;  %v4326_v7 = vadd.f32 %v4325_v4, %v3233_v5 }
 0x5c8   :  { %v4618_v58 = vor.u32 1.1754944e-38, %v4617_v18  ;;  %vm4616_vm9 = vcmp.eq.f32.partialorder %v4615_v41, 8.507059e+37 }
 0x5c9   :  { %v4599_v36 = vsel %vm4598_vm0, %v7190_v15, %v4595_v33  ;;  %v4504_v40 = vmul.f32 %v7194_v27, %v4503_v35 }
 0x5ca   :  { %v4604_v55 = vsel %vm4601_vm1, %v4603_v34, %v4599_v36  ;;  %v4285_v37 = vpop.f32.mrf.mxu3 }
 0x5cb   :  { %4675 = vst [vmem:[#allocation23 + $0x48] sm:$0xff] %v4604_v55  ;;  %v4505_v44 = vadd.f32 %v7194_v27, %v4504_v40  ;;  %v4286_v48 = vadd.f32 %v4285_v37, %v3232_v23  ;;  %v4299_v53 = vpop.f32.mrf.mxu0 }
 0x5cc   :  { %v7196_v43 = vpop.eup %7195  ;;  %v4327_v14 = vpop.f32.mrf.mxu2 }
 0x5cd   :  { %v4607_v47 = vmul.f32 %v7196_v43, %v4452_v26  ;;  %v4509_v32 = vsel %vm4508_vm4, %v7194_v27, %v4505_v44  ;;  %vm4612_vm6 = vweird.f32 %v7196_v43  ;;  %v4300_v56 = vadd.f32 %v4299_v53, %v4286_v48 }
 0x5ce   :  { %v4311_v42 = vpop.f32.mrf.mxu1  ;;  %v4514_v50 = vsel %vm4511_vm5, %v4513_v45, %v4509_v32  ;;  %vm4613_vm8 = vmor %vm4611_vm7, %vm4612_vm6  ;;  %v4328_v23 = vadd.f32 %v4327_v14, %v3233_v5  ;;  %v3234_v44 = vperm.slane %v7873_v21, 6 }
 0x5cf   :  { %v4312_v62 = vadd.f32 %v4311_v42, %v4298_v6  ;;  %v4608_v51 = vsub.f32 1.0, %v4607_v47  ;;  %4669 = vst [vmem:[#allocation23 + $0x18] sm:$0xff] %v4514_v50 }
 0x5d1   :  { %v6647_v49 = vmul.f32 -1.442695, %v4312_v62  ;;  %v4609_v52 = vmul.f32 %v7196_v43, %v4608_v51 }
 0x5d3   :  { %7197 = vpow2.f32 %v6647_v49  ;;  %v4610_v46 = vadd.f32 %v7196_v43, %v4609_v52 }
 0x5d5   :  { %v4614_v61 = vsel %vm4613_vm8, %v7196_v43, %v4610_v46 }
 0x5d6   :  { %v4313_v57 = vpop.f32.mrf.mxu1  ;;  %v4619_v0 = vsel %vm4616_vm9, %v4618_v58, %v4614_v61 }
 0x5d7   :  { %v4314_v59 = vadd.f32 %v4313_v57, %v4300_v56  ;;  %4676 = vst [vmem:[#allocation23 + $0x50] sm:$0xff] %v4619_v0 }
 0x5d9   :  { %v7198_v63 = vpop.eup %7197  ;;  %v6654_v1 = vmul.f32 -1.442695, %v4314_v59 }
 0x5da   :  { %v4446_v2 = vadd.f32 1.0, %v7198_v63 }
 0x5db   :  { %7199 = vpow2.f32 %v6654_v1 }
 0x5dc   :  { %7201 = vrcp.f32 %v4446_v2  ;;  %v4527_v17 = vand.u32 2147483648, %v4446_v2  ;;  %v4525_v20 = vand.u32 2147483647, %v4446_v2  ;;  %vm4521_vm11 = vweird.f32 %v4446_v2 }
 0x5de   :  { %v4528_v26 = vor.u32 1.1754944e-38, %v4527_v17  ;;  %vm4526_vm13 = vcmp.eq.f32.partialorder %v4525_v20, 8.507059e+37 }
 0x5e1   :  { %v7200_v8 = vpop.eup %7199 }
 0x5e2   :  { %v4339_v9 = vpop.f32.mrf.mxu3  ;;  %v7202_v10 = vpop.eup %7201  ;;  %v4453_v11 = vadd.f32 1.0, %v7200_v8 }
 0x5e3   :  { %v4353_v60 = vpop.f32.mrf.mxu0  ;;  %v4340_v12 = vadd.f32 %v4339_v9, %v4326_v7  ;;  %v4517_v13 = vmul.f32 %v7202_v10, %v4446_v2  ;;  %vm4522_vm10 = vweird.f32 %v7202_v10  ;;  %v4381_v49 = vpop.f32.mrf.mxu2 }
 0x5e4   :  { %7203 = vrcp.f32 %v4453_v11  ;;  %vm4523_vm12 = vmor %vm4521_vm11, %vm4522_vm10  ;;  %v4632_v34 = vand.u32 2147483648, %v4453_v11  ;;  %v4630_v39 = vand.u32 2147483647, %v4453_v11  ;;  %vm4626_vm15 = vweird.f32 %v4453_v11 }
 0x5e5   :  { %v4518_v15 = vsub.f32 1.0, %v4517_v13  ;;  %v4354_v16 = vadd.f32 %v4353_v60, %v4340_v12 }
 0x5e6   :  { %v4633_v6 = vor.u32 1.1754944e-38, %v4632_v34  ;;  %vm4631_vm1 = vcmp.eq.f32.partialorder %v4630_v39, 8.507059e+37 }
 0x5e7   :  { %v4519_v19 = vmul.f32 %v7202_v10, %v4518_v15  ;;  %v6648_v22 = vmul.f32 -1.442695, %v4354_v16 }
 0x5e9   :  { %v4520_v24 = vadd.f32 %v7202_v10, %v4519_v19  ;;  %7205 = vpow2.f32 %v6648_v22 }
 0x5ea   :  { %v4341_v25 = vpop.f32.mrf.mxu3  ;;  %v7204_v3 = vpop.eup %7203 }
 0x5eb   :  { %v4342_v27 = vadd.f32 %v4341_v25, %v4328_v23  ;;  %v4524_v28 = vsel %vm4523_vm12, %v7202_v10, %v4520_v24  ;;  %v4622_v29 = vmul.f32 %v7204_v3, %v4453_v11  ;;  %v4355_v30 = vpop.f32.mrf.mxu0  ;;  %vm4627_vm14 = vweird.f32 %v7204_v3  ;;  %v4383_v8 = vpop.f32.mrf.mxu2 }
 0x5ec   :  { %v4529_v31 = vsel %vm4526_vm13, %v4528_v26, %v4524_v28  ;;  %vm4628_vm0 = vmor %vm4626_vm15, %vm4627_vm14 }
 0x5ed   :  { %v4356_v33 = vadd.f32 %v4355_v30, %v4342_v27  ;;  %4670 = vst [vmem:[#allocation23 + $0x20] sm:$0xff] %v4529_v31  ;;  %v4623_v54 = vsub.f32 1.0, %v4622_v29 }
 0x5ee   :  { %v4367_v43 = vpop.f32.mrf.mxu1 }
 0x5ef   :  { %v6655_v35 = vmul.f32 -1.442695, %v4356_v33  ;;  %v7206_v36 = vpop.eup %7205  ;;  %v4624_v38 = vmul.f32 %v7204_v3, %v4623_v54  ;;  %v4368_v48 = vadd.f32 %v4367_v43, %v3234_v44 }
 0x5f0   :  { %v4447_v55 = vadd.f32 1.0, %v7206_v36 }
 0x5f1   :  { %7207 = vpow2.f32 %v6655_v35  ;;  %v4625_v40 = vadd.f32 %v7204_v3, %v4624_v38  ;;  %v4382_v41 = vadd.f32 %v4381_v49, %v4368_v48 }
 0x5f2   :  { %7209 = vrcp.f32 %v4447_v55  ;;  %v4542_v51 = vand.u32 2147483648, %v4447_v55  ;;  %v4540_v52 = vand.u32 2147483647, %v4447_v55  ;;  %vm4536_vm3 = vweird.f32 %v4447_v55 }
 0x5f3   :  { %v4629_v37 = vsel %vm4628_vm0, %v7204_v3, %v4625_v40 }
 0x5f4   :  { %v4634_v42 = vsel %vm4631_vm1, %v4633_v6, %v4629_v37  ;;  %v4543_v21 = vor.u32 1.1754944e-38, %v4542_v51  ;;  %vm4541_vm5 = vcmp.eq.f32.partialorder %v4540_v52, 8.507059e+37 }
 0x5f5   :  { %4677 = vst [vmem:[#allocation23 + $0x58] sm:$0xff] %v4634_v42 }
 0x5f6   :  { %v4369_v53 = vpop.f32.mrf.mxu1 }
 0x5f7   :  { %v7208_v62 = vpop.eup %7207  ;;  %v4370_v63 = vadd.f32 %v4369_v53, %v3234_v44 }
 0x5f8   :  { %v4454_v45 = vadd.f32 1.0, %v7208_v62  ;;  %v7210_v47 = vpop.eup %7209 }
 0x5f9   :  { %v4532_v32 = vmul.f32 %v7210_v47, %v4447_v55  ;;  %vm4537_vm2 = vweird.f32 %v7210_v47  ;;  %v4384_v9 = vadd.f32 %v4383_v8, %v4370_v63 }
 0x5fa   :  { %7211 = vrcp.f32 %v4454_v45  ;;  %vm4538_vm4 = vmor %vm4536_vm3, %vm4537_vm2  ;;  %v4647_v4 = vand.u32 2147483648, %v4454_v45  ;;  %v4645_v7 = vand.u32 2147483647, %v4454_v45  ;;  %vm4641_vm7 = vweird.f32 %v4454_v45 }
 0x5fb   :  { %v4533_v50 = vsub.f32 1.0, %v4532_v32 }
 0x5fc   :  { %v4648_v11 = vor.u32 1.1754944e-38, %v4647_v4  ;;  %vm4646_vm9 = vcmp.eq.f32.partialorder %v4645_v7, 8.507059e+37 }
 0x5fd   :  { %v4534_v18 = vmul.f32 %v7210_v47, %v4533_v50 }
 0x5ff   :  { %v4535_v57 = vadd.f32 %v7210_v47, %v4534_v18 }
 0x600   :  { %v7212_v46 = vpop.eup %7211 }
 0x601   :  { %v4637_v59 = vmul.f32 %v7212_v46, %v4454_v45  ;;  %v4539_v61 = vsel %vm4538_vm4, %v7210_v47, %v4535_v57  ;;  %vm4642_vm6 = vweird.f32 %v7212_v46 }
 0x602   :  { %v4395_v56 = vpop.f32.mrf.mxu3  ;;  %v4544_v1 = vsel %vm4541_vm5, %v4543_v21, %v4539_v61  ;;  %vm4643_vm8 = vmor %vm4641_vm7, %vm4642_vm6 }
 0x603   :  { %v4396_v58 = vadd.f32 %v4395_v56, %v4382_v41  ;;  %v4638_v2 = vsub.f32 1.0, %v4637_v59  ;;  %4671 = vst [vmem:[#allocation23 + $0x28] sm:$0xff] %v4544_v1 }
 0x605   :  { %v6649_v0 = vmul.f32 -1.442695, %v4396_v58  ;;  %v4639_v5 = vmul.f32 %v7212_v46, %v4638_v2 }
 0x607   :  { %7213 = vpow2.f32 %v6649_v0  ;;  %v4640_v60 = vadd.f32 %v7212_v46, %v4639_v5 }
 0x609   :  { %v4644_v13 = vsel %vm4643_vm8, %v7212_v46, %v4640_v60 }
 0x60a   :  { %v4397_v10 = vpop.f32.mrf.mxu3  ;;  %v4649_v15 = vsel %vm4646_vm9, %v4648_v11, %v4644_v13 }
 0x60b   :  { %v4398_v12 = vadd.f32 %v4397_v10, %v4384_v9  ;;  %4678 = vst [vmem:[#allocation23 + $0x60] sm:$0xff] %v4649_v15 }
 0x60d   :  { %v7214_v14 = vpop.eup %7213  ;;  %v6656_v16 = vmul.f32 -1.442695, %v4398_v12 }
 0x60e   :  { %v4448_v17 = vadd.f32 1.0, %v7214_v14 }
 0x60f   :  { %7215 = vpow2.f32 %v6656_v16 }
 0x610   :  { %7217 = vrcp.f32 %v4448_v17  ;;  %v4557_v25 = vand.u32 2147483648, %v4448_v17  ;;  %v4555_v26 = vand.u32 2147483647, %v4448_v17  ;;  %vm4551_vm11 = vweird.f32 %v4448_v17 }
 0x612   :  { %v4558_v29 = vor.u32 1.1754944e-38, %v4557_v25  ;;  %vm4556_vm13 = vcmp.eq.f32.partialorder %v4555_v26, 8.507059e+37 }
 0x615   :  { %v7216_v19 = vpop.eup %7215 }
 0x616   :  { %v7218_v20 = vpop.eup %7217  ;;  %v4455_v22 = vadd.f32 1.0, %v7216_v19 }
 0x617   :  { %v4547_v23 = vmul.f32 %v7218_v20, %v4448_v17  ;;  %vm4552_vm10 = vweird.f32 %v7218_v20 }
 0x618   :  { %7219 = vrcp.f32 %v4455_v22  ;;  %vm4553_vm12 = vmor %vm4551_vm11, %vm4552_vm10  ;;  %v4662_v34 = vand.u32 2147483648, %v4455_v22  ;;  %v4660_v36 = vand.u32 2147483647, %v4455_v22  ;;  %vm4656_vm15 = vweird.f32 %v4455_v22 }
 0x619   :  { %v4548_v24 = vsub.f32 1.0, %v4547_v23 }
 0x61a   :  { %v4663_v39 = vor.u32 1.1754944e-38, %v4662_v34  ;;  %vm4661_vm1 = vcmp.eq.f32.partialorder %v4660_v36, 8.507059e+37 }
 0x61b   :  { %v4549_v3 = vmul.f32 %v7218_v20, %v4548_v24 }
 0x61d   :  { %v4550_v27 = vadd.f32 %v7218_v20, %v4549_v3 }
 0x61e   :  { %v7220_v28 = vpop.eup %7219 }
 0x61f   :  { %v4554_v30 = vsel %vm4553_vm12, %v7218_v20, %v4550_v27  ;;  %v4652_v31 = vmul.f32 %v7220_v28, %v4455_v22  ;;  %vm4657_vm14 = vweird.f32 %v7220_v28 }
 0x620   :  { %v4559_v33 = vsel %vm4556_vm13, %v4558_v29, %v4554_v30  ;;  %vm4658_vm0 = vmor %vm4656_vm15, %vm4657_vm14 }
 0x621   :  { %4672 = vst [vmem:[#allocation23 + $0x30] sm:$0xff] %v4559_v33  ;;  %v4653_v54 = vsub.f32 1.0, %v4652_v31 }
 0x623   :  { %v4654_v35 = vmul.f32 %v7220_v28, %v4653_v54 }
 0x625   :  { %v4655_v38 = vadd.f32 %v7220_v28, %v4654_v35 }
 0x627   :  { %v4659_v55 = vsel %vm4658_vm0, %v7220_v28, %v4655_v38 }
 0x628   :  { %v4664_v40 = vsel %vm4661_vm1, %v4663_v39, %v4659_v55 }
 0x629   :  { %4679 = vst [vmem:[#allocation23 + $0x68] sm:$0xff] %v4664_v40 }
 0x62a   :  { %4692 = dma.vmem_to_hbm [thread:$0]  %s4685_s25, 1792, %s4687_s0, [#allocation4], %s7610_s21, %s7610_s21, %s7611_s24  }
 0x62b   :  { %7595 = dma.done.wait [#allocation4], 1792  }
 0x62c   :  { %7596 = vsyncadd [#allocation4], 4294965504 }
 0x62d   :  { %7597 = dma.done.wait [#allocation25], 256  }
 0x62e   :  { %7598 = vsyncadd [#allocation25], 4294967040 }
 0x62f   :  { %4714 = vsyncpa [#allocation3], 1 }
 0x630   :  { %4715 = vsyncpa [#allocation6], 1 }
 0x631   :  { %4716 = vsyncpa [#allocation9], 1 }
 0x632   :  { %4717 = vsyncpa [#allocation12], 1 }
 0x633   :  { %4718 = vsyncpa [#allocation15], 1 }
 0x634   :  { %4719 = vsyncpa [#allocation18], 1 }
 0x635   :  { %4720 = vsyncpa [#allocation21], 1 }
 0x636   :  { %4721 = vsyncpa [#allocation4], 1 }
 0x637   :  { %4722 = vsyncpa [#allocation25], 1 }

</bundles_post_ra>
